<compile_context>
chip_gen: v6e
topology: v6e:2x2x1
jax: 0.10.0
libtpu: 0.0.40
codegen_flags: <defaults>
</compile_context>

<pallas_src>
import math
import functools

import jax
import jax.numpy as jnp
from jax.experimental import pallas as pl
from jax.experimental.pallas import tpu as pltpu  # noqa: F401  (TPU backend)

# ----------------------------- hyper-parameters -----------------------------
WORDS_NUM_IN_DICT = 50   # vocabulary size
WORD_NUM = 8             # tokens per config
QUERY_SIZE = 16          # additive-attention query dim
EMBEDDING_SIZE = 32      # config embedding dim
NHEAD = 4                # self-attention heads
HIDDEN_SIZE = 64         # vm-encoder hidden dim
NUM_VMS = 5              # number of distinct vm ids

BATCH = 2
CAND_NUM = 3
HIS_NUM = 4

assert EMBEDDING_SIZE % NHEAD == 0, "embedding_size must be divisible by nhead"


# ------------------------------ fused Pallas kernel --------------------------
def config_rec_kernel(x_ref, vme_ref,
                      wq_ref, wk_ref, wv_ref, wo_ref, att_w_ref, att_v_ref,
                      vm_att_w_ref, vm_att_q_ref, vm_w1_ref, vm_w2_ref,
                      pw_vm_ref, pw_req_ref, pred_b_ref,
                      out_ref, *, batch, his_num, cand_num, word_num, nhead):
    """Entire ConfigRec forward in one kernel invocation.

    x_ref   : (N*W, E) token(+vm) embeddings for all configs, rows ordered as
              [request (B) | history (B*His) | candidates (B*C)], flattened.
    vme_ref : (B, E) vm-id embedding (for the VM encoder).
    out_ref : (B, C) raw candidate scores.
    """
    B, His, C, W, H = batch, his_num, cand_num, word_num, nhead

    x = x_ref[...]                                   # (N*W, E) f32
    NW, E = x.shape
    N = NW // W
    dh = E // H
    scale = 1.0 / math.sqrt(dh)

    # -------- config encoder: Q/K/V projections as single 128-row matmuls ----
    q = jnp.dot(x, wq_ref[...], preferred_element_type=jnp.float32)   # (NW, E)
    k = jnp.dot(x, wk_ref[...], preferred_element_type=jnp.float32)   # (NW, E)
    v = jnp.dot(x, wv_ref[...], preferred_element_type=jnp.float32)   # (NW, E)

    # Per-head attention, batched over all N configs at once (single batch
    # dim, no explicit transpose).  H is tiny and static (4 iterations).
    head_outs = []
    for h in range(H):
        lo, hi = h * dh, (h + 1) * dh
        qh = q[:, lo:hi].reshape(N, W, dh)
        kh = k[:, lo:hi].reshape(N, W, dh)
        vh = v[:, lo:hi].reshape(N, W, dh)
        s = jnp.einsum('nqd,nkd->nqk', qh, kh,
                       preferred_element_type=jnp.float32) * scale     # (N, W, W)
        s = s - jnp.max(s, axis=-1, keepdims=True)
        p = jnp.exp(s)
        p = p * pl.reciprocal(jnp.sum(p, axis=-1, keepdims=True), approx=True)
        oh = jnp.einsum('nqk,nkd->nqd', p, vh,
                        preferred_element_type=jnp.float32)            # (N, W, dh)
        head_outs.append(oh.reshape(NW, dh))

    # Single output projection with the full wo (heads contiguous along E).
    y = jnp.dot(jnp.concatenate(head_outs, axis=-1), wo_ref[...],
                preferred_element_type=jnp.float32)                    # (NW, E)

    # Additive attention pooling over the W tokens of each config.
    t = jnp.tanh(jnp.dot(y, att_w_ref[...],
                         preferred_element_type=jnp.float32))          # (NW, Q)
    Qd = t.shape[-1]
    av = att_v_ref[...][None]                                          # (1, 1, Q)
    t3 = t.reshape(N, W, Qd)
    sc = jnp.sum(t3 * av, axis=-1)                                     # (N, W)
    sc = sc - jnp.max(sc, axis=-1, keepdims=True)
    a = jnp.exp(sc)
    a = a * pl.reciprocal(jnp.sum(a, axis=-1, keepdims=True), approx=True)
    pooled = jnp.sum(a[..., None] * y.reshape(N, W, E), axis=1)        # (N, E)

    # Split pooled rows: [request | history | candidates]
    req = pooled[:B]                                                   # (B, E)
    hist = pooled[B:B + B * His]                                       # (B*His, E)
    cand = pooled[B + B * His:].reshape(B, C, E)                       # (B, C, E)

    # -------- vm encoder: vm-conditioned attention pooling + 2-layer MLP -----
    vme = vme_ref[...]                                                 # (B, E)
    att = jnp.tanh(jnp.dot(hist, vm_att_w_ref[...],
                           preferred_element_type=jnp.float32))        # (B*His, Q)
    att3 = att.reshape(B, His, Qd)
    qv = jnp.dot(vme, vm_att_q_ref[...],
                 preferred_element_type=jnp.float32)                   # (B, Q)
    s2 = jnp.sum(att3 * qv[:, None, :], axis=-1)                       # (B, His)
    s2 = s2 - jnp.max(s2, axis=-1, keepdims=True)
    a2 = jnp.exp(s2)
    a2 = a2 * pl.reciprocal(jnp.sum(a2, axis=-1, keepdims=True), approx=True)
    vm_pooled = jnp.sum(a2[..., None] * hist.reshape(B, His, E), axis=1)   # (B, E)
    hdn = jnp.tanh(jnp.dot(vm_pooled, vm_w1_ref[...],
                           preferred_element_type=jnp.float32))        # (B, hidden)
    vm = jnp.dot(hdn, vm_w2_ref[...],
                 preferred_element_type=jnp.float32)                   # (B, E)

    # -------- prediction: split-weight [vm ; request] -> E, dot candidates ---
    u = (jnp.dot(vm, pw_vm_ref[...], preferred_element_type=jnp.float32)
         + jnp.dot(req, pw_req_ref[...], preferred_element_type=jnp.float32)
         + pred_b_ref[...])                                            # (B, E)
    out_ref[...] = jnp.sum(cand * u[:, None, :], axis=-1).astype(out_ref.dtype)


# ------------------------------ JAX-side wrapper ------------------------------
@jax.jit
def config_rec_forward(params, request_input, candidate_inputs, history_inputs, vm_id):
    B, C, W = candidate_inputs.shape
    _, His, _ = history_inputs.shape
    E = EMBEDDING_SIZE

    # One token tensor for request + history + candidates, one embedding gather.
    all_tokens = jnp.concatenate(
        [request_input,                                   # (B, W)
         history_inputs.reshape(B * His, W),              # (B*His, W)
         candidate_inputs.reshape(B * C, W)], axis=0)     # -> (N, W)
    # TODO(synk): ConfigEncoder source not provided; vm-id conditioning of each
    # token row is modeled as an added vm embedding (row order matches .view()).
    row_vm = jnp.concatenate(
        [vm_id, jnp.repeat(vm_id, His), jnp.repeat(vm_id, C)], axis=0)  # (N,)

    tok_emb = jnp.take(params['word_emb'], all_tokens, axis=0)          # (N, W, E)
    row_vm_emb = jnp.take(params['vm_emb'], row_vm, axis=0)             # (N, E)
    x = (tok_emb + row_vm_emb[:, None, :]).astype(jnp.float32)
    x = x.reshape(B * (1 + His + C) * W, E)                             # (128, 32)

    vm_emb = jnp.take(params['vm_emb'], vm_id, axis=0).astype(jnp.float32)  # (B, E)

    # Split prediction weight so the kernel avoids an in-kernel concat.
    pw_vm = params['pred_w'][:E]                                        # (E, E)
    pw_req = params['pred_w'][E:]                                       # (E, E)
    att_v_t = params['att_v'].T                                         # (1, Q)

    out = pl.pallas_call(
        functools.partial(config_rec_kernel, batch=B, his_num=His,
                          cand_num=C, word_num=W, nhead=NHEAD),
        out_shape=jax.ShapeDtypeStruct((B, C), jnp.float32),
    )(x, vm_emb,
      params['wq'], params['wk'], params['wv'], params['wo'],
      params['att_w'], att_v_t,
      params['vm_att_w'], params['vm_att_q'], params['vm_w1'], params['vm_w2'],
      pw_vm, pw_req, params['pred_b'])
    return out                                                          # (B, C)


# ------------------------------ parameter init --------------------------------
def init_params(key):
    # TODO(synk): ConfigEncoder / VMEncoder / Prediction source was not provided;
    # parameter shapes follow the standard attention-pooling architecture implied
    # by the constructor arguments and forward() usage.
    E, Q, H = EMBEDDING_SIZE, QUERY_SIZE, HIDDEN_SIZE
    ks = jax.random.split(key, 14)

    def nrm(k, shape, scale=0.05):
        return scale * jax.random.normal(k, shape, jnp.float32)

    return dict(
        word_emb=nrm(ks[0], (WORDS_NUM_IN_DICT, E)),
        vm_emb=nrm(ks[1], (NUM_VMS, E)),
        # ConfigEncoder: MHSA + additive attention pooling
        wq=nrm(ks[2], (E, E)),
        wk=nrm(ks[3], (E, E)),
        wv=nrm(ks[4], (E, E)),
        wo=nrm(ks[5], (E, E)),
        att_w=nrm(ks[6], (E, Q)),
        att_v=nrm(ks[7], (Q, 1)),
        # VMEncoder: vm-conditioned attention pooling + MLP
        vm_att_w=nrm(ks[8], (E, Q)),
        vm_att_q=nrm(ks[9], (E, Q)),
        vm_w1=nrm(ks[10], (E, H)),
        vm_w2=nrm(ks[11], (H, E)),
        # Prediction: [vm ; request] -> E, dot with candidates
        pred_w=nrm(ks[12], (2 * E, E)),
        pred_b=nrm(ks[13], (1, E)),
    )


# ----------------------------------- main --------------------------------------
if __name__ == "__main__":
    key = jax.random.PRNGKey(0)
    kp, k1, k2, k3, k4 = jax.random.split(key, 5)

    params = init_params(kp)

    request_input = jax.random.randint(k1, (BATCH, WORD_NUM), 0, WORDS_NUM_IN_DICT, jnp.int32)
    candidate_inputs = jax.random.randint(k2, (BATCH, CAND_NUM, WORD_NUM), 0, WORDS_NUM_IN_DICT, jnp.int32)
    history_inputs = jax.random.randint(k3, (BATCH, HIS_NUM, WORD_NUM), 0, WORDS_NUM_IN_DICT, jnp.int32)
    vm_id = jax.random.randint(k4, (BATCH,), 0, NUM_VMS, jnp.int32)

    out = config_rec_forward(params, request_input, candidate_inputs, history_inputs, vm_id)
    out = jax.block_until_ready(out)
    assert out.shape == (BATCH, CAND_NUM)
    print("KERNEL_OK")
</pallas_src>

<mosaic_0001>
module attributes {stable_mosaic.version = 11 : i64} {
  func.func @config_rec_kernel(%arg0: memref<128x32xf32, #tpu.memory_space<vmem>>, %arg1: memref<2x32xf32, #tpu.memory_space<vmem>>, %arg2: memref<32x32xf32, #tpu.memory_space<vmem>>, %arg3: memref<32x32xf32, #tpu.memory_space<vmem>>, %arg4: memref<32x32xf32, #tpu.memory_space<vmem>>, %arg5: memref<32x32xf32, #tpu.memory_space<vmem>>, %arg6: memref<32x16xf32, #tpu.memory_space<vmem>>, %arg7: memref<1x16xf32, #tpu.memory_space<vmem>>, %arg8: memref<32x16xf32, #tpu.memory_space<vmem>>, %arg9: memref<32x16xf32, #tpu.memory_space<vmem>>, %arg10: memref<32x64xf32, #tpu.memory_space<vmem>>, %arg11: memref<64x32xf32, #tpu.memory_space<vmem>>, %arg12: memref<32x32xf32, #tpu.memory_space<vmem>>, %arg13: memref<32x32xf32, #tpu.memory_space<vmem>>, %arg14: memref<1x32xf32, #tpu.memory_space<vmem>>, %arg15: memref<2x3xf32, #tpu.memory_space<vmem>>) attributes {dimension_semantics = [], scalar_prefetch = 0 : i64, scratch_operands = 0 : i64, tpu.core_type = #tpu.core_type<tc>} {
    %c0 = arith.constant 0 : index
    %c0_0 = arith.constant 0 : index
    %0 = vector.load %arg0[%c0, %c0_0] : memref<128x32xf32, #tpu.memory_space<vmem>>, vector<128x32xf32>
    %c0_1 = arith.constant 0 : index
    %c0_2 = arith.constant 0 : index
    %1 = vector.load %arg2[%c0_1, %c0_2] : memref<32x32xf32, #tpu.memory_space<vmem>>, vector<32x32xf32>
    %cst = arith.constant dense<0.000000e+00> : vector<128x32xf32>
    %2 = tpu.matmul %0, %1, %cst {dimension_numbers = #tpu.dot_dimension_numbers<[1], [0], [0], [1], [0, 0, 1, 1], [], []>} : vector<128x32xf32>, vector<32x32xf32>, vector<128x32xf32> -> vector<128x32xf32>
    %c0_3 = arith.constant 0 : index
    %c0_4 = arith.constant 0 : index
    %3 = vector.load %arg3[%c0_3, %c0_4] : memref<32x32xf32, #tpu.memory_space<vmem>>, vector<32x32xf32>
    %cst_5 = arith.constant dense<0.000000e+00> : vector<128x32xf32>
    %4 = tpu.matmul %0, %3, %cst_5 {dimension_numbers = #tpu.dot_dimension_numbers<[1], [0], [0], [1], [0, 0, 1, 1], [], []>} : vector<128x32xf32>, vector<32x32xf32>, vector<128x32xf32> -> vector<128x32xf32>
    %c0_6 = arith.constant 0 : index
    %c0_7 = arith.constant 0 : index
    %5 = vector.load %arg4[%c0_6, %c0_7] : memref<32x32xf32, #tpu.memory_space<vmem>>, vector<32x32xf32>
    %cst_8 = arith.constant dense<0.000000e+00> : vector<128x32xf32>
    %6 = tpu.matmul %0, %5, %cst_8 {dimension_numbers = #tpu.dot_dimension_numbers<[1], [0], [0], [1], [0, 0, 1, 1], [], []>} : vector<128x32xf32>, vector<32x32xf32>, vector<128x32xf32> -> vector<128x32xf32>
    %7 = vector.extract_strided_slice %2 {offsets = [0, 0], sizes = [128, 8], strides = [1, 1]} : vector<128x32xf32> to vector<128x8xf32>
    %8 = vector.shape_cast %7 : vector<128x8xf32> to vector<16x8x8xf32>
    %9 = vector.extract_strided_slice %4 {offsets = [0, 0], sizes = [128, 8], strides = [1, 1]} : vector<128x32xf32> to vector<128x8xf32>
    %10 = vector.shape_cast %9 : vector<128x8xf32> to vector<16x8x8xf32>
    %11 = vector.extract_strided_slice %6 {offsets = [0, 0], sizes = [128, 8], strides = [1, 1]} : vector<128x32xf32> to vector<128x8xf32>
    %12 = vector.shape_cast %11 : vector<128x8xf32> to vector<16x8x8xf32>
    "tpu.trace_start"() <{level = 10 : i32, message = "nqd,nkd->nqk"}> : () -> ()
    %cst_9 = arith.constant dense<0.000000e+00> : vector<16x8x8xf32>
    %13 = tpu.matmul %8, %10, %cst_9 {dimension_numbers = #tpu.dot_dimension_numbers<[2], [2], [1], [1], [0, 0, 0, 1, 1, 1], [0], [0]>} : vector<16x8x8xf32>, vector<16x8x8xf32>, vector<16x8x8xf32> -> vector<16x8x8xf32>
    "tpu.trace_stop"() : () -> ()
    %cst_10 = arith.constant 0.353553385 : f32
    %14 = vector.broadcast %cst_10 : f32 to vector<16x8x8xf32>
    %15 = arith.mulf %13, %14 : vector<16x8x8xf32>
    %cst_11 = arith.constant dense<0xFF800000> : vector<16x8xf32>
    %16 = vector.multi_reduction <maximumf>, %15, %cst_11 [2] : vector<16x8x8xf32> to vector<16x8xf32>
    %17 = vector.shape_cast %16 : vector<16x8xf32> to vector<16x8x1xf32>
    %18 = vector.broadcast %17 : vector<16x8x1xf32> to vector<16x8x8xf32>
    %19 = arith.subf %15, %18 : vector<16x8x8xf32>
    %20 = math.exp %19 : vector<16x8x8xf32>
    %cst_12 = arith.constant dense<0.000000e+00> : vector<16x8xf32>
    %21 = vector.multi_reduction <add>, %20, %cst_12 [2] : vector<16x8x8xf32> to vector<16x8xf32>
    %22 = vector.shape_cast %21 : vector<16x8xf32> to vector<16x8x1xf32>
    %23 = tpu.reciprocal %22 {approx = true} : vector<16x8x1xf32> -> vector<16x8x1xf32>
    %24 = vector.broadcast %23 : vector<16x8x1xf32> to vector<16x8x8xf32>
    %25 = arith.mulf %20, %24 : vector<16x8x8xf32>
    "tpu.trace_start"() <{level = 10 : i32, message = "nqk,nkd->nqd"}> : () -> ()
    %cst_13 = arith.constant dense<0.000000e+00> : vector<16x8x8xf32>
    %26 = tpu.matmul %25, %12, %cst_13 {dimension_numbers = #tpu.dot_dimension_numbers<[2], [1], [1], [2], [0, 0, 0, 1, 1, 2], [0], [0]>} : vector<16x8x8xf32>, vector<16x8x8xf32>, vector<16x8x8xf32> -> vector<16x8x8xf32>
    "tpu.trace_stop"() : () -> ()
    %27 = vector.shape_cast %26 : vector<16x8x8xf32> to vector<128x8xf32>
    %28 = vector.extract_strided_slice %2 {offsets = [0, 8], sizes = [128, 8], strides = [1, 1]} : vector<128x32xf32> to vector<128x8xf32>
    %29 = vector.shape_cast %28 : vector<128x8xf32> to vector<16x8x8xf32>
    %30 = vector.extract_strided_slice %4 {offsets = [0, 8], sizes = [128, 8], strides = [1, 1]} : vector<128x32xf32> to vector<128x8xf32>
    %31 = vector.shape_cast %30 : vector<128x8xf32> to vector<16x8x8xf32>
    %32 = vector.extract_strided_slice %6 {offsets = [0, 8], sizes = [128, 8], strides = [1, 1]} : vector<128x32xf32> to vector<128x8xf32>
    %33 = vector.shape_cast %32 : vector<128x8xf32> to vector<16x8x8xf32>
    "tpu.trace_start"() <{level = 10 : i32, message = "nqd,nkd->nqk"}> : () -> ()
    %cst_14 = arith.constant dense<0.000000e+00> : vector<16x8x8xf32>
    %34 = tpu.matmul %29, %31, %cst_14 {dimension_numbers = #tpu.dot_dimension_numbers<[2], [2], [1], [1], [0, 0, 0, 1, 1, 1], [0], [0]>} : vector<16x8x8xf32>, vector<16x8x8xf32>, vector<16x8x8xf32> -> vector<16x8x8xf32>
    "tpu.trace_stop"() : () -> ()
    %cst_15 = arith.constant 0.353553385 : f32
    %35 = vector.broadcast %cst_15 : f32 to vector<16x8x8xf32>
    %36 = arith.mulf %34, %35 : vector<16x8x8xf32>
    %cst_16 = arith.constant dense<0xFF800000> : vector<16x8xf32>
    %37 = vector.multi_reduction <maximumf>, %36, %cst_16 [2] : vector<16x8x8xf32> to vector<16x8xf32>
    %38 = vector.shape_cast %37 : vector<16x8xf32> to vector<16x8x1xf32>
    %39 = vector.broadcast %38 : vector<16x8x1xf32> to vector<16x8x8xf32>
    %40 = arith.subf %36, %39 : vector<16x8x8xf32>
    %41 = math.exp %40 : vector<16x8x8xf32>
    %cst_17 = arith.constant dense<0.000000e+00> : vector<16x8xf32>
    %42 = vector.multi_reduction <add>, %41, %cst_17 [2] : vector<16x8x8xf32> to vector<16x8xf32>
    %43 = vector.shape_cast %42 : vector<16x8xf32> to vector<16x8x1xf32>
    %44 = tpu.reciprocal %43 {approx = true} : vector<16x8x1xf32> -> vector<16x8x1xf32>
    %45 = vector.broadcast %44 : vector<16x8x1xf32> to vector<16x8x8xf32>
    %46 = arith.mulf %41, %45 : vector<16x8x8xf32>
    "tpu.trace_start"() <{level = 10 : i32, message = "nqk,nkd->nqd"}> : () -> ()
    %cst_18 = arith.constant dense<0.000000e+00> : vector<16x8x8xf32>
    %47 = tpu.matmul %46, %33, %cst_18 {dimension_numbers = #tpu.dot_dimension_numbers<[2], [1], [1], [2], [0, 0, 0, 1, 1, 2], [0], [0]>} : vector<16x8x8xf32>, vector<16x8x8xf32>, vector<16x8x8xf32> -> vector<16x8x8xf32>
    "tpu.trace_stop"() : () -> ()
    %48 = vector.shape_cast %47 : vector<16x8x8xf32> to vector<128x8xf32>
    %49 = vector.extract_strided_slice %2 {offsets = [0, 16], sizes = [128, 8], strides = [1, 1]} : vector<128x32xf32> to vector<128x8xf32>
    %50 = vector.shape_cast %49 : vector<128x8xf32> to vector<16x8x8xf32>
    %51 = vector.extract_strided_slice %4 {offsets = [0, 16], sizes = [128, 8], strides = [1, 1]} : vector<128x32xf32> to vector<128x8xf32>
    %52 = vector.shape_cast %51 : vector<128x8xf32> to vector<16x8x8xf32>
    %53 = vector.extract_strided_slice %6 {offsets = [0, 16], sizes = [128, 8], strides = [1, 1]} : vector<128x32xf32> to vector<128x8xf32>
    %54 = vector.shape_cast %53 : vector<128x8xf32> to vector<16x8x8xf32>
    "tpu.trace_start"() <{level = 10 : i32, message = "nqd,nkd->nqk"}> : () -> ()
    %cst_19 = arith.constant dense<0.000000e+00> : vector<16x8x8xf32>
    %55 = tpu.matmul %50, %52, %cst_19 {dimension_numbers = #tpu.dot_dimension_numbers<[2], [2], [1], [1], [0, 0, 0, 1, 1, 1], [0], [0]>} : vector<16x8x8xf32>, vector<16x8x8xf32>, vector<16x8x8xf32> -> vector<16x8x8xf32>
    "tpu.trace_stop"() : () -> ()
    %cst_20 = arith.constant 0.353553385 : f32
    %56 = vector.broadcast %cst_20 : f32 to vector<16x8x8xf32>
    %57 = arith.mulf %55, %56 : vector<16x8x8xf32>
    %cst_21 = arith.constant dense<0xFF800000> : vector<16x8xf32>
    %58 = vector.multi_reduction <maximumf>, %57, %cst_21 [2] : vector<16x8x8xf32> to vector<16x8xf32>
    %59 = vector.shape_cast %58 : vector<16x8xf32> to vector<16x8x1xf32>
    %60 = vector.broadcast %59 : vector<16x8x1xf32> to vector<16x8x8xf32>
    %61 = arith.subf %57, %60 : vector<16x8x8xf32>
    %62 = math.exp %61 : vector<16x8x8xf32>
    %cst_22 = arith.constant dense<0.000000e+00> : vector<16x8xf32>
    %63 = vector.multi_reduction <add>, %62, %cst_22 [2] : vector<16x8x8xf32> to vector<16x8xf32>
    %64 = vector.shape_cast %63 : vector<16x8xf32> to vector<16x8x1xf32>
    %65 = tpu.reciprocal %64 {approx = true} : vector<16x8x1xf32> -> vector<16x8x1xf32>
    %66 = vector.broadcast %65 : vector<16x8x1xf32> to vector<16x8x8xf32>
    %67 = arith.mulf %62, %66 : vector<16x8x8xf32>
    "tpu.trace_start"() <{level = 10 : i32, message = "nqk,nkd->nqd"}> : () -> ()
    %cst_23 = arith.constant dense<0.000000e+00> : vector<16x8x8xf32>
    %68 = tpu.matmul %67, %54, %cst_23 {dimension_numbers = #tpu.dot_dimension_numbers<[2], [1], [1], [2], [0, 0, 0, 1, 1, 2], [0], [0]>} : vector<16x8x8xf32>, vector<16x8x8xf32>, vector<16x8x8xf32> -> vector<16x8x8xf32>
    "tpu.trace_stop"() : () -> ()
    %69 = vector.shape_cast %68 : vector<16x8x8xf32> to vector<128x8xf32>
    %70 = vector.extract_strided_slice %2 {offsets = [0, 24], sizes = [128, 8], strides = [1, 1]} : vector<128x32xf32> to vector<128x8xf32>
    %71 = vector.shape_cast %70 : vector<128x8xf32> to vector<16x8x8xf32>
    %72 = vector.extract_strided_slice %4 {offsets = [0, 24], sizes = [128, 8], strides = [1, 1]} : vector<128x32xf32> to vector<128x8xf32>
    %73 = vector.shape_cast %72 : vector<128x8xf32> to vector<16x8x8xf32>
    %74 = vector.extract_strided_slice %6 {offsets = [0, 24], sizes = [128, 8], strides = [1, 1]} : vector<128x32xf32> to vector<128x8xf32>
    %75 = vector.shape_cast %74 : vector<128x8xf32> to vector<16x8x8xf32>
    "tpu.trace_start"() <{level = 10 : i32, message = "nqd,nkd->nqk"}> : () -> ()
    %cst_24 = arith.constant dense<0.000000e+00> : vector<16x8x8xf32>
    %76 = tpu.matmul %71, %73, %cst_24 {dimension_numbers = #tpu.dot_dimension_numbers<[2], [2], [1], [1], [0, 0, 0, 1, 1, 1], [0], [0]>} : vector<16x8x8xf32>, vector<16x8x8xf32>, vector<16x8x8xf32> -> vector<16x8x8xf32>
    "tpu.trace_stop"() : () -> ()
    %cst_25 = arith.constant 0.353553385 : f32
    %77 = vector.broadcast %cst_25 : f32 to vector<16x8x8xf32>
    %78 = arith.mulf %76, %77 : vector<16x8x8xf32>
    %cst_26 = arith.constant dense<0xFF800000> : vector<16x8xf32>
    %79 = vector.multi_reduction <maximumf>, %78, %cst_26 [2] : vector<16x8x8xf32> to vector<16x8xf32>
    %80 = vector.shape_cast %79 : vector<16x8xf32> to vector<16x8x1xf32>
    %81 = vector.broadcast %80 : vector<16x8x1xf32> to vector<16x8x8xf32>
    %82 = arith.subf %78, %81 : vector<16x8x8xf32>
    %83 = math.exp %82 : vector<16x8x8xf32>
    %cst_27 = arith.constant dense<0.000000e+00> : vector<16x8xf32>
    %84 = vector.multi_reduction <add>, %83, %cst_27 [2] : vector<16x8x8xf32> to vector<16x8xf32>
    %85 = vector.shape_cast %84 : vector<16x8xf32> to vector<16x8x1xf32>
    %86 = tpu.reciprocal %85 {approx = true} : vector<16x8x1xf32> -> vector<16x8x1xf32>
    %87 = vector.broadcast %86 : vector<16x8x1xf32> to vector<16x8x8xf32>
    %88 = arith.mulf %83, %87 : vector<16x8x8xf32>
    "tpu.trace_start"() <{level = 10 : i32, message = "nqk,nkd->nqd"}> : () -> ()
    %cst_28 = arith.constant dense<0.000000e+00> : vector<16x8x8xf32>
    %89 = tpu.matmul %88, %75, %cst_28 {dimension_numbers = #tpu.dot_dimension_numbers<[2], [1], [1], [2], [0, 0, 0, 1, 1, 2], [0], [0]>} : vector<16x8x8xf32>, vector<16x8x8xf32>, vector<16x8x8xf32> -> vector<16x8x8xf32>
    "tpu.trace_stop"() : () -> ()
    %90 = vector.shape_cast %89 : vector<16x8x8xf32> to vector<128x8xf32>
    %91 = tpu.concatenate %27, %48, %69, %90 in 1 : vector<128x8xf32>, vector<128x8xf32>, vector<128x8xf32>, vector<128x8xf32> -> vector<128x32xf32>
    %c0_29 = arith.constant 0 : index
    %c0_30 = arith.constant 0 : index
    %92 = vector.load %arg5[%c0_29, %c0_30] : memref<32x32xf32, #tpu.memory_space<vmem>>, vector<32x32xf32>
    %cst_31 = arith.constant dense<0.000000e+00> : vector<128x32xf32>
    %93 = tpu.matmul %91, %92, %cst_31 {dimension_numbers = #tpu.dot_dimension_numbers<[1], [0], [0], [1], [0, 0, 1, 1], [], []>} : vector<128x32xf32>, vector<32x32xf32>, vector<128x32xf32> -> vector<128x32xf32>
    %c0_32 = arith.constant 0 : index
    %c0_33 = arith.constant 0 : index
    %94 = vector.load %arg6[%c0_32, %c0_33] : memref<32x16xf32, #tpu.memory_space<vmem>>, vector<32x16xf32>
    %cst_34 = arith.constant dense<0.000000e+00> : vector<128x16xf32>
    %95 = tpu.matmul %93, %94, %cst_34 {dimension_numbers = #tpu.dot_dimension_numbers<[1], [0], [0], [1], [0, 0, 1, 1], [], []>} : vector<128x32xf32>, vector<32x16xf32>, vector<128x16xf32> -> vector<128x16xf32>
    %96 = math.tanh %95 : vector<128x16xf32>
    %c0_35 = arith.constant 0 : index
    %c0_36 = arith.constant 0 : index
    %97 = vector.load %arg7[%c0_35, %c0_36] : memref<1x16xf32, #tpu.memory_space<vmem>>, vector<1x16xf32>
    %98 = vector.shape_cast %97 : vector<1x16xf32> to vector<1x1x16xf32>
    %99 = vector.shape_cast %96 : vector<128x16xf32> to vector<16x8x16xf32>
    %100 = vector.broadcast %98 : vector<1x1x16xf32> to vector<16x8x16xf32>
    %101 = arith.mulf %99, %100 : vector<16x8x16xf32>
    %cst_37 = arith.constant dense<0.000000e+00> : vector<16x8xf32>
    %102 = vector.multi_reduction <add>, %101, %cst_37 [2] : vector<16x8x16xf32> to vector<16x8xf32>
    %cst_38 = arith.constant dense<0xFF800000> : vector<16xf32>
    %103 = vector.multi_reduction <maximumf>, %102, %cst_38 [1] : vector<16x8xf32> to vector<16xf32>
    %104 = vector.shape_cast %103 : vector<16xf32> to vector<16x1xf32>
    %105 = vector.broadcast %104 : vector<16x1xf32> to vector<16x8xf32>
    %106 = arith.subf %102, %105 : vector<16x8xf32>
    %107 = math.exp %106 : vector<16x8xf32>
    %cst_39 = arith.constant dense<0.000000e+00> : vector<16xf32>
    %108 = vector.multi_reduction <add>, %107, %cst_39 [1] : vector<16x8xf32> to vector<16xf32>
    %109 = vector.shape_cast %108 : vector<16xf32> to vector<16x1xf32>
    %110 = tpu.reciprocal %109 {approx = true} : vector<16x1xf32> -> vector<16x1xf32>
    %111 = vector.broadcast %110 : vector<16x1xf32> to vector<16x8xf32>
    %112 = arith.mulf %107, %111 : vector<16x8xf32>
    %113 = vector.shape_cast %112 : vector<16x8xf32> to vector<16x8x1xf32>
    %114 = vector.shape_cast %93 : vector<128x32xf32> to vector<16x8x32xf32>
    %115 = vector.broadcast %113 : vector<16x8x1xf32> to vector<16x8x32xf32>
    %116 = arith.mulf %115, %114 : vector<16x8x32xf32>
    %cst_40 = arith.constant dense<0.000000e+00> : vector<16x32xf32>
    %117 = vector.multi_reduction <add>, %116, %cst_40 [1] : vector<16x8x32xf32> to vector<16x32xf32>
    %118 = vector.extract_strided_slice %117 {offsets = [0, 0], sizes = [2, 32], strides = [1, 1]} : vector<16x32xf32> to vector<2x32xf32>
    %119 = vector.extract_strided_slice %117 {offsets = [2, 0], sizes = [8, 32], strides = [1, 1]} : vector<16x32xf32> to vector<8x32xf32>
    %120 = vector.extract_strided_slice %117 {offsets = [10, 0], sizes = [6, 32], strides = [1, 1]} : vector<16x32xf32> to vector<6x32xf32>
    %121 = vector.shape_cast %120 : vector<6x32xf32> to vector<2x3x32xf32>
    %c0_41 = arith.constant 0 : index
    %c0_42 = arith.constant 0 : index
    %122 = vector.load %arg1[%c0_41, %c0_42] : memref<2x32xf32, #tpu.memory_space<vmem>>, vector<2x32xf32>
    %c0_43 = arith.constant 0 : index
    %c0_44 = arith.constant 0 : index
    %123 = vector.load %arg8[%c0_43, %c0_44] : memref<32x16xf32, #tpu.memory_space<vmem>>, vector<32x16xf32>
    %cst_45 = arith.constant dense<0.000000e+00> : vector<8x16xf32>
    %124 = tpu.matmul %119, %123, %cst_45 {dimension_numbers = #tpu.dot_dimension_numbers<[1], [0], [0], [1], [0, 0, 1, 1], [], []>} : vector<8x32xf32>, vector<32x16xf32>, vector<8x16xf32> -> vector<8x16xf32>
    %125 = math.tanh %124 : vector<8x16xf32>
    %126 = vector.shape_cast %125 : vector<8x16xf32> to vector<2x4x16xf32>
    %c0_46 = arith.constant 0 : index
    %c0_47 = arith.constant 0 : index
    %127 = vector.load %arg9[%c0_46, %c0_47] : memref<32x16xf32, #tpu.memory_space<vmem>>, vector<32x16xf32>
    %cst_48 = arith.constant dense<0.000000e+00> : vector<2x16xf32>
    %128 = tpu.matmul %122, %127, %cst_48 {dimension_numbers = #tpu.dot_dimension_numbers<[1], [0], [0], [1], [0, 0, 1, 1], [], []>} : vector<2x32xf32>, vector<32x16xf32>, vector<2x16xf32> -> vector<2x16xf32>
    %129 = vector.shape_cast %128 : vector<2x16xf32> to vector<2x1x16xf32>
    %130 = vector.broadcast %129 : vector<2x1x16xf32> to vector<2x4x16xf32>
    %131 = arith.mulf %126, %130 : vector<2x4x16xf32>
    %cst_49 = arith.constant dense<0.000000e+00> : vector<2x4xf32>
    %132 = vector.multi_reduction <add>, %131, %cst_49 [2] : vector<2x4x16xf32> to vector<2x4xf32>
    %cst_50 = arith.constant dense<0xFF800000> : vector<2xf32>
    %133 = vector.multi_reduction <maximumf>, %132, %cst_50 [1] : vector<2x4xf32> to vector<2xf32>
    %134 = vector.shape_cast %133 : vector<2xf32> to vector<2x1xf32>
    %135 = vector.broadcast %134 : vector<2x1xf32> to vector<2x4xf32>
    %136 = arith.subf %132, %135 : vector<2x4xf32>
    %137 = math.exp %136 : vector<2x4xf32>
    %cst_51 = arith.constant dense<0.000000e+00> : vector<2xf32>
    %138 = vector.multi_reduction <add>, %137, %cst_51 [1] : vector<2x4xf32> to vector<2xf32>
    %139 = vector.shape_cast %138 : vector<2xf32> to vector<2x1xf32>
    %140 = tpu.reciprocal %139 {approx = true} : vector<2x1xf32> -> vector<2x1xf32>
    %141 = vector.broadcast %140 : vector<2x1xf32> to vector<2x4xf32>
    %142 = arith.mulf %137, %141 : vector<2x4xf32>
    %143 = vector.shape_cast %142 : vector<2x4xf32> to vector<2x4x1xf32>
    %144 = vector.shape_cast %119 : vector<8x32xf32> to vector<2x4x32xf32>
    %145 = vector.broadcast %143 : vector<2x4x1xf32> to vector<2x4x32xf32>
    %146 = arith.mulf %145, %144 : vector<2x4x32xf32>
    %cst_52 = arith.constant dense<0.000000e+00> : vector<2x32xf32>
    %147 = vector.multi_reduction <add>, %146, %cst_52 [1] : vector<2x4x32xf32> to vector<2x32xf32>
    %c0_53 = arith.constant 0 : index
    %c0_54 = arith.constant 0 : index
    %148 = vector.load %arg10[%c0_53, %c0_54] : memref<32x64xf32, #tpu.memory_space<vmem>>, vector<32x64xf32>
    %cst_55 = arith.constant dense<0.000000e+00> : vector<2x64xf32>
    %149 = tpu.matmul %147, %148, %cst_55 {dimension_numbers = #tpu.dot_dimension_numbers<[1], [0], [0], [1], [0, 0, 1, 1], [], []>} : vector<2x32xf32>, vector<32x64xf32>, vector<2x64xf32> -> vector<2x64xf32>
    %150 = math.tanh %149 : vector<2x64xf32>
    %c0_56 = arith.constant 0 : index
    %c0_57 = arith.constant 0 : index
    %151 = vector.load %arg11[%c0_56, %c0_57] : memref<64x32xf32, #tpu.memory_space<vmem>>, vector<64x32xf32>
    %cst_58 = arith.constant dense<0.000000e+00> : vector<2x32xf32>
    %152 = tpu.matmul %150, %151, %cst_58 {dimension_numbers = #tpu.dot_dimension_numbers<[1], [0], [0], [1], [0, 0, 1, 1], [], []>} : vector<2x64xf32>, vector<64x32xf32>, vector<2x32xf32> -> vector<2x32xf32>
    %c0_59 = arith.constant 0 : index
    %c0_60 = arith.constant 0 : index
    %153 = vector.load %arg12[%c0_59, %c0_60] : memref<32x32xf32, #tpu.memory_space<vmem>>, vector<32x32xf32>
    %cst_61 = arith.constant dense<0.000000e+00> : vector<2x32xf32>
    %154 = tpu.matmul %152, %153, %cst_61 {dimension_numbers = #tpu.dot_dimension_numbers<[1], [0], [0], [1], [0, 0, 1, 1], [], []>} : vector<2x32xf32>, vector<32x32xf32>, vector<2x32xf32> -> vector<2x32xf32>
    %c0_62 = arith.constant 0 : index
    %c0_63 = arith.constant 0 : index
    %155 = vector.load %arg13[%c0_62, %c0_63] : memref<32x32xf32, #tpu.memory_space<vmem>>, vector<32x32xf32>
    %cst_64 = arith.constant dense<0.000000e+00> : vector<2x32xf32>
    %156 = tpu.matmul %118, %155, %cst_64 {dimension_numbers = #tpu.dot_dimension_numbers<[1], [0], [0], [1], [0, 0, 1, 1], [], []>} : vector<2x32xf32>, vector<32x32xf32>, vector<2x32xf32> -> vector<2x32xf32>
    %157 = arith.addf %154, %156 : vector<2x32xf32>
    %c0_65 = arith.constant 0 : index
    %c0_66 = arith.constant 0 : index
    %158 = vector.load %arg14[%c0_65, %c0_66] : memref<1x32xf32, #tpu.memory_space<vmem>>, vector<1x32xf32>
    %159 = vector.broadcast %158 : vector<1x32xf32> to vector<2x32xf32>
    %160 = arith.addf %157, %159 : vector<2x32xf32>
    %161 = vector.shape_cast %160 : vector<2x32xf32> to vector<2x1x32xf32>
    %162 = vector.broadcast %161 : vector<2x1x32xf32> to vector<2x3x32xf32>
    %163 = arith.mulf %121, %162 : vector<2x3x32xf32>
    %cst_67 = arith.constant dense<0.000000e+00> : vector<2x3xf32>
    %164 = vector.multi_reduction <add>, %163, %cst_67 [2] : vector<2x3x32xf32> to vector<2x3xf32>
    %c0_68 = arith.constant 0 : index
    %c0_69 = arith.constant 0 : index
    %165 = vector.load %arg15[%c0_68, %c0_69] : memref<2x3xf32, #tpu.memory_space<vmem>>, vector<2x3xf32>
    tpu.vector_store %arg15[%c0_68, %c0_69], %164 {strides = array<i32>} : memref<2x3xf32, #tpu.memory_space<vmem>>, vector<2x3xf32>,
    return
  }
}

</mosaic_0001>

<bundles_post_ra>
// kernel: config_rec_forward.1
= control target key start
LH: loop header
LB: loop body
LE: loop exit
PB: predicated region body
PF: predicated region fallthrough
CT: control target
= control target key end

     0   :  { %vm71_vm0 = vcmask 261120   ;;  %s18296_s0 = inlined_call_operand.vmem [shape: f32[128,32], index: 0, kind: input, shape index: {}]   ;;  %s18297_s1 = inlined_call_operand.vmem [shape: f32[2,32], index: 1, kind: input, shape index: {}]   ;;  %s18298_s2 = inlined_call_operand.vmem [shape: f32[32,32], index: 2, kind: input, shape index: {}]   ;;  %s18299_s3 = inlined_call_operand.vmem [shape: f32[32,32], index: 3, kind: input, shape index: {}]   ;;  %s18300_s4 = inlined_call_operand.vmem [shape: f32[32,32], index: 4, kind: input, shape index: {}]   ;;  %s18301_s5 = inlined_call_operand.vmem [shape: f32[32,32], index: 5, kind: input, shape index: {}]   ;;  %s18302_s6 = inlined_call_operand.vmem [shape: f32[32,16], index: 6, kind: input, shape index: {}]   ;;  %s18303_s7 = inlined_call_operand.vmem [shape: f32[1,16], index: 7, kind: input, shape index: {}]   ;;  %s18304_s8 = inlined_call_operand.vmem [shape: f32[32,16], index: 8, kind: input, shape index: {}]   ;;  %s18305_s9 = inlined_call_operand.vmem [shape: f32[32,16], index: 9, kind: input, shape index: {}]   ;;  %s18306_s10 = inlined_call_operand.vmem [shape: f32[32,64], index: 10, kind: input, shape index: {}]   ;;  %s18307_s11 = inlined_call_operand.vmem [shape: f32[64,32], index: 11, kind: input, shape index: {}]   ;;  %s18308_s12 = inlined_call_operand.vmem [shape: f32[32,32], index: 12, kind: input, shape index: {}]   ;;  %s18309_s13 = inlined_call_operand.vmem [shape: f32[32,32], index: 13, kind: input, shape index: {}]   ;;  %s18310_s14 = inlined_call_operand.vmem [shape: f32[1,32], index: 14, kind: input, shape index: {}]   ;;  %s18311_s15 = inlined_call_operand.hbm [shape: f32[2,3], index: 15, kind: output, shape index: {}]  }
   0x1   :  { %v268_v0 = vld [vmem:[%s18299_s3 + $0x18] sm:$0xff]  ;;  %v267_v2 = vld [vmem:[%s18299_s3 + $0x10] sm:$0xff]  ;;  %v266_v4 = vld [vmem:[%s18299_s3 + $0x8] sm:$0xff] }
   0x2   :  { %v70_v1 = vld [vmem:[%s18298_s2 + $0x18] sm:$0xff]  ;;  %13979 = vmatprep.subr.mxu1 %v268_v0  ;;  %v69_v3 = vld [vmem:[%s18298_s2 + $0x10] sm:$0xff]  ;;  %v68_v5 = vld [vmem:[%s18298_s2 + $0x8] sm:$0xff] }
   0x3   :  { %13947 = vmatprep.subr.mxu0 %v70_v1  ;;  %13980 = vmatpush3.msra.mxu1 %v268_v0  ;;  %v265_v6 = vld [vmem:[%s18299_s3] sm:$0xff]  ;;  %v15321_v9 = vld [vmem:[%s18296_s0 + $0x8] sm:$0xff]  ;;  %v15328_v10 = vld [vmem:[%s18296_s0 + $0x10] sm:$0xff] }
   0x4   :  { %13948 = vmatpush3.msra.mxu0 %v70_v1  ;;  %13981 = vmatprep.subr.mxu1 %v267_v2  ;;  %v67_v7 = vld [vmem:[%s18298_s2] sm:$0xff]  ;;  %v417_v11 = vld [vmem:[%s18300_s4 + $0x18] sm:$0xff] }
   0x5   :  { %13949 = vmatprep.subr.mxu0 %v69_v3  ;;  %13982 = vmatpush3.msra.mxu1 %v267_v2  ;;  %v15316_v8 = vld [vmem:[%s18296_s0] sm:$0xff] }
   0x6   :  { %13950 = vmatpush3.msra.mxu0 %v69_v3  ;;  %13983 = vmatprep.subr.mxu1 %v266_v4 }
   0x7   :  { %13951 = vmatprep.subr.mxu0 %v68_v5  ;;  %13984 = vmatpush3.msra.mxu1 %v266_v4 }
   0x8   :  { %13952 = vmatpush3.msra.mxu0 %v68_v5  ;;  %13985 = vmatprep.subr.mxu1 %v265_v6 }
   0x9   :  { %13953 = vmatprep.subr.mxu0 %v67_v7  ;;  %13986 = vmatpush3.msra.mxu1 %v265_v6 }
   0xa   :  { %13987 = vmatprep.mubr.msk.f32.mxu1 %vm71_vm0, %v15316_v8  ;;  %13954 = vmatpush3.msra.mxu0 %v67_v7 }
   0xb   :  { %13955 = vmatprep.mubr.msk.f32.mxu0 %vm71_vm0, %v15316_v8 }
   0xc   :  { %20 = vsyncpa [#allocation3], 0  ;;  %13988 = vmatmul.mubr.msk.f32.vlgmr.msra.gmra.mxu1 %vm71_vm0, %v15321_v9  ;;  %13956 = vmatmul.mubr.msk.f32.vlgmr.msra.gmra.mxu0 %vm71_vm0, %v15321_v9  ;;  %v15344_v12 = vld [vmem:[%s18296_s0 + $0x18] sm:$0xff]  ;;  %v15351_v13 = vld [vmem:[%s18296_s0 + $0x20] sm:$0xff]  ;;  %v18312_v28 = vmov 0.0   ;;  %vm15199_vm1 = vmmov 0  }
   0xd   :  { %13990 = vmatprep.mubr.msk.f32.mxu1 %vm71_vm0, %v15328_v10  ;;  %13958 = vmatprep.mubr.msk.f32.mxu0 %vm71_vm0, %v15328_v10  ;;  %v416_v14 = vld [vmem:[%s18300_s4 + $0x10] sm:$0xff]  ;;  %v56_v15 = vld [vmem:[%s18296_s0 + $0x28] sm:$0xff]  ;;  %v58_v18 = vld [vmem:[%s18296_s0 + $0x38] sm:$0xff]  ;;  %vm563_vm2 = vcmask 64512   ;;  %s15201_s3 = smov 112   ;;  %s15202_s23 = smov 104  }
   0xe   :  { %14821 = vmatprep.subr.mxu1 %v417_v11  ;;  %14011 = vmatprep.subr.mxu0 %v417_v11  ;;  %v57_v16 = vld [vmem:[%s18296_s0 + $0x30] sm:$0xff]  ;;  %v415_v17 = vld [vmem:[%s18300_s4 + $0x8] sm:$0xff]  ;;  %v59_v19 = vld [vmem:[%s18296_s0 + $0x40] sm:$0xff]  ;;  %s15203_s24 = smov 8   ;;  %s15204_s25 = smov 16   ;;  %vm11332_vm3 = vcmask 130048  }
   0xf   :  { %14825 = vmatpush3.msra.mxu1 %v417_v11  ;;  %14012 = vmatpush3.msra.mxu0 %v417_v11  ;;  %v414_v20 = vld [vmem:[%s18300_s4] sm:$0xff]  ;;  %v60_v21 = vld [vmem:[%s18296_s0 + $0x48] sm:$0xff]  ;;  %v61_v22 = vld [vmem:[%s18296_s0 + $0x50] sm:$0xff]  ;;  %s15205_s26 = smov 24   ;;  %vm11349_vm4 = vcmask 195584   ;;  %vm11929_vm5 = vcmask 1041409  }
  0x10   :  { %13991 = vmatmul.mubr.msk.f32.gmra.mxu1 %vm71_vm0, %v15344_v12  ;;  %13959 = vmatmul.mubr.msk.f32.gmra.mxu0 %vm71_vm0, %v15344_v12  ;;  %v62_v23 = vld [vmem:[%s18296_s0 + $0x58] sm:$0xff]  ;;  %v63_v24 = vld [vmem:[%s18296_s0 + $0x60] sm:$0xff]  ;;  %v64_v25 = vld [vmem:[%s18296_s0 + $0x68] sm:$0xff]  ;;  %vm11931_vm6 = vcmask 1042434   ;;  %vm11933_vm7 = vcmask 1043459   ;;  %vm11935_vm8 = vcmask 1044484  }
  0x11   :  { %13993 = vmatprep.mubr.msk.f32.mxu1 %vm71_vm0, %v15351_v13  ;;  %13961 = vmatprep.mubr.msk.f32.mxu0 %vm71_vm0, %v15351_v13  ;;  %v65_v26 = vld [vmem:[%s18296_s0 + $0x70] sm:$0xff]  ;;  %v66_v27 = vld [vmem:[%s18296_s0 + $0x78] sm:$0xff]  ;;  %s15200_s0 = smov 120   ;;  %vm11937_vm9 = vcmask 1045509   ;;  %vm11939_vm10 = vcmask 1046534   ;;  %vm11941_vm11 = vcmask 1047559  }
  0x12   :  { %14822 = vmatprep.subr.mxu1 %v416_v14  ;;  %14013 = vmatprep.subr.mxu0 %v416_v14  ;;  %vm12754_vm12 = vcmask 125952   ;;  %vm12773_vm13 = vcmask 25600   ;;  %vm12846_vm14 = vcmask 257024   ;;  %vm12949_vm15 = vcmask 523264  }
  0x13   :  { %14826 = vmatpush3.msra.mxu1 %v416_v14  ;;  %14014 = vmatpush3.msra.mxu0 %v416_v14 }
  0x14   :  { %13994 = vmatmul.mubr.msk.f32.gmra.mxu1 %vm71_vm0, %v56_v15  ;;  %13962 = vmatmul.mubr.msk.f32.gmra.mxu0 %vm71_vm0, %v56_v15 }
  0x15   :  { %13996 = vmatprep.mubr.msk.f32.mxu1 %vm71_vm0, %v57_v16  ;;  %13964 = vmatprep.mubr.msk.f32.mxu0 %vm71_vm0, %v57_v16 }
  0x16   :  { %14823 = vmatprep.subr.mxu1 %v415_v17  ;;  %14015 = vmatprep.subr.mxu0 %v415_v17 }
  0x17   :  { %14827 = vmatpush3.msra.mxu1 %v415_v17  ;;  %14016 = vmatpush3.msra.mxu0 %v415_v17 }
  0x18   :  { %13997 = vmatmul.mubr.msk.f32.gmra.mxu1 %vm71_vm0, %v58_v18  ;;  %13965 = vmatmul.mubr.msk.f32.gmra.mxu0 %vm71_vm0, %v58_v18 }
  0x19   :  { %13999 = vmatprep.mubr.msk.f32.mxu1 %vm71_vm0, %v59_v19  ;;  %13967 = vmatprep.mubr.msk.f32.mxu0 %vm71_vm0, %v59_v19 }
  0x1a   :  { %14824 = vmatprep.subr.mxu1 %v414_v20  ;;  %14017 = vmatprep.subr.mxu0 %v414_v20 }
  0x1b   :  { %14828 = vmatpush3.msra.mxu1 %v414_v20  ;;  %14018 = vmatpush3.msra.mxu0 %v414_v20 }
  0x1c   :  { %14000 = vmatmul.mubr.msk.f32.gmra.mxu1 %vm71_vm0, %v60_v21  ;;  %13968 = vmatmul.mubr.msk.f32.gmra.mxu0 %vm71_vm0, %v60_v21 }
  0x1d   :  { %14002 = vmatprep.mubr.msk.f32.mxu1 %vm71_vm0, %v61_v22  ;;  %13970 = vmatprep.mubr.msk.f32.mxu0 %vm71_vm0, %v61_v22 }
  0x1e   :  { %14043 = vmatprep.subr.mxu1 %v18312_v28  ;;  %14083 = vmatprep.subr.mxu0 %v18312_v28 }
  0x20   :  { %14003 = vmatmul.mubr.msk.f32.gmra.mxu1 %vm71_vm0, %v62_v23  ;;  %13971 = vmatmul.mubr.msk.f32.gmra.mxu0 %vm71_vm0, %v62_v23 }
  0x21   :  { %14005 = vmatprep.mubr.msk.f32.mxu1 %vm71_vm0, %v63_v24  ;;  %13973 = vmatprep.mubr.msk.f32.mxu0 %vm71_vm0, %v63_v24 }
  0x24   :  { %14006 = vmatmul.mubr.msk.f32.gmra.mxu1 %vm71_vm0, %v64_v25  ;;  %13974 = vmatmul.mubr.msk.f32.gmra.mxu0 %vm71_vm0, %v64_v25 }
  0x25   :  { %14008 = vmatprep.mubr.msk.f32.mxu1 %vm71_vm0, %v65_v26  ;;  %13976 = vmatprep.mubr.msk.f32.mxu0 %vm71_vm0, %v65_v26 }
  0x28   :  { %14009 = vmatmul.mubr.msk.f32.gmra.mxu1 %vm71_vm0, %v66_v27  ;;  %13977 = vmatmul.mubr.msk.f32.gmra.mxu0 %vm71_vm0, %v66_v27 }
  0x29   :  { %14019 = vmatprep.mubr.msk.f32.mxu0 %vm71_vm0, %v15316_v8  ;;  %14040 = vmatprep.mubr.msk.f32.mxu1 %vm71_vm0, %v65_v26 }
  0x2c   :  { %14020 = vmatmul.mubr.msk.f32.vlgmr.msra.gmra.mxu0 %vm71_vm0, %v15321_v9  ;;  %14041 = vmatmul.mubr.msk.f32.vlgmr.msra.gmra.mxu1 %vm71_vm0, %v66_v27 }
  0x2d   :  { %14022 = vmatprep.mubr.msk.f32.mxu0 %vm71_vm0, %v15328_v10  ;;  %14045 = vmatprep.mubr.msk.f32.mxu1 %vm15199_vm1, %v18312_v28 }
  0x30   :  { %14023 = vmatmul.mubr.msk.f32.gmra.mxu0 %vm71_vm0, %v15344_v12 }
  0x31   :  { %14025 = vmatprep.mubr.msk.f32.mxu0 %vm71_vm0, %v15351_v13 }
  0x34   :  { %14026 = vmatmul.mubr.msk.f32.gmra.mxu0 %vm71_vm0, %v56_v15 }
  0x35   :  { %14028 = vmatprep.mubr.msk.f32.mxu0 %vm71_vm0, %v57_v16 }
  0x38   :  { %14029 = vmatmul.mubr.msk.f32.gmra.mxu0 %vm71_vm0, %v58_v18 }
  0x39   :  { %14031 = vmatprep.mubr.msk.f32.mxu0 %vm71_vm0, %v59_v19 }
  0x3c   :  { %14032 = vmatmul.mubr.msk.f32.gmra.mxu0 %vm71_vm0, %v60_v21 }
  0x3d   :  { %14034 = vmatprep.mubr.msk.f32.mxu0 %vm71_vm0, %v61_v22 }
  0x40   :  { %14035 = vmatmul.mubr.msk.f32.gmra.mxu0 %vm71_vm0, %v62_v23 }
  0x41   :  { %14037 = vmatprep.mubr.msk.f32.mxu0 %vm71_vm0, %v63_v24 }
  0x44   :  { %14038 = vmatmul.mubr.msk.f32.gmra.mxu0 %vm71_vm0, %v64_v25 }
  0x45   :  { %14085 = vmatprep.mubr.msk.f32.mxu0 %vm15199_vm1, %v18312_v28 }
  0xcc   :  { %v15452_v29 = vpop.f32.mrf.mxu1  ;;  %v15454_v30 = vpop.f32.mrf.mxu0 }
  0xcd   :  { %18359 = vst [vmem:[#allocation5_spill] sm:$0xff] %v15452_v29  ;;  %18360 = vst [vmem:[#allocation6_spill] sm:$0xff] %v15454_v30  ;;  %3220 = vrot.lane.b32.xlu1 %v15452_v29, %s15200_s0 }
  0xce   :  { %v15458_v31 = vpop.f32.mrf.mxu1  ;;  %v15460_v32 = vpop.f32.mrf.mxu0 }
  0xcf   :  { %18361 = vst [vmem:[#allocation7_spill] sm:$0xff] %v15458_v31  ;;  %18362 = vst [vmem:[#allocation8_spill] sm:$0xff] %v15460_v32  ;;  %3142 = vrot.lane.b32.xlu0 %v15458_v31, %s15200_s0  ;;  %14044 = vmatpush3.xpose.msk.msra.mxu1 %vm563_vm2, %v15458_v31 }
  0xd0   :  { %v15466_v33 = vpop.f32.mrf.mxu1  ;;  %14048 = vmatprep.subr.mxu1 %v18312_v28  ;;  %v15469_v34 = vpop.f32.mrf.mxu0 }
  0xd1   :  { %18363 = vst [vmem:[#allocation9_spill] sm:$0xff] %v15466_v33  ;;  %18364 = vst [vmem:[#allocation10_spill] sm:$0xff] %v15469_v34  ;;  %3218 = vrot.lane.b32.xlu1 %v15454_v30, %s15200_s0 }
  0xd2   :  { %14046 = vmatmul.mubr.msk.f32.vlgmr.msra.gmra.mxu1 %vm563_vm2, %v15460_v32  ;;  %v15475_v35 = vpop.f32.mrf.mxu1  ;;  %v15477_v36 = vpop.f32.mrf.mxu0 }
  0xd3   :  { %18365 = vst [vmem:[#allocation11_spill] sm:$0xff] %v15475_v35  ;;  %18366 = vst [vmem:[#allocation12_spill] sm:$0xff] %v15477_v36  ;;  %14049 = vmatpush3.xpose.msk.msra.mxu1 %vm563_vm2, %v15452_v29  ;;  %3298 = vrot.lane.b32.xlu0 %v15475_v35, %s15200_s0 }
  0xd4   :  { %14050 = vmatprep.mubr.msk.f32.mxu1 %vm15199_vm1, %v18312_v28  ;;  %14053 = vmatprep.subr.mxu1 %v18312_v28  ;;  %v15486_v37 = vpop.f32.mrf.mxu1  ;;  %v15488_v38 = vpop.f32.mrf.mxu0 }
  0xd5   :  { %18367 = vst [vmem:[#allocation13_spill] sm:$0xff] %v15486_v37  ;;  %18368 = vst [vmem:[#allocation14_spill] sm:$0xff] %v15488_v38  ;;  %3140 = vrot.lane.b32.xlu1 %v15460_v32, %s15200_s0 }
  0xd6   :  { %14051 = vmatmul.mubr.msk.f32.vlgmr.msra.gmra.mxu1 %vm563_vm2, %v15454_v30  ;;  %v15494_v39 = vpop.f32.mrf.mxu1  ;;  %v15496_v40 = vpop.f32.mrf.mxu0 }
  0xd7   :  { %18369 = vst [vmem:[#allocation15_spill] sm:$0xff] %v15494_v39  ;;  %18370 = vst [vmem:[#allocation16_spill] sm:$0xff] %v15496_v40  ;;  %14054 = vmatpush3.xpose.msk.msra.mxu1 %vm563_vm2, %v15475_v35  ;;  %3296 = vrot.lane.b32.xlu0 %v15477_v36, %s15200_s0 }
  0xd8   :  { %14055 = vmatprep.mubr.msk.f32.mxu1 %vm15199_vm1, %v18312_v28  ;;  %14058 = vmatprep.subr.mxu1 %v18312_v28  ;;  %v15505_v41 = vpop.f32.mrf.mxu1  ;;  %v15507_v42 = vpop.f32.mrf.mxu0 }
  0xd9   :  { %3376 = vrot.lane.b32.xlu1 %v15466_v33, %s15200_s0 }
  0xda   :  { %14056 = vmatmul.mubr.msk.f32.vlgmr.msra.gmra.mxu1 %vm563_vm2, %v15477_v36  ;;  %v15513_v43 = vpop.f32.mrf.mxu1  ;;  %v15515_v44 = vpop.f32.mrf.mxu0 }
  0xdb   :  { %14059 = vmatpush3.xpose.msk.msra.mxu1 %vm563_vm2, %v15466_v33  ;;  %3454 = vrot.lane.b32.xlu0 %v15494_v39, %s15200_s0 }
  0xdc   :  { %14060 = vmatprep.mubr.msk.f32.mxu1 %vm15199_vm1, %v18312_v28  ;;  %14063 = vmatprep.subr.mxu1 %v18312_v28  ;;  %v15524_v45 = vpop.f32.mrf.mxu1  ;;  %v15526_v46 = vpop.f32.mrf.mxu0 }
  0xdd   :  { %3374 = vrot.lane.b32.xlu1 %v15469_v34, %s15200_s0 }
  0xde   :  { %14061 = vmatmul.mubr.msk.f32.vlgmr.msra.gmra.mxu1 %vm563_vm2, %v15469_v34  ;;  %v15532_v47 = vpop.f32.mrf.mxu1  ;;  %v15534_v48 = vpop.f32.mrf.mxu0 }
  0xdf   :  { %14064 = vmatpush3.xpose.msk.msra.mxu1 %vm563_vm2, %v15494_v39  ;;  %14065 = vmatprep.mubr.msk.f32.mxu1 %vm15199_vm1, %v18312_v28 }
  0xe0   :  { %14068 = vmatprep.subr.mxu1 %v18312_v28  ;;  %14084 = vmatpush3.xpose.msk.msra.mxu0 %vm563_vm2, %v15532_v47  ;;  %v15543_v49 = vpop.f32.mrf.mxu1  ;;  %v15545_v50 = vpop.f32.mrf.mxu0 }
  0xe1   :  { %3532 = vrot.lane.b32.xlu1 %v15486_v37, %s15200_s0  ;;  %14093 = vmatprep.subr.mxu0 %v18312_v28 }
  0xe2   :  { %14066 = vmatmul.mubr.msk.f32.vlgmr.msra.gmra.mxu1 %vm563_vm2, %v15496_v40  ;;  %v15552_v51 = vpop.f32.mrf.mxu1  ;;  %v15554_v52 = vpop.f32.mrf.mxu0 }
  0xe3   :  { %14069 = vmatpush3.xpose.msk.msra.mxu1 %vm563_vm2, %v15486_v37  ;;  %14070 = vmatprep.mubr.msk.f32.mxu1 %vm15199_vm1, %v18312_v28 }
  0xe4   :  { %14073 = vmatprep.subr.mxu1 %v18312_v28  ;;  %14086 = vmatmul.mubr.msk.f32.vlgmr.msra.gmra.mxu0 %vm563_vm2, %v15534_v48  ;;  %v15563_v53 = vpop.f32.mrf.mxu1  ;;  %v15565_v54 = vpop.f32.mrf.mxu0 }
  0xe5   :  { %14094 = vmatpush3.xpose.msk.msra.mxu0 %vm563_vm2, %v15552_v51  ;;  %14095 = vmatprep.mubr.msk.f32.mxu0 %vm15199_vm1, %v18312_v28 }
  0xe6   :  { %14071 = vmatmul.mubr.msk.f32.vlgmr.msra.gmra.mxu1 %vm563_vm2, %v15488_v38  ;;  %v15573_v55 = vpop.f32.mrf.mxu1  ;;  %14103 = vmatprep.subr.mxu0 %v18312_v28  ;;  %v15576_v56 = vpop.f32.mrf.mxu0 }
  0xe7   :  { %14074 = vmatpush3.xpose.msk.msra.mxu1 %vm563_vm2, %v15513_v43  ;;  %14075 = vmatprep.mubr.msk.f32.mxu1 %vm15199_vm1, %v18312_v28 }
  0xe8   :  { %14078 = vmatprep.subr.mxu1 %v18312_v28  ;;  %14096 = vmatmul.mubr.msk.f32.vlgmr.msra.gmra.mxu0 %vm563_vm2, %v15554_v52  ;;  %v15585_v57 = vpop.f32.mrf.mxu1  ;;  %v15587_v58 = vpop.f32.mrf.mxu0 }
  0xe9   :  { %14104 = vmatpush3.xpose.msk.msra.mxu0 %vm563_vm2, %v15573_v55  ;;  %14105 = vmatprep.mubr.msk.f32.mxu0 %vm15199_vm1, %v18312_v28 }
  0xea   :  { %14076 = vmatmul.mubr.msk.f32.vlgmr.msra.gmra.mxu1 %vm563_vm2, %v15515_v44  ;;  %v15595_v59 = vpop.f32.mrf.mxu1  ;;  %14113 = vmatprep.subr.mxu0 %v18312_v28  ;;  %v15598_v60 = vpop.f32.mrf.mxu0 }
  0xeb   :  { %14079 = vmatpush3.xpose.msk.msra.mxu1 %vm563_vm2, %v15505_v41  ;;  %14080 = vmatprep.mubr.msk.f32.mxu1 %vm15199_vm1, %v18312_v28 }
  0xec   :  { %14106 = vmatmul.mubr.msk.f32.vlgmr.msra.gmra.mxu0 %vm563_vm2, %v15576_v56  ;;  %14088 = vmatprep.subr.mxu1 %v18312_v28  ;;  %v15607_v61 = vpop.f32.mrf.mxu0  ;;  %v15668_v5 = vpop.f32.mrf.mxu1 }
  0xed   :  { %18371 = vst [vmem:[#allocation17_spill] sm:$0xff] %v15607_v61  ;;  %14114 = vmatpush3.xpose.msk.msra.mxu0 %vm563_vm2, %v15595_v59  ;;  %14115 = vmatprep.mubr.msk.f32.mxu0 %vm15199_vm1, %v18312_v28  ;;  %18379 = vst [vmem:[#allocation25_spill] sm:$0xff] %v15668_v5 }
  0xee   :  { %14081 = vmatmul.mubr.msk.f32.vlgmr.msra.gmra.mxu1 %vm563_vm2, %v15507_v42  ;;  %14123 = vmatprep.subr.mxu0 %v18312_v28  ;;  %v15623_v62 = vpop.f32.mrf.mxu0  ;;  %v15672_v7 = vpop.f32.mrf.mxu1 }
  0xef   :  { %14089 = vmatpush3.xpose.msk.msra.mxu1 %vm563_vm2, %v15524_v45  ;;  %14090 = vmatprep.mubr.msk.f32.mxu1 %vm15199_vm1, %v18312_v28  ;;  %18372 = vst [vmem:[#allocation18_spill] sm:$0xff] %v15623_v62  ;;  %18381 = vst [vmem:[#allocation27_spill] sm:$0xff] %v15672_v7 }
  0xf0   :  { %14116 = vmatmul.mubr.msk.f32.vlgmr.msra.gmra.mxu0 %vm563_vm2, %v15598_v60  ;;  %14098 = vmatprep.subr.mxu1 %v18312_v28  ;;  %v15656_v63 = vpop.f32.mrf.mxu0 }
  0xf1   :  { %14124 = vmatpush3.msra.mxu0 %v15623_v62  ;;  %14125 = vmatprep.mubr.msk.f32.mxu0 %vm15199_vm1, %v18312_v28  ;;  %18373 = vst [vmem:[#allocation19_spill] sm:$0xff] %v15656_v63 }
  0xf2   :  { %14091 = vmatmul.mubr.msk.f32.vlgmr.msra.gmra.mxu1 %vm563_vm2, %v15526_v46  ;;  %14133 = vmatprep.subr.mxu0 %v18312_v28  ;;  %v15658_v0 = vpop.f32.mrf.mxu0 }
  0xf3   :  { %14099 = vmatpush3.xpose.msk.msra.mxu1 %vm563_vm2, %v15543_v49  ;;  %14100 = vmatprep.mubr.msk.f32.mxu1 %vm15199_vm1, %v18312_v28  ;;  %18374 = vst [vmem:[#allocation20_spill] sm:$0xff] %v15658_v0 }
  0xf4   :  { %14108 = vmatprep.subr.mxu1 %v18312_v28  ;;  %v15660_v1 = vpop.f32.mrf.mxu0 }
  0xf5   :  { %18375 = vst [vmem:[#allocation21_spill] sm:$0xff] %v15660_v1 }
  0xf6   :  { %14101 = vmatmul.mubr.msk.f32.vlgmr.msra.gmra.mxu1 %vm563_vm2, %v15545_v50  ;;  %v15662_v2 = vpop.f32.mrf.mxu0 }
  0xf7   :  { %14109 = vmatpush3.xpose.msk.msra.mxu1 %vm563_vm2, %v15563_v53  ;;  %14110 = vmatprep.mubr.msk.f32.mxu1 %vm15199_vm1, %v18312_v28  ;;  %18376 = vst [vmem:[#allocation22_spill] sm:$0xff] %v15662_v2 }
  0xf8   :  { %14118 = vmatprep.subr.mxu1 %v18312_v28  ;;  %v15664_v3 = vpop.f32.mrf.mxu0 }
  0xf9   :  { %18377 = vst [vmem:[#allocation23_spill] sm:$0xff] %v15664_v3 }
  0xfa   :  { %14111 = vmatmul.mubr.msk.f32.vlgmr.msra.gmra.mxu1 %vm563_vm2, %v15565_v54  ;;  %v15666_v4 = vpop.f32.mrf.mxu0 }
  0xfb   :  { %14119 = vmatpush3.xpose.msk.msra.mxu1 %vm563_vm2, %v15585_v57  ;;  %14120 = vmatprep.mubr.msk.f32.mxu1 %vm15199_vm1, %v18312_v28  ;;  %18378 = vst [vmem:[#allocation24_spill] sm:$0xff] %v15666_v4 }
  0xfc   :  { %14128 = vmatprep.subr.mxu1 %v18312_v28  ;;  %v15670_v6 = vpop.f32.mrf.mxu0 }
  0xfd   :  { %18380 = vst [vmem:[#allocation26_spill] sm:$0xff] %v15670_v6 }
  0xfe   :  { %14121 = vmatmul.mubr.msk.f32.vlgmr.msra.gmra.mxu1 %vm563_vm2, %v15587_v58  ;;  %v15674_v8 = vpop.f32.mrf.mxu0 }
  0xff   :  { %14129 = vmatpush3.msra.mxu1 %v15607_v61  ;;  %14130 = vmatprep.mubr.msk.f32.mxu1 %vm15199_vm1, %v18312_v28  ;;  %18382 = vst [vmem:[#allocation28_spill] sm:$0xff] %v15674_v8 }
 0x100   :  { %14138 = vmatprep.subr.mxu1 %v18312_v28  ;;  %v15678_v12 = vpop.f32.mrf.mxu0 }
 0x101   :  { %18383 = vst [vmem:[#allocation29_spill] sm:$0xff] %v15678_v12 }
 0x102   :  { %v15684_v17 = vpop.f32.mrf.mxu0 }
 0x103   :  { %18384 = vst [vmem:[#allocation30_spill] sm:$0xff] %v15684_v17 }
 0x104   :  { %v15690_v22 = vpop.f32.mrf.mxu0 }
 0x105   :  { %18385 = vst [vmem:[#allocation31_spill] sm:$0xff] %v15690_v22 }
 0x106   :  { %v15696_v27 = vpop.f32.mrf.mxu0 }
 0x107   :  { %18386 = vst [vmem:[#allocation32_spill] sm:$0xff] %v15696_v27 }
 0x192   :  { %v636_v9 = vpop.f32.mrf.mxu1 }
 0x193   :  { %v15676_v10 = vmul.f32 0.35355338, %v636_v9 }
 0x194   :  { %v14047_v11 = vpop.f32.mrf.mxu1 }
 0x195   :  { %v1796_v13 = vsel %vm563_vm2, %v15676_v10, -inf }
 0x196   :  { %v712_v14 = vpop.f32.mrf.mxu1  ;;  %1797 = vmax.xlane.f32.xlu0 %v1796_v13 }
 0x197   :  { %v15682_v15 = vmul.f32 0.35355338, %v712_v14 }
 0x198   :  { %v14052_v16 = vpop.f32.mrf.mxu1 }
 0x199   :  { %v1799_v18 = vsel %vm563_vm2, %v15682_v15, -inf }
 0x19a   :  { %1800 = vmax.xlane.f32.xlu0 %v1799_v18  ;;  %v788_v19 = vpop.f32.mrf.mxu1 }
 0x19b   :  { %v15688_v20 = vmul.f32 0.35355338, %v788_v19 }
 0x19c   :  { %v14057_v21 = vpop.f32.mrf.mxu1 }
 0x19d   :  { %v1802_v23 = vsel %vm563_vm2, %v15688_v20, -inf }
 0x19e   :  { %1803 = vmax.xlane.f32.xlu1 %v1802_v23  ;;  %v864_v24 = vpop.f32.mrf.mxu1 }
 0x19f   :  { %v15694_v25 = vmul.f32 0.35355338, %v864_v24 }
 0x1a0   :  { %v14062_v26 = vpop.f32.mrf.mxu1 }
 0x1a1   :  { %v1805_v9 = vsel %vm563_vm2, %v15694_v25, -inf }
 0x1a2   :  { %1806 = vmax.xlane.f32.xlu1 %v1805_v9  ;;  %v940_v11 = vpop.f32.mrf.mxu1 }
 0x1a3   :  { %v15700_v13 = vmul.f32 0.35355338, %v940_v11 }
 0x1a4   :  { %v14067_v14 = vpop.f32.mrf.mxu1  ;;  %v1244_v16 = vpop.f32.mrf.mxu0 }
 0x1a5   :  { %v1808_v18 = vsel %vm563_vm2, %v15700_v13, -inf  ;;  %v15704_v19 = vmul.f32 0.35355338, %v1244_v16 }
 0x1a6   :  { %1809 = vmax.xlane.f32.xlu0 %v1808_v18  ;;  %v1016_v21 = vpop.f32.mrf.mxu1  ;;  %v14087_v23 = vpop.f32.mrf.mxu0 }
 0x1a7   :  { %v15706_v24 = vmul.f32 0.35355338, %v1016_v21  ;;  %v1820_v26 = vsel %vm563_vm2, %v15704_v19, -inf }
 0x1a8   :  { %v14072_v28 = vpop.f32.mrf.mxu1  ;;  %v1396_v9 = vpop.f32.mrf.mxu0 }
 0x1a9   :  { %v1811_v11 = vsel %vm563_vm2, %v15706_v24, -inf  ;;  %v15712_v14 = vmul.f32 0.35355338, %v1396_v9 }
 0x1aa   :  { %1812 = vmax.xlane.f32.xlu1 %v1811_v11  ;;  %v1092_v39 = vpop.f32.mrf.mxu1  ;;  %1821 = vmax.xlane.f32.xlu0 %v1820_v26  ;;  %v14097_v16 = vpop.f32.mrf.mxu0 }
 0x1ab   :  { %v15714_v36 = vmul.f32 0.35355338, %v1092_v39  ;;  %v1826_v18 = vsel %vm563_vm2, %v15712_v14, -inf }
 0x1ac   :  { %v14077_v21 = vpop.f32.mrf.mxu1  ;;  %v1548_v23 = vpop.f32.mrf.mxu0 }
 0x1ad   :  { %v1814_v9 = vsel %vm563_vm2, %v15714_v36, -inf  ;;  %v15722_v35 = vmul.f32 0.35355338, %v1548_v23 }
 0x1ae   :  { %v1168_v37 = vpop.f32.mrf.mxu1  ;;  %1827 = vmax.xlane.f32.xlu0 %v1826_v18  ;;  %v14107_v28 = vpop.f32.mrf.mxu0 }
 0x1af   :  { %v15718_v34 = vmul.f32 0.35355338, %v1168_v37  ;;  %v1832_v18 = vsel %vm563_vm2, %v15722_v35, -inf }
 0x1b0   :  { %v1700_v11 = vpop.f32.mrf.mxu0  ;;  %v14082_v26 = vpop.f32.mrf.mxu1 }
 0x1b1   :  { %v1817_v39 = vsel %vm563_vm2, %v15718_v34, -inf  ;;  %v15728_v28 = vmul.f32 0.35355338, %v1700_v11 }
 0x1b2   :  { %1818 = vmax.xlane.f32.xlu1 %v1817_v39  ;;  %1815 = vmax.xlane.f32.xlu0 %v1814_v9  ;;  %v1320_v16 = vpop.f32.mrf.mxu1  ;;  %v14117_v21 = vpop.f32.mrf.mxu0 }
 0x1b3   :  { %v1838_v23 = vsel %vm563_vm2, %v15728_v28, -inf  ;;  %v15736_v9 = vmul.f32 0.35355338, %v1320_v16  ;;  %v15752_v16 = vpop.permute.xlu1 %3220 }
 0x1b4   :  { %v14092_v37 = vpop.f32.mrf.mxu1  ;;  %18387 = vst [vmem:[#allocation33_spill] sm:$0xff] %v15752_v16 }
 0x1b5   :  { %v1823_v21 = vsel %vm563_vm2, %v15736_v9, -inf }
 0x1b6   :  { %1833 = vmax.xlane.f32.xlu0 %v1832_v18  ;;  %v1472_v32 = vpop.f32.mrf.mxu1 }
 0x1b7   :  { %v15738_v11 = vmul.f32 0.35355338, %v1472_v32 }
 0x1b8   :  { %v14102_v33 = vpop.f32.mrf.mxu1 }
 0x1ba   :  { %1839 = vmax.xlane.f32.xlu0 %v1838_v23  ;;  %v1624_v26 = vpop.f32.mrf.mxu1  ;;  %v15754_v23 = vpop.permute.xlu0 %3142 }
 0x1bb   :  { %v15742_v33 = vmul.f32 0.35355338, %v1624_v26  ;;  %18388 = vst [vmem:[#allocation34_spill] sm:$0xff] %v15754_v23  ;;  %v15756_v26 = vpop.permute.xlu1 %3218 }
 0x1bc   :  { %v14112_v31 = vpop.f32.mrf.mxu1  ;;  %18389 = vst [vmem:[#allocation35_spill] sm:$0xff] %v15756_v26 }
 0x1bd   :  { %v1829_v31 = vsel %vm563_vm2, %v15738_v11, -inf  ;;  %v1835_v18 = vsel %vm563_vm2, %v15742_v33, -inf }
 0x1be   :  { %v1776_v30 = vpop.f32.mrf.mxu1 }
 0x1bf   :  { %v15748_v37 = vmul.f32 0.35355338, %v1776_v30 }
 0x1c0   :  { %v14122_v39 = vpop.f32.mrf.mxu1 }
 0x1c1   :  { %v1841_v32 = vsel %vm563_vm2, %v15748_v37, -inf  ;;  %v15758_v39 = vpop.permute.xlu0 %3298 }
 0x1c2   :  { %18390 = vst [vmem:[#allocation36_spill] sm:$0xff] %v15758_v39 }
 0x1c3   :  { %3530 = vrot.lane.b32.xlu1 %v15488_v38, %s15200_s0 }
 0x1d0   :  { %3452 = vrot.lane.b32.xlu0 %v15496_v40, %s15200_s0 }
 0x1e7   :  { %1824 = vmax.xlane.f32.xlu1 %v1823_v21  ;;  %v15760_v21 = vpop.permute.xlu1 %3140 }
 0x1e8   :  { %18391 = vst [vmem:[#allocation37_spill] sm:$0xff] %v15760_v21 }
 0x1eb   :  { %1830 = vmax.xlane.f32.xlu1 %v1829_v31  ;;  %v15762_v31 = vpop.permute.xlu0 %3296  ;;  %v15764_v40 = vpop.permute.xlu1 %3376 }
 0x1ec   :  { %18392 = vst [vmem:[#allocation38_spill] sm:$0xff] %v15762_v31  ;;  %18393 = vst [vmem:[#allocation39_spill] sm:$0xff] %v15764_v40 }
 0x1ef   :  { %1836 = vmax.xlane.f32.xlu1 %v1835_v18  ;;  %v15766_v30 = vpop.permute.xlu0 %3454  ;;  %v15768_v18 = vpop.permute.xlu1 %3374 }
 0x1f0   :  { %18394 = vst [vmem:[#allocation40_spill] sm:$0xff] %v15766_v30  ;;  %18395 = vst [vmem:[#allocation41_spill] sm:$0xff] %v15768_v18 }
 0x1f3   :  { %1842 = vmax.xlane.f32.xlu1 %v1841_v32  ;;  %v15771_v5 = vpop.permute.xlu1 %3532 }
 0x21f   :  { %v1798_v38 = vpop.xlane.xlu0 %1797 }
 0x220   :  { %v1844_v32 = vsub.f32 %v15676_v10, %v1798_v38 }
 0x222   :  { %v1860_v16 = vmul.f32 1.442695, %v1844_v32 }
 0x223   :  { %v1801_v23 = vpop.xlane.xlu0 %1800 }
 0x224   :  { %14842 = vpow2.f32 %v1860_v16  ;;  %v1845_v26 = vsub.f32 %v15682_v15, %v1801_v23 }
 0x226   :  { %v1862_v39 = vmul.f32 1.442695, %v1845_v26 }
 0x227   :  { %v1804_v21 = vpop.xlane.xlu1 %1803 }
 0x228   :  { %14844 = vpow2.f32 %v1862_v39  ;;  %v1846_v31 = vsub.f32 %v15688_v20, %v1804_v21 }
 0x22a   :  { %v1864_v40 = vmul.f32 1.442695, %v1846_v31 }
 0x22b   :  { %v1807_v29 = vpop.xlane.xlu1 %1806 }
 0x22c   :  { %14846 = vpow2.f32 %v1864_v40  ;;  %v1847_v18 = vsub.f32 %v15694_v25, %v1807_v29 }
 0x22e   :  { %v1866_v30 = vmul.f32 1.442695, %v1847_v18 }
 0x22f   :  { %v1810_v7 = vpop.xlane.xlu0 %1809 }
 0x230   :  { %14848 = vpow2.f32 %v1866_v30  ;;  %v1848_v38 = vsub.f32 %v15700_v13, %v1810_v7 }
 0x231   :  { %v15777_v10 = vpop.eup %14842 }
 0x232   :  { %v1868_v16 = vmul.f32 1.442695, %v1848_v38  ;;  %v1892_v15 = vsel %vm563_vm2, %v15777_v10, 0.0 }
 0x233   :  { %v1813_v23 = vpop.xlane.xlu1 %1812  ;;  %v1822_v26 = vpop.xlane.xlu0 %1821  ;;  %1893 = vadd.xlane.f32.xlu0 %v1892_v15 }
 0x234   :  { %14850 = vpow2.f32 %v1868_v16  ;;  %v1849_v20 = vsub.f32 %v15706_v24, %v1813_v23  ;;  %v1852_v40 = vsub.f32 %v15704_v19, %v1822_v26 }
 0x235   :  { %v15783_v29 = vpop.eup %14844 }
 0x236   :  { %v1870_v25 = vmul.f32 1.442695, %v1849_v20  ;;  %v1876_v39 = vmul.f32 1.442695, %v1852_v40  ;;  %v1895_v7 = vsel %vm563_vm2, %v15783_v29, 0.0 }
 0x237   :  { %1896 = vadd.xlane.f32.xlu1 %v1895_v7  ;;  %v1828_v13 = vpop.xlane.xlu0 %1827 }
 0x238   :  { %14852 = vpow2.f32 %v1870_v25  ;;  %v1854_v21 = vsub.f32 %v15712_v14, %v1828_v13 }
 0x239   :  { %v15788_v31 = vpop.eup %14846  ;;  %14854 = vpow2.f32 %v1876_v39 }
 0x23a   :  { %v1880_v30 = vmul.f32 1.442695, %v1854_v21  ;;  %v1898_v24 = vsel %vm563_vm2, %v15788_v31, 0.0 }
 0x23b   :  { %v1816_v19 = vpop.xlane.xlu0 %1815  ;;  %1899 = vadd.xlane.f32.xlu0 %v1898_v24  ;;  %v1819_v13 = vpop.xlane.xlu1 %1818 }
 0x23c   :  { %14856 = vpow2.f32 %v1880_v30  ;;  %v1850_v18 = vsub.f32 %v15714_v36, %v1816_v19  ;;  %v1851_v21 = vsub.f32 %v15718_v34, %v1819_v13 }
 0x23d   :  { %v15793_v32 = vpop.eup %14848 }
 0x23e   :  { %v1872_v38 = vmul.f32 1.442695, %v1850_v18  ;;  %v1901_v16 = vsel %vm563_vm2, %v15793_v32, 0.0  ;;  %v1874_v30 = vmul.f32 1.442695, %v1851_v21 }
 0x23f   :  { %1902 = vadd.xlane.f32.xlu1 %v1901_v16  ;;  %v1834_v24 = vpop.xlane.xlu0 %1833 }
 0x240   :  { %14858 = vpow2.f32 %v1872_v38  ;;  %v1856_v19 = vsub.f32 %v15722_v35, %v1834_v24 }
 0x241   :  { %v15797_v14 = vpop.eup %14850  ;;  %14860 = vpow2.f32 %v1874_v30 }
 0x242   :  { %v1904_v15 = vsel %vm563_vm2, %v15797_v14, 0.0  ;;  %v1884_v38 = vmul.f32 1.442695, %v1856_v19 }
 0x243   :  { %1905 = vadd.xlane.f32.xlu0 %v1904_v15  ;;  %v1840_v18 = vpop.xlane.xlu0 %1839 }
 0x244   :  { %v1858_v16 = vsub.f32 %v15728_v28, %v1840_v18  ;;  %14862 = vpow2.f32 %v1884_v38  ;;  %v15838_v28 = vpop.permute.xlu1 %3530 }
 0x245   :  { %v15801_v23 = vpop.eup %14852 }
 0x246   :  { %v15803_v26 = vpop.eup %14854  ;;  %v1907_v36 = vsel %vm563_vm2, %v15801_v23, 0.0  ;;  %v1888_v15 = vmul.f32 1.442695, %v1858_v16 }
 0x247   :  { %1908 = vadd.xlane.f32.xlu1 %v1907_v36  ;;  %v1916_v20 = vsel %vm563_vm2, %v15803_v26, 0.0 }
 0x248   :  { %1917 = vadd.xlane.f32.xlu0 %v1916_v20  ;;  %14864 = vpow2.f32 %v1888_v15 }
 0x249   :  { %v15809_v40 = vpop.eup %14856 }
 0x24a   :  { %v1922_v25 = vsel %vm563_vm2, %v15809_v40, 0.0 }
 0x24c   :  { %1923 = vadd.xlane.f32.xlu0 %v1922_v25 }
 0x24d   :  { %v15813_v39 = vpop.eup %14858 }
 0x24e   :  { %v1910_v7 = vsel %vm563_vm2, %v15813_v39, 0.0  ;;  %v15824_v36 = vpop.eup %14860 }
 0x24f   :  { %v1913_v34 = vsel %vm563_vm2, %v15824_v36, 0.0 }
 0x250   :  { %1911 = vadd.xlane.f32.xlu0 %v1910_v7 }
 0x251   :  { %v15828_v20 = vpop.eup %14862 }
 0x252   :  { %v1928_v25 = vsel %vm563_vm2, %v15828_v20, 0.0 }
 0x255   :  { %v15832_v7 = vpop.eup %14864 }
 0x256   :  { %v1934_v35 = vsel %vm563_vm2, %v15832_v7, 0.0 }
 0x258   :  { %3688 = vrot.lane.b32.xlu1 %v15505_v41, %s15200_s0 }
 0x266   :  { %3610 = vrot.lane.b32.xlu0 %v15513_v43, %s15200_s0 }
 0x270   :  { %v1825_v13 = vpop.xlane.xlu1 %1824 }
 0x271   :  { %v1853_v30 = vsub.f32 %v15736_v9, %v1825_v13 }
 0x273   :  { %v1878_v19 = vmul.f32 1.442695, %v1853_v30 }
 0x274   :  { %v1831_v21 = vpop.xlane.xlu1 %1830 }
 0x275   :  { %v1855_v18 = vsub.f32 %v15738_v11, %v1831_v21  ;;  %14866 = vpow2.f32 %v1878_v19 }
 0x277   :  { %v1882_v38 = vmul.f32 1.442695, %v1855_v18 }
 0x278   :  { %v1837_v24 = vpop.xlane.xlu1 %1836 }
 0x279   :  { %v1857_v16 = vsub.f32 %v15742_v33, %v1837_v24  ;;  %14868 = vpow2.f32 %v1882_v38 }
 0x27b   :  { %v1886_v9 = vmul.f32 1.442695, %v1857_v16 }
 0x27c   :  { %1914 = vadd.xlane.f32.xlu1 %v1913_v34  ;;  %v1843_v15 = vpop.xlane.xlu1 %1842 }
 0x27d   :  { %v1859_v34 = vsub.f32 %v15748_v37, %v1843_v15  ;;  %14870 = vpow2.f32 %v1886_v9  ;;  %v15866_v37 = vpop.permute.xlu0 %3452 }
 0x27f   :  { %v1890_v11 = vmul.f32 1.442695, %v1859_v34 }
 0x281   :  { %14872 = vpow2.f32 %v1890_v11 }
 0x285   :  { %1929 = vadd.xlane.f32.xlu0 %v1928_v25  ;;  %v15856_v25 = vpop.eup %14866 }
 0x286   :  { %v1919_v33 = vsel %vm563_vm2, %v15856_v25, 0.0 }
 0x289   :  { %1935 = vadd.xlane.f32.xlu0 %v1934_v35  ;;  %v15862_v35 = vpop.eup %14868 }
 0x28a   :  { %v1925_v13 = vsel %vm563_vm2, %v15862_v35, 0.0  ;;  %v15870_v21 = vpop.eup %14870 }
 0x28b   :  { %v1931_v24 = vsel %vm563_vm2, %v15870_v21, 0.0 }
 0x28d   :  { %3686 = vrot.lane.b32.xlu1 %v15507_v42, %s15200_s0 }
 0x28e   :  { %v15876_v19 = vpop.eup %14872 }
 0x28f   :  { %v1937_v38 = vsel %vm563_vm2, %v15876_v19, 0.0 }
 0x291   :  { %3844 = vrot.lane.b32.xlu1 %v15524_v45, %s15200_s0 }
 0x29f   :  { %3608 = vrot.lane.b32.xlu0 %v15515_v44, %s15200_s0 }
 0x2a3   :  { %3766 = vrot.lane.b32.xlu0 %v15532_v47, %s15200_s0 }
 0x2a7   :  { %3764 = vrot.lane.b32.xlu0 %v15534_v48, %s15200_s0 }
 0x2ab   :  { %3922 = vrot.lane.b32.xlu0 %v15552_v51, %s15200_s0 }
 0x2af   :  { %3920 = vrot.lane.b32.xlu0 %v15554_v52, %s15200_s0 }
 0x2b3   :  { %4078 = vrot.lane.b32.xlu0 %v15573_v55, %s15200_s0 }
 0x2b5   :  { %1920 = vadd.xlane.f32.xlu1 %v1919_v33 }
 0x2b7   :  { %4076 = vrot.lane.b32.xlu0 %v15576_v56, %s15200_s0 }
 0x2b9   :  { %1926 = vadd.xlane.f32.xlu1 %v1925_v13  ;;  %v18396_v13 = vmov 0.0  }
 0x2bb   :  { %4234 = vrot.lane.b32.xlu0 %v15595_v59, %s15200_s0 }
 0x2bc   :  { %v1894_v30 = vpop.xlane.xlu0 %1893 }
 0x2bd   :  { %14874 = vrcp.f32 %v1894_v30  ;;  %1932 = vadd.xlane.f32.xlu1 %v1931_v24 }
 0x2bf   :  { %4232 = vrot.lane.b32.xlu0 %v15598_v60, %s15200_s0 }
 0x2c0   :  { %v1897_v18 = vpop.xlane.xlu1 %1896 }
 0x2c1   :  { %14876 = vrcp.f32 %v1897_v18  ;;  %1938 = vadd.xlane.f32.xlu1 %v1937_v38 }
 0x2c3   :  { %4581 = vrot.lane.b32.xlu0 %v15623_v62, %s15200_s0 }
 0x2c4   :  { %v1900_v16 = vpop.xlane.xlu0 %1899 }
 0x2c5   :  { %14878 = vrcp.f32 %v1900_v16 }
 0x2c7   :  { %4735 = vrot.lane.b32.xlu0 %v15658_v0, %s15200_s0 }
 0x2c8   :  { %v1903_v15 = vpop.xlane.xlu1 %1902 }
 0x2c9   :  { %14880 = vrcp.f32 %v1903_v15 }
 0x2ca   :  { %v14875_v9 = vpop.eup %14874 }
 0x2cb   :  { %4812 = vrot.lane.b32.xlu0 %v15656_v63, %s15200_s0  ;;  %v1956_v34 = vmul.f32 %v14875_v9, %v15777_v10 }
 0x2cc   :  { %v1906_v11 = vpop.xlane.xlu0 %1905 }
 0x2cd   :  { %14882 = vrcp.f32 %v1906_v11  ;;  %14126 = vmatmul.mubr.msk.f32.vlgmr.msra.gmra.mxu0 %vm563_vm2, %v1956_v34 }
 0x2ce   :  { %v14877_v33 = vpop.eup %14876  ;;  %14134 = vmatpush3.msra.mxu0 %v15658_v0  ;;  %14135 = vmatprep.mubr.msk.f32.mxu0 %vm15199_vm1, %v18396_v13 }
 0x2cf   :  { %4889 = vrot.lane.b32.xlu0 %v15662_v2, %s15200_s0  ;;  %v1957_v30 = vmul.f32 %v14877_v33, %v15783_v29  ;;  %14143 = vmatprep.subr.mxu0 %v18396_v13 }
 0x2d0   :  { %v1909_v24 = vpop.xlane.xlu1 %1908 }
 0x2d1   :  { %14884 = vrcp.f32 %v1909_v24  ;;  %v1918_v10 = vpop.xlane.xlu0 %1917  ;;  %14131 = vmatmul.mubr.msk.f32.vlgmr.msra.gmra.mxu1 %vm563_vm2, %v1957_v30 }
 0x2d2   :  { %v14879_v18 = vpop.eup %14878  ;;  %14139 = vmatpush3.msra.mxu1 %v15656_v63  ;;  %3842 = vrot.lane.b32.xlu1 %v15526_v46, %s15200_s0 }
 0x2d3   :  { %4966 = vrot.lane.b32.xlu0 %v15660_v1, %s15200_s0  ;;  %v1958_v38 = vmul.f32 %v14879_v18, %v15788_v31  ;;  %14140 = vmatprep.mubr.msk.f32.mxu1 %vm15199_vm1, %v18396_v13  ;;  %v18400_v18 = vld [vmem:[#allocation6_spill] sm:$0xff] }
 0x2d4   :  { %14148 = vmatprep.subr.mxu1 %v18396_v13 }
 0x2d5   :  { %v1924_v29 = vpop.xlane.xlu0 %1923  ;;  %14136 = vmatmul.mubr.msk.f32.vlgmr.msra.gmra.mxu0 %vm563_vm2, %v1958_v38  ;;  %v18401_v38 = vld [vmem:[#allocation7_spill] sm:$0xff] }
 0x2d6   :  { %v14881_v16 = vpop.eup %14880  ;;  %14144 = vmatpush3.msra.mxu0 %v15662_v2  ;;  %4000 = vrot.lane.b32.xlu1 %v15543_v49, %s15200_s0 }
 0x2d7   :  { %5043 = vrot.lane.b32.xlu0 %v15666_v4, %s15200_s0  ;;  %v1959_v15 = vmul.f32 %v14881_v16, %v15793_v32  ;;  %14145 = vmatprep.mubr.msk.f32.mxu0 %vm15199_vm1, %v18396_v13  ;;  %v18403_v16 = vld [vmem:[#allocation8_spill] sm:$0xff] }
 0x2d8   :  { %14153 = vmatprep.subr.mxu0 %v18396_v13 }
 0x2d9   :  { %v1912_v31 = vpop.xlane.xlu0 %1911  ;;  %14141 = vmatmul.mubr.msk.f32.vlgmr.msra.gmra.mxu1 %vm563_vm2, %v1959_v15  ;;  %v15992_v15 = vpop.permute.xlu1 %3688 }
 0x2da   :  { %v14883_v9 = vpop.eup %14882  ;;  %14886 = vrcp.f32 %v1912_v31  ;;  %14149 = vmatpush3.msra.mxu1 %v15660_v1  ;;  %3998 = vrot.lane.b32.xlu1 %v15545_v50, %s15200_s0  ;;  %v18404_v31 = vld [vmem:[#allocation11_spill] sm:$0xff] }
 0x2db   :  { %5120 = vrot.lane.b32.xlu0 %v15664_v3, %s15200_s0  ;;  %v1960_v32 = vmul.f32 %v14883_v9, %v15797_v14  ;;  %14150 = vmatprep.mubr.msk.f32.mxu1 %vm15199_vm1, %v18396_v13  ;;  %14888 = vrcp.f32 %v1918_v10  ;;  %v18398_v10 = vld [vmem:[#allocation5_spill] sm:$0xff] }
 0x2dc   :  { %14158 = vmatprep.subr.mxu1 %v18396_v13  ;;  %14890 = vrcp.f32 %v1924_v29  ;;  %v18402_v29 = vld [vmem:[#allocation9_spill] sm:$0xff] }
 0x2dd   :  { %14146 = vmatmul.mubr.msk.f32.vlgmr.msra.gmra.mxu0 %vm563_vm2, %v1960_v32  ;;  %v3611_v32 = vpop.permute.xlu0 %3610 }
 0x2de   :  { %v14885_v34 = vpop.eup %14884  ;;  %14154 = vmatpush3.msra.mxu0 %v15666_v4  ;;  %4156 = vrot.lane.b32.xlu1 %v15563_v53, %s15200_s0 }
 0x2df   :  { %5197 = vrot.lane.b32.xlu0 %v15674_v8, %s15200_s0  ;;  %v1961_v11 = vmul.f32 %v14885_v34, %v15801_v23  ;;  %14155 = vmatprep.mubr.msk.f32.mxu0 %vm15199_vm1, %v18396_v13 }
 0x2e0   :  { %14163 = vmatprep.subr.mxu0 %v18396_v13 }
 0x2e1   :  { %14151 = vmatmul.mubr.msk.f32.vlgmr.msra.gmra.mxu1 %vm563_vm2, %v1961_v11 }
 0x2e2   :  { %14159 = vmatpush3.msra.mxu1 %v15664_v3  ;;  %4154 = vrot.lane.b32.xlu1 %v15565_v54, %s15200_s0 }
 0x2e3   :  { %5274 = vrot.lane.b32.xlu0 %v15670_v6, %s15200_s0  ;;  %14160 = vmatprep.mubr.msk.f32.mxu1 %vm15199_vm1, %v18396_v13 }
 0x2e4   :  { %14168 = vmatprep.subr.mxu1 %v18396_v13 }
 0x2e6   :  { %4312 = vrot.lane.b32.xlu1 %v15585_v57, %s15200_s0 }
 0x2e7   :  { %v14887_v14 = vpop.eup %14886  ;;  %5351 = vrot.lane.b32.xlu0 %v15684_v17, %s15200_s0 }
 0x2e8   :  { %v1962_v23 = vmul.f32 %v14887_v14, %v15813_v39  ;;  %v14889_v33 = vpop.eup %14888 }
 0x2e9   :  { %v1964_v30 = vmul.f32 %v14889_v33, %v15803_v26  ;;  %v14891_v24 = vpop.eup %14890  ;;  %v18397_v26 = vld [vmem:[#allocation27_spill] sm:$0xff] }
 0x2ea   :  { %14156 = vmatmul.mubr.msk.f32.vlgmr.msra.gmra.mxu0 %vm563_vm2, %v1962_v23  ;;  %4310 = vrot.lane.b32.xlu1 %v15587_v58, %s15200_s0  ;;  %v1966_v39 = vmul.f32 %v14891_v24, %v15809_v40  ;;  %v18399_v40 = vld [vmem:[#allocation25_spill] sm:$0xff] }
 0x2eb   :  { %14164 = vmatpush3.msra.mxu0 %v15674_v8  ;;  %5505 = vrot.lane.b32.xlu0 %v15696_v27, %s15200_s0 }
 0x2ec   :  { %14165 = vmatprep.mubr.msk.f32.mxu0 %vm15199_vm1, %v18396_v13  ;;  %14173 = vmatprep.subr.mxu0 %v18396_v13 }
 0x2ee   :  { %14166 = vmatmul.mubr.msk.f32.vlgmr.msra.gmra.mxu0 %vm563_vm2, %v1964_v30  ;;  %4658 = vrot.lane.b32.xlu1 %v15607_v61, %s15200_s0 }
 0x2ef   :  { %14174 = vmatpush3.msra.mxu0 %v15684_v17  ;;  %5582 = vrot.lane.b32.xlu0 %v15690_v22, %s15200_s0 }
 0x2f0   :  { %14175 = vmatprep.mubr.msk.f32.mxu0 %vm15199_vm1, %v18396_v13  ;;  %14183 = vmatprep.subr.mxu0 %v18396_v13 }
 0x2f2   :  { %14176 = vmatmul.mubr.msk.f32.vlgmr.msra.gmra.mxu0 %vm563_vm2, %v1966_v39  ;;  %5428 = vrot.lane.b32.xlu1 %v15678_v12, %s15200_s0 }
 0x2f3   :  { %14184 = vmatpush3.msra.mxu0 %v15696_v27  ;;  %5659 = vrot.lane.b32.xlu0 %v18397_v26, %s15200_s0 }
 0x2f4   :  { %14185 = vmatprep.mubr.msk.f32.mxu0 %vm15199_vm1, %v18396_v13  ;;  %14193 = vmatprep.subr.mxu0 %v18396_v13 }
 0x2f6   :  { %5892 = vrot.lane.b32.xlu1 %v18398_v10, %s15201_s3 }
 0x2f7   :  { %5736 = vrot.lane.b32.xlu0 %v18399_v40, %s15200_s0 }
 0x2fa   :  { %5890 = vrot.lane.b32.xlu1 %v18400_v18, %s15201_s3 }
 0x2fb   :  { %5814 = vrot.lane.b32.xlu0 %v18401_v38, %s15201_s3 }
 0x2fe   :  { %6048 = vrot.lane.b32.xlu1 %v18402_v29, %s15201_s3 }
 0x2ff   :  { %5812 = vrot.lane.b32.xlu0 %v18403_v16, %s15201_s3 }
 0x303   :  { %5970 = vrot.lane.b32.xlu0 %v18404_v31, %s15201_s3 }
 0x305   :  { %v1915_v9 = vpop.xlane.xlu1 %1914 }
 0x306   :  { %14892 = vrcp.f32 %v1915_v9 }
 0x30e   :  { %v1930_v34 = vpop.xlane.xlu0 %1929 }
 0x30f   :  { %14894 = vrcp.f32 %v1930_v34 }
 0x312   :  { %v1936_v11 = vpop.xlane.xlu0 %1935 }
 0x313   :  { %v14893_v14 = vpop.eup %14892  ;;  %14896 = vrcp.f32 %v1936_v11 }
 0x314   :  { %v1963_v23 = vmul.f32 %v14893_v14, %v15824_v36  ;;  %v18405_v14 = vld [vmem:[#allocation34_spill] sm:$0xff] }
 0x316   :  { %v3609_v33 = vpop.permute.xlu0 %3608  ;;  %14161 = vmatmul.mubr.msk.f32.vlgmr.msra.gmra.mxu1 %vm563_vm2, %v1963_v23  ;;  %v18406_v23 = vld [vmem:[#allocation37_spill] sm:$0xff] }
 0x317   :  { %14169 = vmatpush3.msra.mxu1 %v15670_v6  ;;  %14170 = vmatprep.mubr.msk.f32.mxu1 %vm15199_vm1, %v18396_v13 }
 0x318   :  { %14178 = vmatprep.subr.mxu1 %v18396_v13 }
 0x31a   :  { %v3767_v30 = vpop.permute.xlu0 %3766 }
 0x31c   :  { %v14895_v24 = vpop.eup %14894 }
 0x31d   :  { %v1968_v39 = vmul.f32 %v14895_v24, %v15828_v20  ;;  %v18407_v24 = vld [vmem:[#allocation36_spill] sm:$0xff] }
 0x31e   :  { %v3765_v9 = vpop.permute.xlu0 %3764 }
 0x31f   :  { %14186 = vmatmul.mubr.msk.f32.vlgmr.msra.gmra.mxu0 %vm563_vm2, %v1968_v39  ;;  %v18408_v39 = vld [vmem:[#allocation38_spill] sm:$0xff] }
 0x320   :  { %v14897_v34 = vpop.eup %14896  ;;  %14194 = vmatpush3.msra.mxu0 %v18397_v26  ;;  %14195 = vmatprep.mubr.msk.f32.mxu0 %vm15199_vm1, %v18396_v13 }
 0x321   :  { %14203 = vmatprep.subr.mxu0 %v18396_v13  ;;  %v1970_v36 = vmul.f32 %v14897_v34, %v15832_v7  ;;  %v18409_v34 = vld [vmem:[#allocation40_spill] sm:$0xff] }
 0x322   :  { %v3923_v11 = vpop.permute.xlu0 %3922 }
 0x323   :  { %14196 = vmatmul.mubr.msk.f32.vlgmr.msra.gmra.mxu0 %vm563_vm2, %v1970_v36 }
 0x324   :  { %14204 = vmatpush3.xpose.msk.msra.mxu0 %vm563_vm2, %v18405_v14  ;;  %14205 = vmatprep.mubr.msk.f32.mxu0 %vm15199_vm1, %v18396_v13  ;;  %v16036_v14 = vpop.permute.xlu1 %3686 }
 0x325   :  { %14213 = vmatprep.subr.mxu0 %v18396_v13 }
 0x326   :  { %v3921_v20 = vpop.permute.xlu0 %3920 }
 0x327   :  { %14206 = vmatmul.mubr.msk.f32.vlgmr.msra.gmra.mxu0 %vm563_vm2, %v18406_v23 }
 0x328   :  { %14214 = vmatpush3.xpose.msk.msra.mxu0 %vm563_vm2, %v18407_v24  ;;  %14215 = vmatprep.mubr.msk.f32.mxu0 %vm15199_vm1, %v18396_v13 }
 0x329   :  { %14223 = vmatprep.subr.mxu0 %v18396_v13 }
 0x32a   :  { %v4079_v7 = vpop.permute.xlu0 %4078 }
 0x32b   :  { %14216 = vmatmul.mubr.msk.f32.vlgmr.msra.gmra.mxu0 %vm563_vm2, %v18408_v39 }
 0x32c   :  { %14224 = vmatpush3.xpose.msk.msra.mxu0 %vm563_vm2, %v18409_v34  ;;  %14225 = vmatprep.mubr.msk.f32.mxu0 %vm15199_vm1, %v18396_v13 }
 0x32d   :  { %14233 = vmatprep.subr.mxu0 %v18396_v13 }
 0x32e   :  { %v4077_v36 = vpop.permute.xlu0 %4076 }
 0x32f   :  { %14226 = vmatmul.mubr.msk.f32.vlgmr.msra.gmra.mxu0 %vm563_vm2, %v15866_v37 }
 0x330   :  { %14234 = vmatpush3.xpose.msk.msra.mxu0 %vm563_vm2, %v3611_v32  ;;  %14235 = vmatprep.mubr.msk.f32.mxu0 %vm15199_vm1, %v18396_v13  ;;  %v16047_v32 = vpop.permute.xlu1 %3844 }
 0x331   :  { %14243 = vmatprep.subr.mxu0 %v18396_v13 }
 0x332   :  { %v4235_v37 = vpop.permute.xlu0 %4234 }
 0x333   :  { %14236 = vmatmul.mubr.msk.f32.vlgmr.msra.gmra.mxu0 %vm563_vm2, %v3609_v33 }
 0x334   :  { %14244 = vmatpush3.xpose.msk.msra.mxu0 %vm563_vm2, %v3767_v30  ;;  %14245 = vmatprep.mubr.msk.f32.mxu0 %vm15199_vm1, %v18396_v13 }
 0x335   :  { %14253 = vmatprep.subr.mxu0 %v18396_v13 }
 0x336   :  { %v4233_v33 = vpop.permute.xlu0 %4232 }
 0x337   :  { %14246 = vmatmul.mubr.msk.f32.vlgmr.msra.gmra.mxu0 %vm563_vm2, %v3765_v9 }
 0x338   :  { %14254 = vmatpush3.xpose.msk.msra.mxu0 %vm563_vm2, %v3923_v11  ;;  %14255 = vmatprep.mubr.msk.f32.mxu0 %vm15199_vm1, %v18396_v13 }
 0x339   :  { %14263 = vmatprep.subr.mxu0 %v18396_v13 }
 0x33a   :  { %v4582_v11 = vpop.permute.xlu0 %4581 }
 0x33b   :  { %14256 = vmatmul.mubr.msk.f32.vlgmr.msra.gmra.mxu0 %vm563_vm2, %v3921_v20 }
 0x33c   :  { %14264 = vmatpush3.xpose.msk.msra.mxu0 %vm563_vm2, %v4079_v7  ;;  %14265 = vmatprep.mubr.msk.f32.mxu0 %vm15199_vm1, %v18396_v13 }
 0x33d   :  { %14273 = vmatprep.subr.mxu0 %v18396_v13 }
 0x33e   :  { %v1921_v30 = vpop.xlane.xlu1 %1920 }
 0x33f   :  { %14898 = vrcp.f32 %v1921_v30  ;;  %14266 = vmatmul.mubr.msk.f32.vlgmr.msra.gmra.mxu0 %vm563_vm2, %v4077_v36 }
 0x340   :  { %14274 = vmatpush3.xpose.msk.msra.mxu0 %vm563_vm2, %v4235_v37  ;;  %14275 = vmatprep.mubr.msk.f32.mxu0 %vm15199_vm1, %v18396_v13 }
 0x341   :  { %14283 = vmatprep.subr.mxu0 %v18396_v13 }
 0x342   :  { %v1927_v9 = vpop.xlane.xlu1 %1926 }
 0x343   :  { %14900 = vrcp.f32 %v1927_v9  ;;  %14276 = vmatmul.mubr.msk.f32.vlgmr.msra.gmra.mxu0 %vm563_vm2, %v4233_v33  ;;  %v18410_v9 = vld [vmem:[#allocation33_spill] sm:$0xff] }
 0x344   :  { %14284 = vmatpush3.msra.mxu0 %v4582_v11  ;;  %14285 = vmatprep.mubr.msk.f32.mxu0 %vm15199_vm1, %v18396_v13  ;;  %v18411_v11 = vld [vmem:[#allocation35_spill] sm:$0xff] }
 0x345   :  { %14293 = vmatprep.subr.mxu0 %v18396_v13 }
 0x346   :  { %v1933_v20 = vpop.xlane.xlu1 %1932 }
 0x347   :  { %14902 = vrcp.f32 %v1933_v20  ;;  %v18412_v20 = vld [vmem:[#allocation39_spill] sm:$0xff] }
 0x34a   :  { %v1939_v23 = vpop.xlane.xlu1 %1938 }
 0x34b   :  { %14904 = vrcp.f32 %v1939_v23  ;;  %v18413_v23 = vld [vmem:[#allocation41_spill] sm:$0xff] }
 0x34c   :  { %v14899_v24 = vpop.eup %14898 }
 0x34d   :  { %v1965_v7 = vmul.f32 %v14899_v24, %v15856_v25 }
 0x34e   :  { %v3843_v34 = vpop.permute.xlu1 %3842 }
 0x34f   :  { %14171 = vmatmul.mubr.msk.f32.vlgmr.msra.gmra.mxu1 %vm563_vm2, %v1965_v7 }
 0x350   :  { %v14901_v39 = vpop.eup %14900  ;;  %14179 = vmatpush3.msra.mxu1 %v15678_v12  ;;  %14180 = vmatprep.mubr.msk.f32.mxu1 %vm15199_vm1, %v18396_v13 }
 0x351   :  { %14188 = vmatprep.subr.mxu1 %v18396_v13  ;;  %v1967_v36 = vmul.f32 %v14901_v39, %v15862_v35 }
 0x352   :  { %v4001_v33 = vpop.permute.xlu1 %4000 }
 0x353   :  { %14181 = vmatmul.mubr.msk.f32.vlgmr.msra.gmra.mxu1 %vm563_vm2, %v1967_v36 }
 0x354   :  { %v14903_v37 = vpop.eup %14902  ;;  %14189 = vmatpush3.msra.mxu1 %v15690_v22  ;;  %14190 = vmatprep.mubr.msk.f32.mxu1 %vm15199_vm1, %v18396_v13 }
 0x355   :  { %14198 = vmatprep.subr.mxu1 %v18396_v13  ;;  %v1969_v25 = vmul.f32 %v14903_v37, %v15870_v21 }
 0x356   :  { %v3999_v21 = vpop.permute.xlu1 %3998 }
 0x357   :  { %14191 = vmatmul.mubr.msk.f32.vlgmr.msra.gmra.mxu1 %vm563_vm2, %v1969_v25 }
 0x358   :  { %v14905_v30 = vpop.eup %14904  ;;  %14199 = vmatpush3.msra.mxu1 %v18399_v40  ;;  %14200 = vmatprep.mubr.msk.f32.mxu1 %vm15199_vm1, %v18396_v13 }
 0x359   :  { %14208 = vmatprep.subr.mxu1 %v18396_v13  ;;  %v1971_v35 = vmul.f32 %v14905_v30, %v15876_v19 }
 0x35a   :  { %v4157_v19 = vpop.permute.xlu1 %4156 }
 0x35b   :  { %14201 = vmatmul.mubr.msk.f32.vlgmr.msra.gmra.mxu1 %vm563_vm2, %v1971_v35 }
 0x35c   :  { %14209 = vmatpush3.xpose.msk.msra.mxu1 %vm563_vm2, %v18410_v9  ;;  %14210 = vmatprep.mubr.msk.f32.mxu1 %vm15199_vm1, %v18396_v13 }
 0x35d   :  { %14218 = vmatprep.subr.mxu1 %v18396_v13 }
 0x35e   :  { %v4155_v24 = vpop.permute.xlu1 %4154 }
 0x35f   :  { %14211 = vmatmul.mubr.msk.f32.vlgmr.msra.gmra.mxu1 %vm563_vm2, %v18411_v11 }
 0x360   :  { %14219 = vmatpush3.xpose.msk.msra.mxu1 %vm563_vm2, %v18412_v20  ;;  %14220 = vmatprep.mubr.msk.f32.mxu1 %vm15199_vm1, %v18396_v13 }
 0x361   :  { %14228 = vmatprep.subr.mxu1 %v18396_v13 }
 0x363   :  { %14221 = vmatmul.mubr.msk.f32.vlgmr.msra.gmra.mxu1 %vm563_vm2, %v18413_v23 }
 0x364   :  { %14229 = vmatpush3.xpose.msk.msra.mxu1 %vm563_vm2, %v15771_v5  ;;  %14230 = vmatprep.mubr.msk.f32.mxu1 %vm15199_vm1, %v18396_v13  ;;  %v4313_v5 = vpop.permute.xlu1 %4312 }
 0x365   :  { %14238 = vmatprep.subr.mxu1 %v18396_v13 }
 0x367   :  { %14231 = vmatmul.mubr.msk.f32.vlgmr.msra.gmra.mxu1 %vm563_vm2, %v15838_v28 }
 0x368   :  { %14239 = vmatpush3.xpose.msk.msra.mxu1 %vm563_vm2, %v15992_v15  ;;  %14240 = vmatprep.mubr.msk.f32.mxu1 %vm15199_vm1, %v18396_v13  ;;  %v4311_v28 = vpop.permute.xlu1 %4310 }
 0x369   :  { %14248 = vmatprep.subr.mxu1 %v18396_v13 }
 0x36b   :  { %14241 = vmatmul.mubr.msk.f32.vlgmr.msra.gmra.mxu1 %vm563_vm2, %v16036_v14 }
 0x36c   :  { %14249 = vmatpush3.xpose.msk.msra.mxu1 %vm563_vm2, %v16047_v32  ;;  %14250 = vmatprep.mubr.msk.f32.mxu1 %vm15199_vm1, %v18396_v13  ;;  %v4659_v15 = vpop.permute.xlu1 %4658 }
 0x36d   :  { %14258 = vmatprep.subr.mxu1 %v18396_v13 }
 0x36f   :  { %14251 = vmatmul.mubr.msk.f32.vlgmr.msra.gmra.mxu1 %vm563_vm2, %v3843_v34 }
 0x370   :  { %14259 = vmatpush3.xpose.msk.msra.mxu1 %vm563_vm2, %v4001_v33  ;;  %14260 = vmatprep.mubr.msk.f32.mxu1 %vm15199_vm1, %v18396_v13 }
 0x371   :  { %14268 = vmatprep.subr.mxu1 %v18396_v13 }
 0x373   :  { %14261 = vmatmul.mubr.msk.f32.vlgmr.msra.gmra.mxu1 %vm563_vm2, %v3999_v21 }
 0x374   :  { %14269 = vmatpush3.xpose.msk.msra.mxu1 %vm563_vm2, %v4157_v19  ;;  %14270 = vmatprep.mubr.msk.f32.mxu1 %vm15199_vm1, %v18396_v13 }
 0x375   :  { %14278 = vmatprep.subr.mxu1 %v18396_v13 }
 0x377   :  { %14271 = vmatmul.mubr.msk.f32.vlgmr.msra.gmra.mxu1 %vm563_vm2, %v4155_v24 }
 0x378   :  { %14279 = vmatpush3.xpose.msk.msra.mxu1 %vm563_vm2, %v4313_v5  ;;  %14280 = vmatprep.mubr.msk.f32.mxu1 %vm15199_vm1, %v18396_v13 }
 0x379   :  { %14288 = vmatprep.subr.mxu1 %v18396_v13 }
 0x37b   :  { %14281 = vmatmul.mubr.msk.f32.vlgmr.msra.gmra.mxu1 %vm563_vm2, %v4311_v28 }
 0x37c   :  { %14289 = vmatpush3.msra.mxu1 %v4659_v15  ;;  %14290 = vmatprep.mubr.msk.f32.mxu1 %vm15199_vm1, %v18396_v13 }
 0x37d   :  { %14298 = vmatprep.subr.mxu1 %v18396_v13 }
 0x38d   :  { %v16135_v14 = vpop.f32.mrf.mxu0 }
 0x38e   :  { %18414 = vst [vmem:[#allocation34_spill] sm:$0xff] %v16135_v14 }
 0x38f   :  { %v14127_v32 = vpop.f32.mrf.mxu0 }
 0x391   :  { %v16137_v7 = vpop.f32.mrf.mxu1 }
 0x392   :  { %18415 = vst [vmem:[#allocation37_spill] sm:$0xff] %v16137_v7 }
 0x393   :  { %v14132_v39 = vpop.f32.mrf.mxu1 }
 0x395   :  { %v16139_v34 = vpop.f32.mrf.mxu0 }
 0x396   :  { %18416 = vst [vmem:[#allocation36_spill] sm:$0xff] %v16139_v34 }
 0x397   :  { %v14137_v36 = vpop.f32.mrf.mxu0 }
 0x399   :  { %v16141_v37 = vpop.f32.mrf.mxu1 }
 0x39a   :  { %18417 = vst [vmem:[#allocation38_spill] sm:$0xff] %v16141_v37 }
 0x39b   :  { %v14142_v25 = vpop.f32.mrf.mxu1 }
 0x39d   :  { %v16143_v33 = vpop.f32.mrf.mxu0 }
 0x39e   :  { %18418 = vst [vmem:[#allocation40_spill] sm:$0xff] %v16143_v33 }
 0x39f   :  { %v14147_v30 = vpop.f32.mrf.mxu0 }
 0x3a1   :  { %v16145_v35 = vpop.f32.mrf.mxu1 }
 0x3a2   :  { %18419 = vst [vmem:[#allocation33_spill] sm:$0xff] %v16145_v35 }
 0x3a3   :  { %v14152_v9 = vpop.f32.mrf.mxu1 }
 0x3aa   :  { %v16147_v21 = vpop.f32.mrf.mxu0 }
 0x3ab   :  { %18420 = vst [vmem:[#allocation35_spill] sm:$0xff] %v16147_v21 }
 0x3ac   :  { %v14157_v11 = vpop.f32.mrf.mxu0 }
 0x3ae   :  { %v16149_v20 = vpop.f32.mrf.mxu0 }
 0x3af   :  { %18421 = vst [vmem:[#allocation39_spill] sm:$0xff] %v16149_v20 }
 0x3b0   :  { %v14167_v19 = vpop.f32.mrf.mxu0 }
 0x3b2   :  { %v16151_v23 = vpop.f32.mrf.mxu0 }
 0x3b3   :  { %18422 = vst [vmem:[#allocation41_spill] sm:$0xff] %v16151_v23  ;;  %v16171_v23 = vpop.permute.xlu0 %4735 }
 0x3b4   :  { %v14177_v24 = vpop.f32.mrf.mxu0 }
 0x3d6   :  { %v16153_v5 = vpop.f32.mrf.mxu1 }
 0x3d7   :  { %18423 = vst [vmem:[#allocation42_spill] sm:$0xff] %v16153_v5 }
 0x3d8   :  { %v14162_v28 = vpop.f32.mrf.mxu1 }
 0x3df   :  { %v16155_v15 = vpop.f32.mrf.mxu0 }
 0x3e0   :  { %18424 = vst [vmem:[#allocation43_spill] sm:$0xff] %v16155_v15 }
 0x3e1   :  { %v14187_v32 = vpop.f32.mrf.mxu0 }
 0x3e3   :  { %v16157_v39 = vpop.f32.mrf.mxu0 }
 0x3e4   :  { %18425 = vst [vmem:[#allocation44_spill] sm:$0xff] %v16157_v39 }
 0x3e5   :  { %v14197_v36 = vpop.f32.mrf.mxu0 }
 0x3e7   :  { %v3214_v25 = vpop.f32.mrf.mxu0 }
 0x3e8   :  { %v16159_v30 = vmul.f32 0.35355338, %v3214_v25 }
 0x3e9   :  { %v14207_v9 = vpop.f32.mrf.mxu0 }
 0x3ea   :  { %v4404_v11 = vsel %vm563_vm2, %v16159_v30, -inf }
 0x3eb   :  { %4405 = vmax.xlane.f32.xlu0 %v4404_v11  ;;  %v3370_v19 = vpop.f32.mrf.mxu0 }
 0x3ec   :  { %v16163_v21 = vmul.f32 0.35355338, %v3370_v19 }
 0x3ed   :  { %v14217_v24 = vpop.f32.mrf.mxu0 }
 0x3ee   :  { %v4410_v28 = vsel %vm563_vm2, %v16163_v21, -inf }
 0x3ef   :  { %4411 = vmax.xlane.f32.xlu0 %v4410_v28  ;;  %v3526_v32 = vpop.f32.mrf.mxu0 }
 0x3f1   :  { %v14227_v5 = vpop.f32.mrf.mxu0 }
 0x3f3   :  { %v3682_v39 = vpop.f32.mrf.mxu0 }
 0x3f5   :  { %v14237_v36 = vpop.f32.mrf.mxu0 }
 0x3f7   :  { %v3838_v35 = vpop.f32.mrf.mxu0 }
 0x3f9   :  { %v14247_v25 = vpop.f32.mrf.mxu0 }
 0x3fa   :  { %v16177_v25 = vpop.permute.xlu0 %4812 }
 0x3fb   :  { %v3994_v33 = vpop.f32.mrf.mxu0  ;;  %18430 = vst [vmem:[#allocation49_spill] sm:$0xff] %v16177_v25  ;;  %v16195_v25 = vmul.f32 0.35355338, %v3682_v39 }
 0x3fd   :  { %v14257_v9 = vpop.f32.mrf.mxu0 }
 0x3fe   :  { %v16181_v31 = vpop.permute.xlu0 %4889 }
 0x3ff   :  { %v4150_v37 = vpop.f32.mrf.mxu0 }
 0x401   :  { %v14267_v34 = vpop.f32.mrf.mxu0 }
 0x403   :  { %v4306_v7 = vpop.f32.mrf.mxu0 }
 0x405   :  { %v14277_v11 = vpop.f32.mrf.mxu0 }
 0x40f   :  { %v16167_v14 = vpop.f32.mrf.mxu1 }
 0x410   :  { %18426 = vst [vmem:[#allocation45_spill] sm:$0xff] %v16167_v14 }
 0x411   :  { %v14172_v19 = vpop.f32.mrf.mxu1 }
 0x413   :  { %v16169_v24 = vpop.f32.mrf.mxu1 }
 0x414   :  { %18427 = vst [vmem:[#allocation46_spill] sm:$0xff] %v16169_v24 }
 0x415   :  { %v14182_v15 = vpop.f32.mrf.mxu1 }
 0x417   :  { %v16173_v28 = vpop.f32.mrf.mxu1 }
 0x418   :  { %18428 = vst [vmem:[#allocation47_spill] sm:$0xff] %v16173_v28 }
 0x419   :  { %v14192_v5 = vpop.f32.mrf.mxu1 }
 0x41a   :  { %v16187_v5 = vmul.f32 0.35355338, %v3526_v32 }
 0x41b   :  { %v16175_v36 = vpop.f32.mrf.mxu1 }
 0x41c   :  { %18429 = vst [vmem:[#allocation48_spill] sm:$0xff] %v16175_v36 }
 0x41d   :  { %v14202_v9 = vpop.f32.mrf.mxu1 }
 0x41f   :  { %v3292_v20 = vpop.f32.mrf.mxu1 }
 0x420   :  { %v16179_v34 = vmul.f32 0.35355338, %v3292_v20  ;;  %v16191_v20 = vpop.permute.xlu0 %4966 }
 0x421   :  { %v14212_v11 = vpop.f32.mrf.mxu1  ;;  %18431 = vst [vmem:[#allocation50_spill] sm:$0xff] %v16191_v20  ;;  %v16205_v20 = vmul.f32 0.35355338, %v3838_v35 }
 0x422   :  { %v4407_v19 = vsel %vm563_vm2, %v16179_v34, -inf }
 0x423   :  { %4408 = vmax.xlane.f32.xlu1 %v4407_v19  ;;  %v3448_v15 = vpop.f32.mrf.mxu1  ;;  %v4428_v35 = vsel %vm563_vm2, %v16205_v20, -inf }
 0x424   :  { %v16185_v14 = vmul.f32 0.35355338, %v3448_v15 }
 0x425   :  { %v14222_v28 = vpop.f32.mrf.mxu1 }
 0x426   :  { %v4413_v36 = vsel %vm563_vm2, %v16185_v14, -inf  ;;  %v4416_v28 = vsel %vm563_vm2, %v16187_v5, -inf }
 0x427   :  { %v3604_v9 = vpop.f32.mrf.mxu1  ;;  %4414 = vmax.xlane.f32.xlu0 %v4413_v36  ;;  %v16203_v36 = vpop.permute.xlu0 %5043 }
 0x428   :  { %v16193_v11 = vmul.f32 0.35355338, %v3604_v9  ;;  %18432 = vst [vmem:[#allocation51_spill] sm:$0xff] %v16203_v36 }
 0x429   :  { %v14232_v24 = vpop.f32.mrf.mxu1 }
 0x42a   :  { %v4419_v19 = vsel %vm563_vm2, %v16193_v11, -inf  ;;  %v4422_v24 = vsel %vm563_vm2, %v16195_v25, -inf }
 0x42b   :  { %4420 = vmax.xlane.f32.xlu1 %v4419_v19  ;;  %v3760_v32 = vpop.f32.mrf.mxu1  ;;  %4417 = vmax.xlane.f32.xlu0 %v4416_v28  ;;  %v16213_v28 = vmul.f32 0.35355338, %v3994_v33  ;;  %v16219_v36 = vpop.permute.xlu0 %5120 }
 0x42c   :  { %v16201_v15 = vmul.f32 0.35355338, %v3760_v32  ;;  %18433 = vst [vmem:[#allocation52_spill] sm:$0xff] %v16219_v36  ;;  %v16233_v36 = vmul.f32 0.35355338, %v4306_v7 }
 0x42d   :  { %v14242_v16 = vpop.f32.mrf.mxu1 }
 0x42e   :  { %v4425_v39 = vsel %vm563_vm2, %v16201_v15, -inf }
 0x42f   :  { %4426 = vmax.xlane.f32.xlu1 %v4425_v39  ;;  %v3916_v9 = vpop.f32.mrf.mxu1  ;;  %4423 = vmax.xlane.f32.xlu0 %v4422_v24  ;;  %v16223_v24 = vmul.f32 0.35355338, %v4150_v37 }
 0x430   :  { %v16211_v29 = vmul.f32 0.35355338, %v3916_v9  ;;  %v4434_v9 = vsel %vm563_vm2, %v16213_v28, -inf }
 0x431   :  { %v14252_v19 = vpop.f32.mrf.mxu1 }
 0x432   :  { %v4431_v16 = vsel %vm563_vm2, %v16211_v29, -inf }
 0x433   :  { %4432 = vmax.xlane.f32.xlu1 %v4431_v16  ;;  %v4072_v32 = vpop.f32.mrf.mxu1  ;;  %4429 = vmax.xlane.f32.xlu0 %v4428_v35  ;;  %v16231_v35 = vpop.permute.xlu0 %5197 }
 0x434   :  { %v16221_v38 = vmul.f32 0.35355338, %v4072_v32  ;;  %18434 = vst [vmem:[#allocation53_spill] sm:$0xff] %v16231_v35  ;;  %v4440_v32 = vsel %vm563_vm2, %v16223_v24, -inf  ;;  %v18439_v35 = vld [vmem:[#allocation13_spill] sm:$0xff] }
 0x435   :  { %v14262_v39 = vpop.f32.mrf.mxu1 }
 0x436   :  { %v4437_v33 = vsel %vm563_vm2, %v16221_v38, -inf }
 0x437   :  { %4438 = vmax.xlane.f32.xlu1 %v4437_v33  ;;  %v4228_v19 = vpop.f32.mrf.mxu1  ;;  %4435 = vmax.xlane.f32.xlu0 %v4434_v9  ;;  %v4446_v33 = vsel %vm563_vm2, %v16233_v36, -inf  ;;  %v16241_v9 = vpop.permute.xlu0 %5274 }
 0x438   :  { %v16229_v18 = vmul.f32 0.35355338, %v4228_v19  ;;  %18435 = vst [vmem:[#allocation54_spill] sm:$0xff] %v16241_v9 }
 0x439   :  { %v14272_v16 = vpop.f32.mrf.mxu1 }
 0x43a   :  { %v4443_v37 = vsel %vm563_vm2, %v16229_v18, -inf  ;;  %v18438_v16 = vld [vmem:[#allocation10_spill] sm:$0xff] }
 0x43b   :  { %4444 = vmax.xlane.f32.xlu1 %v4443_v37  ;;  %v4384_v39 = vpop.f32.mrf.mxu1  ;;  %4441 = vmax.xlane.f32.xlu0 %v4440_v32  ;;  %v16243_v19 = vpop.permute.xlu0 %5351  ;;  %v18442_v32 = vld [vmem:[#allocation12_spill] sm:$0xff] }
 0x43c   :  { %18436 = vst [vmem:[#allocation55_spill] sm:$0xff] %v16243_v19  ;;  %v18444_v19 = vld [vmem:[#allocation15_spill] sm:$0xff] }
 0x43d   :  { %v14282_v26 = vpop.f32.mrf.mxu1 }
 0x43e   :  { %v18441_v26 = vld [vmem:[#allocation14_spill] sm:$0xff] }
 0x43f   :  { %4447 = vmax.xlane.f32.xlu0 %v4446_v33  ;;  %v16245_v7 = vpop.permute.xlu0 %5505 }
 0x440   :  { %18437 = vst [vmem:[#allocation56_spill] sm:$0xff] %v16245_v7  ;;  %v18445_v7 = vld [vmem:[#allocation16_spill] sm:$0xff] }
 0x443   :  { %v16251_v37 = vpop.permute.xlu0 %5582 }
 0x444   :  { %18440 = vst [vmem:[#allocation57_spill] sm:$0xff] %v16251_v37 }
 0x447   :  { %v16257_v33 = vpop.permute.xlu0 %5659 }
 0x448   :  { %18443 = vst [vmem:[#allocation58_spill] sm:$0xff] %v16257_v33 }
 0x44b   :  { %v16263_v9 = vpop.permute.xlu0 %5736 }
 0x44c   :  { %6046 = vrot.lane.b32.xlu1 %v18438_v16, %s15201_s3  ;;  %18446 = vst [vmem:[#allocation59_spill] sm:$0xff] %v16263_v9 }
 0x44f   :  { %v16265_v16 = vpop.permute.xlu0 %5814 }
 0x450   :  { %6204 = vrot.lane.b32.xlu1 %v18439_v35, %s15201_s3  ;;  %18447 = vst [vmem:[#allocation60_spill] sm:$0xff] %v16265_v16 }
 0x453   :  { %v16267_v35 = vpop.permute.xlu0 %5812 }
 0x454   :  { %6202 = vrot.lane.b32.xlu1 %v18441_v26, %s15201_s3  ;;  %18448 = vst [vmem:[#allocation61_spill] sm:$0xff] %v16267_v35  ;;  %v16271_v26 = vmul.f32 0.35355338, %v4384_v39 }
 0x455   :  { %5968 = vrot.lane.b32.xlu0 %v18442_v32, %s15201_s3 }
 0x457   :  { %v16269_v37 = vpop.permute.xlu0 %5970 }
 0x458   :  { %18449 = vst [vmem:[#allocation62_spill] sm:$0xff] %v16269_v37 }
 0x459   :  { %6126 = vrot.lane.b32.xlu0 %v18444_v19, %s15201_s3  ;;  %v4449_v19 = vsel %vm563_vm2, %v16271_v26, -inf }
 0x45d   :  { %6124 = vrot.lane.b32.xlu0 %v18445_v7, %s15201_s3 }
 0x474   :  { %v4406_v10 = vpop.xlane.xlu0 %4405 }
 0x475   :  { %v4452_v32 = vsub.f32 %v16159_v30, %v4406_v10  ;;  %v16285_v30 = vpop.permute.xlu1 %5428 }
 0x476   :  { %18450 = vst [vmem:[#allocation63_spill] sm:$0xff] %v16285_v30 }
 0x477   :  { %v4468_v33 = vmul.f32 1.442695, %v4452_v32 }
 0x478   :  { %v4412_v6 = vpop.xlane.xlu0 %4411  ;;  %4450 = vmax.xlane.f32.xlu1 %v4449_v19 }
 0x479   :  { %14906 = vpow2.f32 %v4468_v33  ;;  %v4454_v7 = vsub.f32 %v16163_v21, %v4412_v6  ;;  %v16287_v19 = vpop.permute.xlu1 %5892 }
 0x47a   :  { %18451 = vst [vmem:[#allocation64_spill] sm:$0xff] %v16287_v19 }
 0x47b   :  { %v4472_v9 = vmul.f32 1.442695, %v4454_v7 }
 0x47d   :  { %14908 = vpow2.f32 %v4472_v9  ;;  %v16289_v32 = vpop.permute.xlu1 %5890 }
 0x47e   :  { %18452 = vst [vmem:[#allocation65_spill] sm:$0xff] %v16289_v32 }
 0x481   :  { %v16291_v6 = vpop.permute.xlu1 %6048 }
 0x482   :  { %18453 = vst [vmem:[#allocation66_spill] sm:$0xff] %v16291_v6 }
 0x486   :  { %v16277_v16 = vpop.eup %14906 }
 0x487   :  { %v4500_v39 = vsel %vm563_vm2, %v16277_v16, 0.0 }
 0x488   :  { %4501 = vadd.xlane.f32.xlu0 %v4500_v39 }
 0x48a   :  { %v16281_v37 = vpop.eup %14908 }
 0x48b   :  { %v4506_v10 = vsel %vm563_vm2, %v16281_v37, 0.0 }
 0x48c   :  { %4507 = vadd.xlane.f32.xlu0 %v4506_v10 }
 0x4ac   :  { %v4409_v21 = vpop.xlane.xlu1 %4408 }
 0x4ad   :  { %v4453_v9 = vsub.f32 %v16179_v34, %v4409_v21 }
 0x4af   :  { %v4470_v7 = vmul.f32 1.442695, %v4453_v9 }
 0x4b0   :  { %v4415_v33 = vpop.xlane.xlu0 %4414 }
 0x4b1   :  { %14910 = vpow2.f32 %v4470_v7  ;;  %v4455_v39 = vsub.f32 %v16185_v14, %v4415_v33 }
 0x4b3   :  { %v4474_v35 = vmul.f32 1.442695, %v4455_v39 }
 0x4b4   :  { %v4421_v40 = vpop.xlane.xlu1 %4420  ;;  %v4418_v62 = vpop.xlane.xlu0 %4417 }
 0x4b5   :  { %14912 = vpow2.f32 %v4474_v35  ;;  %v4457_v10 = vsub.f32 %v16193_v11, %v4421_v40  ;;  %v4456_v19 = vsub.f32 %v16187_v5, %v4418_v62 }
 0x4b7   :  { %v4478_v30 = vmul.f32 1.442695, %v4457_v10  ;;  %v4476_v32 = vmul.f32 1.442695, %v4456_v19 }
 0x4b8   :  { %v4427_v22 = vpop.xlane.xlu1 %4426  ;;  %v4424_v6 = vpop.xlane.xlu0 %4423 }
 0x4b9   :  { %14914 = vpow2.f32 %v4478_v30  ;;  %v4459_v34 = vsub.f32 %v16201_v15, %v4427_v22  ;;  %v4458_v21 = vsub.f32 %v16195_v25, %v4424_v6 }
 0x4ba   :  { %14916 = vpow2.f32 %v4476_v32 }
 0x4bb   :  { %v4482_v9 = vmul.f32 1.442695, %v4459_v34  ;;  %v4480_v14 = vmul.f32 1.442695, %v4458_v21 }
 0x4bc   :  { %v4433_v7 = vpop.xlane.xlu1 %4432  ;;  %v4430_v33 = vpop.xlane.xlu0 %4429 }
 0x4bd   :  { %14918 = vpow2.f32 %v4482_v9  ;;  %v4461_v35 = vsub.f32 %v16211_v29, %v4433_v7  ;;  %v4460_v40 = vsub.f32 %v16205_v20, %v4430_v33 }
 0x4be   :  { %v16301_v62 = vpop.eup %14910  ;;  %14920 = vpow2.f32 %v4480_v14 }
 0x4bf   :  { %v4486_v5 = vmul.f32 1.442695, %v4461_v35  ;;  %v4484_v11 = vmul.f32 1.442695, %v4460_v40  ;;  %v4503_v22 = vsel %vm563_vm2, %v16301_v62, 0.0 }
 0x4c0   :  { %v4439_v15 = vpop.xlane.xlu1 %4438  ;;  %4504 = vadd.xlane.f32.xlu1 %v4503_v22  ;;  %v4436_v25 = vpop.xlane.xlu0 %4435 }
 0x4c1   :  { %14922 = vpow2.f32 %v4486_v5  ;;  %v4463_v30 = vsub.f32 %v16221_v38, %v4439_v15  ;;  %v4462_v19 = vsub.f32 %v16213_v28, %v4436_v25 }
 0x4c2   :  { %v16307_v32 = vpop.eup %14912  ;;  %14924 = vpow2.f32 %v4484_v11 }
 0x4c3   :  { %v4490_v29 = vmul.f32 1.442695, %v4463_v30  ;;  %v4488_v20 = vmul.f32 1.442695, %v4462_v19  ;;  %v4509_v6 = vsel %vm563_vm2, %v16307_v32, 0.0 }
 0x4c4   :  { %4510 = vadd.xlane.f32.xlu1 %v4509_v6  ;;  %v4442_v39 = vpop.xlane.xlu0 %4441 }
 0x4c5   :  { %14926 = vpow2.f32 %v4490_v29  ;;  %v4464_v10 = vsub.f32 %v16223_v24, %v4442_v39 }
 0x4c6   :  { %v16312_v34 = vpop.eup %14914  ;;  %14928 = vpow2.f32 %v4488_v20  ;;  %v4445_v20 = vpop.xlane.xlu1 %4444 }
 0x4c7   :  { %v16314_v21 = vpop.eup %14916  ;;  %v4492_v38 = vmul.f32 1.442695, %v4464_v10  ;;  %v4515_v28 = vsel %vm563_vm2, %v16312_v34, 0.0  ;;  %v4465_v10 = vsub.f32 %v16229_v18, %v4445_v20 }
 0x4c8   :  { %4516 = vadd.xlane.f32.xlu1 %v4515_v28  ;;  %v4512_v9 = vsel %vm563_vm2, %v16314_v21, 0.0 }
 0x4c9   :  { %4513 = vadd.xlane.f32.xlu0 %v4512_v9  ;;  %14930 = vpow2.f32 %v4492_v38  ;;  %v4448_v38 = vpop.xlane.xlu0 %4447  ;;  %v4494_v28 = vmul.f32 1.442695, %v4465_v10 }
 0x4ca   :  { %v16320_v14 = vpop.eup %14918  ;;  %v16356_v6 = vpop.permute.xlu1 %6046  ;;  %v4466_v9 = vsub.f32 %v16233_v36, %v4448_v38 }
 0x4cb   :  { %v16322_v7 = vpop.eup %14920  ;;  %v4521_v24 = vsel %vm563_vm2, %v16320_v14, 0.0  ;;  %14932 = vpow2.f32 %v4494_v28 }
 0x4cc   :  { %4522 = vadd.xlane.f32.xlu1 %v4521_v24  ;;  %v4518_v33 = vsel %vm563_vm2, %v16322_v7, 0.0 }
 0x4cd   :  { %4519 = vadd.xlane.f32.xlu0 %v4518_v33  ;;  %v4496_v33 = vmul.f32 1.442695, %v4466_v9 }
 0x4ce   :  { %v16328_v35 = vpop.eup %14922  ;;  %v16360_v39 = vpop.permute.xlu1 %6204 }
 0x4cf   :  { %v16330_v40 = vpop.eup %14924  ;;  %v4527_v5 = vsel %vm563_vm2, %v16328_v35, 0.0  ;;  %14934 = vpow2.f32 %v4496_v33 }
 0x4d0   :  { %4528 = vadd.xlane.f32.xlu1 %v4527_v5  ;;  %v4524_v11 = vsel %vm563_vm2, %v16330_v40, 0.0  ;;  %v16372_v5 = vpop.permute.xlu0 %5968 }
 0x4d1   :  { %4525 = vadd.xlane.f32.xlu0 %v4524_v11 }
 0x4d2   :  { %v16336_v22 = vpop.eup %14926  ;;  %v16368_v24 = vpop.permute.xlu1 %6202 }
 0x4d3   :  { %v16338_v15 = vpop.eup %14928  ;;  %v4533_v25 = vsel %vm563_vm2, %v16336_v22, 0.0 }
 0x4d4   :  { %4534 = vadd.xlane.f32.xlu1 %v4533_v25  ;;  %v4530_v30 = vsel %vm563_vm2, %v16338_v15, 0.0 }
 0x4d5   :  { %4531 = vadd.xlane.f32.xlu0 %v4530_v30  ;;  %v16377_v30 = vpop.permute.xlu0 %6126 }
 0x4d6   :  { %v16344_v19 = vpop.eup %14930 }
 0x4d7   :  { %v4536_v29 = vsel %vm563_vm2, %v16344_v19, 0.0 }
 0x4d8   :  { %v16383_v36 = vpop.eup %14932 }
 0x4d9   :  { %4537 = vadd.xlane.f32.xlu0 %v4536_v29  ;;  %v16385_v29 = vpop.permute.xlu0 %6124 }
 0x4dc   :  { %v16391_v20 = vpop.eup %14934 }
 0x4dd   :  { %v4542_v38 = vsel %vm563_vm2, %v16391_v20, 0.0 }
 0x4e5   :  { %6360 = vrot.lane.b32.xlu1 %v15505_v41, %s15201_s3 }
 0x4e9   :  { %6358 = vrot.lane.b32.xlu1 %v15507_v42, %s15201_s3 }
 0x4ed   :  { %6516 = vrot.lane.b32.xlu1 %v15524_v45, %s15201_s3 }
 0x4ef   :  { %6282 = vrot.lane.b32.xlu0 %v15513_v43, %s15201_s3 }
 0x4f3   :  { %6280 = vrot.lane.b32.xlu0 %v15515_v44, %s15201_s3 }
 0x4f7   :  { %6438 = vrot.lane.b32.xlu0 %v15532_v47, %s15201_s3 }
 0x4fb   :  { %6436 = vrot.lane.b32.xlu0 %v15534_v48, %s15201_s3 }
 0x4ff   :  { %6594 = vrot.lane.b32.xlu0 %v15552_v51, %s15201_s3 }
 0x501   :  { %v4451_v11 = vpop.xlane.xlu1 %4450 }
 0x502   :  { %v4467_v25 = vsub.f32 %v16271_v26, %v4451_v11  ;;  %v4539_v26 = vsel %vm563_vm2, %v16383_v36, 0.0 }
 0x503   :  { %6592 = vrot.lane.b32.xlu0 %v15554_v52, %s15201_s3 }
 0x504   :  { %v4498_v18 = vmul.f32 1.442695, %v4467_v25 }
 0x506   :  { %14936 = vpow2.f32 %v4498_v18 }
 0x507   :  { %6750 = vrot.lane.b32.xlu0 %v15573_v55, %s15201_s3 }
 0x50b   :  { %6748 = vrot.lane.b32.xlu0 %v15576_v56, %s15201_s3 }
 0x50f   :  { %6906 = vrot.lane.b32.xlu0 %v15595_v59, %s15201_s3 }
 0x511   :  { %v4502_v10 = vpop.xlane.xlu0 %4501  ;;  %4540 = vadd.xlane.f32.xlu1 %v4539_v26 }
 0x512   :  { %14938 = vrcp.f32 %v4502_v10  ;;  %v18457_v10 = vld [vmem:[#allocation26_spill] sm:$0xff] }
 0x513   :  { %6904 = vrot.lane.b32.xlu0 %v15598_v60, %s15201_s3  ;;  %v16397_v28 = vpop.eup %14936 }
 0x514   :  { %v4545_v33 = vsel %vm563_vm2, %v16397_v28, 0.0 }
 0x515   :  { %v4508_v9 = vpop.xlane.xlu0 %4507  ;;  %4543 = vadd.xlane.f32.xlu1 %v4542_v38  ;;  %v18458_v38 = vld [vmem:[#allocation5_spill] sm:$0xff] }
 0x516   :  { %14940 = vrcp.f32 %v4508_v9 }
 0x517   :  { %7328 = vrot.lane.b32.xlu0 %v15607_v61, %s15201_s3 }
 0x519   :  { %4546 = vadd.xlane.f32.xlu1 %v4545_v33  ;;  %v18459_v33 = vld [vmem:[#allocation27_spill] sm:$0xff] }
 0x51b   :  { %7404 = vrot.lane.b32.xlu0 %v15658_v0, %s15201_s3 }
 0x51f   :  { %v14939_v11 = vpop.eup %14938  ;;  %7480 = vrot.lane.b32.xlu0 %v15656_v63, %s15201_s3 }
 0x520   :  { %v4564_v25 = vmul.f32 %v14939_v11, %v16277_v16  ;;  %v18456_v16 = vld [vmem:[#allocation25_spill] sm:$0xff]  ;;  %v18460_v11 = vld [vmem:[#allocation6_spill] sm:$0xff] }
 0x522   :  { %14286 = vmatmul.mubr.msk.f32.vlgmr.msra.gmra.mxu0 %vm563_vm2, %v4564_v25 }
 0x523   :  { %v14941_v18 = vpop.eup %14940  ;;  %14294 = vmatpush3.msra.mxu0 %v16171_v23  ;;  %7556 = vrot.lane.b32.xlu0 %v15662_v2, %s15201_s3  ;;  %v18455_v23 = vld [vmem:[#allocation18_spill] sm:$0xff] }
 0x524   :  { %14295 = vmatprep.mubr.msk.f32.mxu0 %vm15199_vm1, %v18396_v13  ;;  %14303 = vmatprep.subr.mxu0 %v18396_v13  ;;  %v4566_v26 = vmul.f32 %v14941_v18, %v16281_v37 }
 0x526   :  { %14296 = vmatmul.mubr.msk.f32.vlgmr.msra.gmra.mxu0 %vm563_vm2, %v4566_v26  ;;  %v18461_v26 = vld [vmem:[#allocation7_spill] sm:$0xff] }
 0x527   :  { %14304 = vmatpush3.msra.mxu0 %v16181_v31  ;;  %7632 = vrot.lane.b32.xlu0 %v15660_v1, %s15201_s3  ;;  %v18454_v31 = vld [vmem:[#allocation31_spill] sm:$0xff] }
 0x528   :  { %14305 = vmatprep.mubr.msk.f32.mxu0 %vm15199_vm1, %v18396_v13  ;;  %14313 = vmatprep.subr.mxu0 %v18396_v13 }
 0x52a   :  { %6514 = vrot.lane.b32.xlu1 %v15526_v46, %s15201_s3 }
 0x52b   :  { %7708 = vrot.lane.b32.xlu0 %v15666_v4, %s15201_s3 }
 0x52e   :  { %6672 = vrot.lane.b32.xlu1 %v15543_v49, %s15201_s3 }
 0x52f   :  { %7784 = vrot.lane.b32.xlu0 %v15664_v3, %s15201_s3 }
 0x532   :  { %6670 = vrot.lane.b32.xlu1 %v15545_v50, %s15201_s3 }
 0x533   :  { %7860 = vrot.lane.b32.xlu0 %v15674_v8, %s15201_s3 }
 0x536   :  { %6828 = vrot.lane.b32.xlu1 %v15563_v53, %s15201_s3 }
 0x537   :  { %8012 = vrot.lane.b32.xlu0 %v15684_v17, %s15201_s3 }
 0x53a   :  { %6826 = vrot.lane.b32.xlu1 %v15565_v54, %s15201_s3 }
 0x53b   :  { %8088 = vrot.lane.b32.xlu0 %v15678_v12, %s15201_s3 }
 0x53e   :  { %6984 = vrot.lane.b32.xlu1 %v15585_v57, %s15201_s3 }
 0x53f   :  { %8164 = vrot.lane.b32.xlu0 %v15696_v27, %s15201_s3 }
 0x542   :  { %6982 = vrot.lane.b32.xlu1 %v15587_v58, %s15201_s3 }
 0x543   :  { %8240 = vrot.lane.b32.xlu0 %v18454_v31, %s15201_s3 }
 0x546   :  { %7252 = vrot.lane.b32.xlu1 %v18455_v23, %s15201_s3 }
 0x547   :  { %8392 = vrot.lane.b32.xlu0 %v18456_v16, %s15201_s3 }
 0x549   :  { %v4505_v37 = vpop.xlane.xlu1 %4504 }
 0x54a   :  { %14942 = vrcp.f32 %v4505_v37  ;;  %7936 = vrot.lane.b32.xlu1 %v18457_v10, %s15201_s3  ;;  %v18462_v37 = vld [vmem:[#allocation9_spill] sm:$0xff] }
 0x54b   :  { %8548 = vrot.lane.b32.xlu0 %v18458_v38, %s15202_s23 }
 0x54d   :  { %v4511_v9 = vpop.xlane.xlu1 %4510 }
 0x54e   :  { %14944 = vrcp.f32 %v4511_v9  ;;  %8316 = vrot.lane.b32.xlu1 %v18459_v33, %s15201_s3  ;;  %v18463_v9 = vld [vmem:[#allocation8_spill] sm:$0xff] }
 0x54f   :  { %8546 = vrot.lane.b32.xlu0 %v18460_v11, %s15202_s23  ;;  %v18464_v11 = vld [vmem:[#allocation10_spill] sm:$0xff] }
 0x551   :  { %v4517_v25 = vpop.xlane.xlu1 %4516 }
 0x552   :  { %14946 = vrcp.f32 %v4517_v25  ;;  %v4514_v18 = vpop.xlane.xlu0 %4513  ;;  %8470 = vrot.lane.b32.xlu1 %v18461_v26, %s15202_s23 }
 0x553   :  { %14948 = vrcp.f32 %v4514_v18  ;;  %8704 = vrot.lane.b32.xlu0 %v18462_v37, %s15202_s23  ;;  %v18465_v18 = vld [vmem:[#allocation11_spill] sm:$0xff]  ;;  %v18466_v37 = vld [vmem:[#allocation49_spill] sm:$0xff] }
 0x555   :  { %v4523_v17 = vpop.xlane.xlu1 %4522 }
 0x556   :  { %14950 = vrcp.f32 %v4523_v17  ;;  %v4520_v38 = vpop.xlane.xlu0 %4519  ;;  %8468 = vrot.lane.b32.xlu1 %v18463_v9, %s15202_s23 }
 0x557   :  { %v14943_v16 = vpop.eup %14942  ;;  %14952 = vrcp.f32 %v4520_v38  ;;  %8702 = vrot.lane.b32.xlu0 %v18464_v11, %s15202_s23  ;;  %v18468_v11 = vld [vmem:[#allocation50_spill] sm:$0xff] }
 0x558   :  { %v4565_v25 = vmul.f32 %v14943_v16, %v16301_v62 }
 0x559   :  { %v4529_v33 = vpop.xlane.xlu1 %4528 }
 0x55a   :  { %14954 = vrcp.f32 %v4529_v33  ;;  %v4526_v26 = vpop.xlane.xlu0 %4525  ;;  %14291 = vmatmul.mubr.msk.f32.vlgmr.msra.gmra.mxu1 %vm563_vm2, %v4565_v25  ;;  %8626 = vrot.lane.b32.xlu1 %v18465_v18, %s15202_s23  ;;  %v18467_v33 = vld [vmem:[#allocation12_spill] sm:$0xff] }
 0x55b   :  { %v14945_v17 = vpop.eup %14944  ;;  %14956 = vrcp.f32 %v4526_v26  ;;  %14299 = vmatpush3.msra.mxu1 %v18466_v37  ;;  %14300 = vmatprep.mubr.msk.f32.mxu1 %vm15199_vm1, %v18396_v13 }
 0x55c   :  { %14308 = vmatprep.subr.mxu1 %v18396_v13  ;;  %v4567_v38 = vmul.f32 %v14945_v17, %v16307_v32  ;;  %v18469_v17 = vld [vmem:[#allocation15_spill] sm:$0xff] }
 0x55d   :  { %v4535_v62 = vpop.xlane.xlu1 %4534 }
 0x55e   :  { %14958 = vrcp.f32 %v4535_v62  ;;  %v4532_v16 = vpop.xlane.xlu0 %4531  ;;  %14301 = vmatmul.mubr.msk.f32.vlgmr.msra.gmra.mxu1 %vm563_vm2, %v4567_v38  ;;  %8624 = vrot.lane.b32.xlu1 %v18467_v33, %s15202_s23  ;;  %v18470_v38 = vld [vmem:[#allocation52_spill] sm:$0xff] }
 0x55f   :  { %v14947_v9 = vpop.eup %14946  ;;  %14960 = vrcp.f32 %v4532_v16  ;;  %14309 = vmatpush3.msra.mxu1 %v18468_v11  ;;  %14310 = vmatprep.mubr.msk.f32.mxu1 %vm15199_vm1, %v18396_v13  ;;  %v18471_v16 = vld [vmem:[#allocation51_spill] sm:$0xff] }
 0x560   :  { %v14949_v25 = vpop.eup %14948  ;;  %14318 = vmatprep.subr.mxu1 %v18396_v13  ;;  %v4569_v32 = vmul.f32 %v14947_v9, %v16312_v34  ;;  %v18472_v9 = vld [vmem:[#allocation54_spill] sm:$0xff] }
 0x561   :  { %v4568_v26 = vmul.f32 %v14949_v25, %v16314_v21  ;;  %v18473_v25 = vld [vmem:[#allocation53_spill] sm:$0xff] }
 0x562   :  { %v4538_v18 = vpop.xlane.xlu0 %4537  ;;  %14311 = vmatmul.mubr.msk.f32.vlgmr.msra.gmra.mxu1 %vm563_vm2, %v4569_v32  ;;  %8782 = vrot.lane.b32.xlu1 %v18469_v17, %s15202_s23  ;;  %v18475_v17 = vld [vmem:[#allocation55_spill] sm:$0xff] }
 0x563   :  { %v14951_v37 = vpop.eup %14950  ;;  %14962 = vrcp.f32 %v4538_v18  ;;  %14319 = vmatpush3.msra.mxu1 %v18470_v38  ;;  %14306 = vmatmul.mubr.msk.f32.vlgmr.msra.gmra.mxu0 %vm563_vm2, %v4568_v26  ;;  %v18474_v26 = vld [vmem:[#allocation63_spill] sm:$0xff] }
 0x564   :  { %v14953_v62 = vpop.eup %14952  ;;  %14314 = vmatpush3.msra.mxu0 %v18471_v16  ;;  %14320 = vmatprep.mubr.msk.f32.mxu1 %vm15199_vm1, %v18396_v13  ;;  %v4571_v34 = vmul.f32 %v14951_v37, %v16320_v14  ;;  %v18476_v37 = vld [vmem:[#allocation57_spill] sm:$0xff]  ;;  %v6361_v16 = vpop.permute.xlu1 %6360 }
 0x565   :  { %14328 = vmatprep.subr.mxu1 %v18396_v13  ;;  %14315 = vmatprep.mubr.msk.f32.mxu0 %vm15199_vm1, %v18396_v13  ;;  %v4570_v21 = vmul.f32 %v14953_v62, %v16322_v7  ;;  %v18477_v62 = vld [vmem:[#allocation56_spill] sm:$0xff] }
 0x566   :  { %14323 = vmatprep.subr.mxu0 %v18396_v13  ;;  %14321 = vmatmul.mubr.msk.f32.vlgmr.msra.gmra.mxu1 %vm563_vm2, %v4571_v34 }
 0x567   :  { %v14955_v33 = vpop.eup %14954  ;;  %14316 = vmatmul.mubr.msk.f32.vlgmr.msra.gmra.mxu0 %vm563_vm2, %v4570_v21  ;;  %14329 = vmatpush3.msra.mxu1 %v18472_v9 }
 0x568   :  { %v14957_v11 = vpop.eup %14956  ;;  %14324 = vmatpush3.msra.mxu0 %v18473_v25  ;;  %14330 = vmatprep.mubr.msk.f32.mxu1 %vm15199_vm1, %v18396_v13  ;;  %v4573_v14 = vmul.f32 %v14955_v33, %v16328_v35  ;;  %v16543_v34 = vpop.permute.xlu1 %6358 }
 0x569   :  { %14338 = vmatprep.subr.mxu1 %v18396_v13  ;;  %14325 = vmatprep.mubr.msk.f32.mxu0 %vm15199_vm1, %v18396_v13  ;;  %v4572_v7 = vmul.f32 %v14957_v11, %v16330_v40 }
 0x56a   :  { %14333 = vmatprep.subr.mxu0 %v18396_v13  ;;  %14331 = vmatmul.mubr.msk.f32.vlgmr.msra.gmra.mxu1 %vm563_vm2, %v4573_v14 }
 0x56b   :  { %v14959_v32 = vpop.eup %14958  ;;  %14326 = vmatmul.mubr.msk.f32.vlgmr.msra.gmra.mxu0 %vm563_vm2, %v4572_v7  ;;  %14339 = vmatpush3.msra.mxu1 %v18474_v26 }
 0x56c   :  { %v14961_v18 = vpop.eup %14960  ;;  %14334 = vmatpush3.msra.mxu0 %v18475_v17  ;;  %14335 = vmatprep.mubr.msk.f32.mxu0 %vm15199_vm1, %v18396_v13  ;;  %v4575_v35 = vmul.f32 %v14959_v32, %v16336_v22  ;;  %v16545_v21 = vpop.permute.xlu1 %6516 }
 0x56d   :  { %14340 = vmatprep.mubr.msk.f32.mxu1 %vm15199_vm1, %v18396_v13  ;;  %14343 = vmatprep.subr.mxu0 %v18396_v13  ;;  %v4574_v40 = vmul.f32 %v14961_v18, %v16338_v15  ;;  %v18478_v15 = vld [vmem:[#allocation58_spill] sm:$0xff] }
 0x56e   :  { %14348 = vmatprep.subr.mxu1 %v18396_v13  ;;  %14341 = vmatmul.mubr.msk.f32.vlgmr.msra.gmra.mxu1 %vm563_vm2, %v4575_v35 }
 0x56f   :  { %14336 = vmatmul.mubr.msk.f32.vlgmr.msra.gmra.mxu0 %vm563_vm2, %v4574_v40  ;;  %14349 = vmatpush3.msra.mxu1 %v18476_v37  ;;  %v18479_v40 = vld [vmem:[#allocation59_spill] sm:$0xff] }
 0x570   :  { %v14963_v38 = vpop.eup %14962  ;;  %14344 = vmatpush3.msra.mxu0 %v18477_v62  ;;  %14345 = vmatprep.mubr.msk.f32.mxu0 %vm15199_vm1, %v18396_v13 }
 0x571   :  { %14353 = vmatprep.subr.mxu0 %v18396_v13  ;;  %v4576_v22 = vmul.f32 %v14963_v38, %v16344_v19  ;;  %14350 = vmatprep.mubr.msk.f32.mxu1 %vm15199_vm1, %v18396_v13  ;;  %v6283_v19 = vpop.permute.xlu0 %6282 }
 0x572   :  { %14358 = vmatprep.subr.mxu1 %v18396_v13 }
 0x573   :  { %14346 = vmatmul.mubr.msk.f32.vlgmr.msra.gmra.mxu0 %vm563_vm2, %v4576_v22  ;;  %v18480_v22 = vld [vmem:[#allocation60_spill] sm:$0xff] }
 0x574   :  { %14354 = vmatpush3.msra.mxu0 %v18478_v15  ;;  %14355 = vmatprep.mubr.msk.f32.mxu0 %vm15199_vm1, %v18396_v13 }
 0x575   :  { %14363 = vmatprep.subr.mxu0 %v18396_v13  ;;  %v6281_v9 = vpop.permute.xlu0 %6280 }
 0x579   :  { %v6439_v14 = vpop.permute.xlu0 %6438 }
 0x57d   :  { %v6437_v26 = vpop.permute.xlu0 %6436 }
 0x581   :  { %v6595_v38 = vpop.permute.xlu0 %6594 }
 0x59a   :  { %v4541_v33 = vpop.xlane.xlu1 %4540 }
 0x59b   :  { %14964 = vrcp.f32 %v4541_v33  ;;  %v18482_v33 = vld [vmem:[#allocation64_spill] sm:$0xff] }
 0x59e   :  { %v4544_v11 = vpop.xlane.xlu1 %4543 }
 0x59f   :  { %14966 = vrcp.f32 %v4544_v11  ;;  %v18483_v11 = vld [vmem:[#allocation62_spill] sm:$0xff] }
 0x5a2   :  { %v4547_v25 = vpop.xlane.xlu1 %4546 }
 0x5a3   :  { %14968 = vrcp.f32 %v4547_v25  ;;  %v6593_v25 = vpop.permute.xlu0 %6592 }
 0x5a6   :  { %v16547_v7 = vpop.permute.xlu1 %6514 }
 0x5a8   :  { %v14965_v32 = vpop.eup %14964 }
 0x5a9   :  { %v4577_v18 = vmul.f32 %v14965_v32, %v16383_v36  ;;  %v18484_v32 = vld [vmem:[#allocation65_spill] sm:$0xff] }
 0x5aa   :  { %v16550_v17 = vpop.permute.xlu1 %6672 }
 0x5ab   :  { %14351 = vmatmul.mubr.msk.f32.vlgmr.msra.gmra.mxu1 %vm563_vm2, %v4577_v18  ;;  %v18485_v18 = vld [vmem:[#allocation66_spill] sm:$0xff] }
 0x5ac   :  { %v14967_v35 = vpop.eup %14966  ;;  %14359 = vmatpush3.msra.mxu1 %v18479_v40  ;;  %14360 = vmatprep.mubr.msk.f32.mxu1 %vm15199_vm1, %v18396_v13 }
 0x5ad   :  { %v4578_v37 = vmul.f32 %v14967_v35, %v16391_v20  ;;  %14368 = vmatprep.subr.mxu1 %v18396_v13  ;;  %v18481_v20 = vld [vmem:[#allocation61_spill] sm:$0xff]  ;;  %v6751_v35 = vpop.permute.xlu0 %6750 }
 0x5ae   :  { %v6671_v36 = vpop.permute.xlu1 %6670 }
 0x5af   :  { %14356 = vmatmul.mubr.msk.f32.vlgmr.msra.gmra.mxu0 %vm563_vm2, %v4578_v37 }
 0x5b0   :  { %v14969_v62 = vpop.eup %14968  ;;  %14364 = vmatpush3.xpose.msk.msra.mxu0 %vm563_vm2, %v18480_v22  ;;  %14365 = vmatprep.mubr.msk.f32.mxu0 %vm15199_vm1, %v18396_v13 }
 0x5b1   :  { %14373 = vmatprep.subr.mxu0 %v18396_v13  ;;  %v4579_v15 = vmul.f32 %v14969_v62, %v16397_v28 }
 0x5b2   :  { %v6829_v28 = vpop.permute.xlu1 %6828 }
 0x5b3   :  { %14361 = vmatmul.mubr.msk.f32.vlgmr.msra.gmra.mxu1 %vm563_vm2, %v4579_v15  ;;  %14366 = vmatmul.mubr.msk.f32.vlgmr.msra.gmra.mxu0 %vm563_vm2, %v18481_v20 }
 0x5b4   :  { %14369 = vmatpush3.xpose.msk.msra.mxu1 %vm563_vm2, %v18482_v33  ;;  %14374 = vmatpush3.xpose.msk.msra.mxu0 %vm563_vm2, %v18483_v11 }
 0x5b5   :  { %14370 = vmatprep.mubr.msk.f32.mxu1 %vm15199_vm1, %v18396_v13  ;;  %14378 = vmatprep.subr.mxu1 %v18396_v13 }
 0x5b6   :  { %14375 = vmatprep.mubr.msk.f32.mxu0 %vm15199_vm1, %v18396_v13  ;;  %14383 = vmatprep.subr.mxu0 %v18396_v13 }
 0x5b7   :  { %14371 = vmatmul.mubr.msk.f32.vlgmr.msra.gmra.mxu1 %vm563_vm2, %v18484_v32  ;;  %14376 = vmatmul.mubr.msk.f32.vlgmr.msra.gmra.mxu0 %vm563_vm2, %v16372_v5  ;;  %v6827_v5 = vpop.permute.xlu1 %6826 }
 0x5b8   :  { %14379 = vmatpush3.xpose.msk.msra.mxu1 %vm563_vm2, %v18485_v18  ;;  %14384 = vmatpush3.xpose.msk.msra.mxu0 %vm563_vm2, %v16377_v30 }
 0x5b9   :  { %14380 = vmatprep.mubr.msk.f32.mxu1 %vm15199_vm1, %v18396_v13  ;;  %14388 = vmatprep.subr.mxu1 %v18396_v13 }
 0x5ba   :  { %14385 = vmatprep.mubr.msk.f32.mxu0 %vm15199_vm1, %v18396_v13  ;;  %14393 = vmatprep.subr.mxu0 %v18396_v13 }
 0x5bb   :  { %14381 = vmatmul.mubr.msk.f32.vlgmr.msra.gmra.mxu1 %vm563_vm2, %v16356_v6  ;;  %14386 = vmatmul.mubr.msk.f32.vlgmr.msra.gmra.mxu0 %vm563_vm2, %v16385_v29  ;;  %v6749_v6 = vpop.permute.xlu0 %6748 }
 0x5bc   :  { %14389 = vmatpush3.xpose.msk.msra.mxu1 %vm563_vm2, %v16360_v39  ;;  %14394 = vmatpush3.xpose.msk.msra.mxu0 %vm563_vm2, %v6283_v19  ;;  %v6985_v39 = vpop.permute.xlu1 %6984 }
 0x5bd   :  { %14390 = vmatprep.mubr.msk.f32.mxu1 %vm15199_vm1, %v18396_v13  ;;  %14398 = vmatprep.subr.mxu1 %v18396_v13 }
 0x5be   :  { %14395 = vmatprep.mubr.msk.f32.mxu0 %vm15199_vm1, %v18396_v13  ;;  %14403 = vmatprep.subr.mxu0 %v18396_v13 }
 0x5bf   :  { %14391 = vmatmul.mubr.msk.f32.vlgmr.msra.gmra.mxu1 %vm563_vm2, %v16368_v24  ;;  %14396 = vmatmul.mubr.msk.f32.vlgmr.msra.gmra.mxu0 %vm563_vm2, %v6281_v9  ;;  %v6907_v24 = vpop.permute.xlu0 %6906 }
 0x5c0   :  { %14399 = vmatpush3.xpose.msk.msra.mxu1 %vm563_vm2, %v6361_v16  ;;  %14404 = vmatpush3.xpose.msk.msra.mxu0 %vm563_vm2, %v6439_v14  ;;  %v6983_v30 = vpop.permute.xlu1 %6982 }
 0x5c1   :  { %14400 = vmatprep.mubr.msk.f32.mxu1 %vm15199_vm1, %v18396_v13  ;;  %14408 = vmatprep.subr.mxu1 %v18396_v13 }
 0x5c2   :  { %14405 = vmatprep.mubr.msk.f32.mxu0 %vm15199_vm1, %v18396_v13  ;;  %14413 = vmatprep.subr.mxu0 %v18396_v13 }
 0x5c3   :  { %14401 = vmatmul.mubr.msk.f32.vlgmr.msra.gmra.mxu1 %vm563_vm2, %v16543_v34  ;;  %14406 = vmatmul.mubr.msk.f32.vlgmr.msra.gmra.mxu0 %vm563_vm2, %v6437_v26  ;;  %v6905_v29 = vpop.permute.xlu0 %6904 }
 0x5c4   :  { %14409 = vmatpush3.xpose.msk.msra.mxu1 %vm563_vm2, %v16545_v21  ;;  %14414 = vmatpush3.xpose.msk.msra.mxu0 %vm563_vm2, %v6595_v38  ;;  %v7253_v16 = vpop.permute.xlu1 %7252 }
 0x5c5   :  { %14410 = vmatprep.mubr.msk.f32.mxu1 %vm15199_vm1, %v18396_v13  ;;  %14418 = vmatprep.subr.mxu1 %v18396_v13 }
 0x5c6   :  { %14415 = vmatprep.mubr.msk.f32.mxu0 %vm15199_vm1, %v18396_v13  ;;  %14423 = vmatprep.subr.mxu0 %v18396_v13 }
 0x5c7   :  { %14411 = vmatmul.mubr.msk.f32.vlgmr.msra.gmra.mxu1 %vm563_vm2, %v16547_v7  ;;  %14416 = vmatmul.mubr.msk.f32.vlgmr.msra.gmra.mxu0 %vm563_vm2, %v6593_v25  ;;  %v7329_v34 = vpop.permute.xlu0 %7328 }
 0x5c8   :  { %14419 = vmatpush3.xpose.msk.msra.mxu1 %vm563_vm2, %v16550_v17  ;;  %14424 = vmatpush3.xpose.msk.msra.mxu0 %vm563_vm2, %v6751_v35 }
 0x5c9   :  { %14420 = vmatprep.mubr.msk.f32.mxu1 %vm15199_vm1, %v18396_v13  ;;  %14428 = vmatprep.subr.mxu1 %v18396_v13 }
 0x5ca   :  { %14425 = vmatprep.mubr.msk.f32.mxu0 %vm15199_vm1, %v18396_v13  ;;  %14433 = vmatprep.subr.mxu0 %v18396_v13 }
 0x5cb   :  { %14421 = vmatmul.mubr.msk.f32.vlgmr.msra.gmra.mxu1 %vm563_vm2, %v6671_v36  ;;  %14426 = vmatmul.mubr.msk.f32.vlgmr.msra.gmra.mxu0 %vm563_vm2, %v6749_v6 }
 0x5cc   :  { %14429 = vmatpush3.xpose.msk.msra.mxu1 %vm563_vm2, %v6829_v28  ;;  %14434 = vmatpush3.xpose.msk.msra.mxu0 %vm563_vm2, %v6907_v24 }
 0x5cd   :  { %14430 = vmatprep.mubr.msk.f32.mxu1 %vm15199_vm1, %v18396_v13  ;;  %14438 = vmatprep.subr.mxu1 %v18396_v13 }
 0x5ce   :  { %14435 = vmatprep.mubr.msk.f32.mxu0 %vm15199_vm1, %v18396_v13  ;;  %14443 = vmatprep.subr.mxu0 %v18396_v13 }
 0x5cf   :  { %14431 = vmatmul.mubr.msk.f32.vlgmr.msra.gmra.mxu1 %vm563_vm2, %v6827_v5  ;;  %14436 = vmatmul.mubr.msk.f32.vlgmr.msra.gmra.mxu0 %vm563_vm2, %v6905_v29 }
 0x5d0   :  { %14439 = vmatpush3.xpose.msk.msra.mxu1 %vm563_vm2, %v6985_v39  ;;  %14444 = vmatpush3.msra.mxu0 %v7253_v16 }
 0x5d1   :  { %14440 = vmatprep.mubr.msk.f32.mxu1 %vm15199_vm1, %v18396_v13  ;;  %14448 = vmatprep.subr.mxu1 %v18396_v13 }
 0x5d2   :  { %14445 = vmatprep.mubr.msk.f32.mxu0 %vm15199_vm1, %v18396_v13  ;;  %14453 = vmatprep.subr.mxu0 %v18396_v13 }
 0x5d3   :  { %14441 = vmatmul.mubr.msk.f32.vlgmr.msra.gmra.mxu1 %vm563_vm2, %v6983_v30 }
 0x5d4   :  { %14449 = vmatpush3.msra.mxu1 %v7329_v34  ;;  %14450 = vmatprep.mubr.msk.f32.mxu1 %vm15199_vm1, %v18396_v13 }
 0x5d5   :  { %14458 = vmatprep.subr.mxu1 %v18396_v13 }
 0x5e2   :  { %v16663_v21 = vpop.f32.mrf.mxu0 }
 0x5e3   :  { %18486 = vst [vmem:[#allocation5_spill] sm:$0xff] %v16663_v21 }
 0x5e4   :  { %v14287_v19 = vpop.f32.mrf.mxu0 }
 0x5e6   :  { %v16665_v9 = vpop.f32.mrf.mxu0 }
 0x5e7   :  { %18487 = vst [vmem:[#allocation6_spill] sm:$0xff] %v16665_v9 }
 0x5e8   :  { %v14297_v14 = vpop.f32.mrf.mxu0 }
 0x61a   :  { %v16667_v7 = vpop.f32.mrf.mxu1 }
 0x61b   :  { %18488 = vst [vmem:[#allocation7_spill] sm:$0xff] %v16667_v7 }
 0x61c   :  { %v14292_v26 = vpop.f32.mrf.mxu1 }
 0x61e   :  { %v16669_v17 = vpop.f32.mrf.mxu1 }
 0x61f   :  { %18489 = vst [vmem:[#allocation9_spill] sm:$0xff] %v16669_v17 }
 0x620   :  { %v14302_v40 = vpop.f32.mrf.mxu1 }
 0x622   :  { %v16671_v37 = vpop.f32.mrf.mxu1 }
 0x623   :  { %18490 = vst [vmem:[#allocation8_spill] sm:$0xff] %v16671_v37  ;;  %v16673_v38 = vpop.f32.mrf.mxu0 }
 0x624   :  { %18491 = vst [vmem:[#allocation10_spill] sm:$0xff] %v16673_v38  ;;  %v14312_v62 = vpop.f32.mrf.mxu1 }
 0x625   :  { %v14307_v22 = vpop.f32.mrf.mxu0 }
 0x626   :  { %v16675_v36 = vpop.f32.mrf.mxu1 }
 0x627   :  { %18492 = vst [vmem:[#allocation11_spill] sm:$0xff] %v16675_v36  ;;  %v16677_v15 = vpop.f32.mrf.mxu0 }
 0x628   :  { %18493 = vst [vmem:[#allocation49_spill] sm:$0xff] %v16677_v15  ;;  %v14322_v20 = vpop.f32.mrf.mxu1 }
 0x629   :  { %v14317_v33 = vpop.f32.mrf.mxu0 }
 0x62a   :  { %v16679_v11 = vpop.f32.mrf.mxu1 }
 0x62b   :  { %18494 = vst [vmem:[#allocation12_spill] sm:$0xff] %v16679_v11  ;;  %v16681_v25 = vpop.f32.mrf.mxu0  ;;  %v16791_v11 = vpop.permute.xlu1 %7936 }
 0x62c   :  { %18495 = vst [vmem:[#allocation50_spill] sm:$0xff] %v16681_v25  ;;  %v14332_v28 = vpop.f32.mrf.mxu1 }
 0x62d   :  { %v14327_v32 = vpop.f32.mrf.mxu0 }
 0x62e   :  { %v16683_v18 = vpop.f32.mrf.mxu1 }
 0x62f   :  { %18496 = vst [vmem:[#allocation15_spill] sm:$0xff] %v16683_v18  ;;  %v16685_v35 = vpop.f32.mrf.mxu0  ;;  %v16795_v36 = vpop.permute.xlu1 %8316 }
 0x630   :  { %18497 = vst [vmem:[#allocation52_spill] sm:$0xff] %v16685_v35  ;;  %v14342_v5 = vpop.f32.mrf.mxu1 }
 0x631   :  { %v14337_v6 = vpop.f32.mrf.mxu0 }
 0x633   :  { %v16687_v39 = vpop.f32.mrf.mxu0 }
 0x634   :  { %18498 = vst [vmem:[#allocation51_spill] sm:$0xff] %v16687_v39 }
 0x635   :  { %v14347_v24 = vpop.f32.mrf.mxu0 }
 0x66b   :  { %v16689_v30 = vpop.f32.mrf.mxu1 }
 0x66c   :  { %18499 = vst [vmem:[#allocation54_spill] sm:$0xff] %v16689_v30 }
 0x66d   :  { %v14352_v29 = vpop.f32.mrf.mxu1 }
 0x66f   :  { %v16691_v16 = vpop.f32.mrf.mxu0 }
 0x670   :  { %18500 = vst [vmem:[#allocation53_spill] sm:$0xff] %v16691_v16 }
 0x671   :  { %v14357_v34 = vpop.f32.mrf.mxu0 }
 0x673   :  { %v16693_v19 = vpop.f32.mrf.mxu1  ;;  %v5886_v14 = vpop.f32.mrf.mxu0 }
 0x674   :  { %18501 = vst [vmem:[#allocation63_spill] sm:$0xff] %v16693_v19  ;;  %v16695_v26 = vmul.f32 0.35355338, %v5886_v14 }
 0x675   :  { %v14362_v40 = vpop.f32.mrf.mxu1  ;;  %v14367_v62 = vpop.f32.mrf.mxu0 }
 0x676   :  { %v7076_v22 = vsel %vm563_vm2, %v16695_v26, -inf }
 0x677   :  { %v5964_v20 = vpop.f32.mrf.mxu1  ;;  %7077 = vmax.xlane.f32.xlu0 %v7076_v22  ;;  %v6042_v33 = vpop.f32.mrf.mxu0 }
 0x678   :  { %v16699_v28 = vmul.f32 0.35355338, %v5964_v20  ;;  %v16701_v32 = vmul.f32 0.35355338, %v6042_v33 }
 0x679   :  { %v14372_v5 = vpop.f32.mrf.mxu1  ;;  %v14377_v6 = vpop.f32.mrf.mxu0 }
 0x67a   :  { %v7079_v24 = vsel %vm563_vm2, %v16699_v28, -inf  ;;  %v7082_v29 = vsel %vm563_vm2, %v16701_v32, -inf }
 0x67b   :  { %7080 = vmax.xlane.f32.xlu1 %v7079_v24  ;;  %v6120_v34 = vpop.f32.mrf.mxu1  ;;  %7083 = vmax.xlane.f32.xlu0 %v7082_v29  ;;  %v6198_v14 = vpop.f32.mrf.mxu0 }
 0x67c   :  { %v16707_v40 = vmul.f32 0.35355338, %v6120_v34  ;;  %v16709_v62 = vmul.f32 0.35355338, %v6198_v14 }
 0x67d   :  { %v14382_v22 = vpop.f32.mrf.mxu1  ;;  %v14387_v20 = vpop.f32.mrf.mxu0 }
 0x67e   :  { %v7085_v33 = vsel %vm563_vm2, %v16707_v40, -inf  ;;  %v7088_v5 = vsel %vm563_vm2, %v16709_v62, -inf }
 0x67f   :  { %v6276_v6 = vpop.f32.mrf.mxu1  ;;  %7086 = vmax.xlane.f32.xlu0 %v7085_v33  ;;  %7089 = vmax.xlane.f32.xlu1 %v7088_v5  ;;  %v6354_v16 = vpop.f32.mrf.mxu0 }
 0x680   :  { %v16715_v24 = vmul.f32 0.35355338, %v6276_v6  ;;  %v16717_v29 = vmul.f32 0.35355338, %v6354_v16 }
 0x681   :  { %v14392_v34 = vpop.f32.mrf.mxu1  ;;  %v14397_v39 = vpop.f32.mrf.mxu0 }
 0x682   :  { %v7091_v14 = vsel %vm563_vm2, %v16715_v24, -inf  ;;  %v7094_v22 = vsel %vm563_vm2, %v16717_v29, -inf }
 0x683   :  { %v6432_v20 = vpop.f32.mrf.mxu1  ;;  %7092 = vmax.xlane.f32.xlu0 %v7091_v14  ;;  %7095 = vmax.xlane.f32.xlu1 %v7094_v22  ;;  %v6510_v35 = vpop.f32.mrf.mxu0 }
 0x684   :  { %v16723_v25 = vmul.f32 0.35355338, %v6432_v20  ;;  %v16725_v33 = vmul.f32 0.35355338, %v6510_v35 }
 0x685   :  { %v14402_v5 = vpop.f32.mrf.mxu1  ;;  %v14407_v6 = vpop.f32.mrf.mxu0 }
 0x686   :  { %v7097_v16 = vsel %vm563_vm2, %v16723_v25, -inf  ;;  %v7100_v39 = vsel %vm563_vm2, %v16725_v33, -inf }
 0x687   :  { %v6588_v34 = vpop.f32.mrf.mxu1  ;;  %7098 = vmax.xlane.f32.xlu0 %v7097_v16  ;;  %7101 = vmax.xlane.f32.xlu1 %v7100_v39  ;;  %v6666_v15 = vpop.f32.mrf.mxu0 }
 0x688   :  { %v16731_v38 = vmul.f32 0.35355338, %v6588_v34  ;;  %v16733_v14 = vmul.f32 0.35355338, %v6666_v15 }
 0x689   :  { %v14412_v22 = vpop.f32.mrf.mxu1  ;;  %v14417_v20 = vpop.f32.mrf.mxu0 }
 0x68a   :  { %v7103_v35 = vsel %vm563_vm2, %v16731_v38, -inf  ;;  %v7106_v5 = vsel %vm563_vm2, %v16733_v14, -inf }
 0x68b   :  { %v6744_v6 = vpop.f32.mrf.mxu1  ;;  %7104 = vmax.xlane.f32.xlu0 %v7103_v35  ;;  %7107 = vmax.xlane.f32.xlu1 %v7106_v5  ;;  %v6822_v9 = vpop.f32.mrf.mxu0 }
 0x68c   :  { %v16739_v21 = vmul.f32 0.35355338, %v6744_v6  ;;  %v16741_v16 = vmul.f32 0.35355338, %v6822_v9 }
 0x68d   :  { %v14422_v39 = vpop.f32.mrf.mxu1  ;;  %v14427_v34 = vpop.f32.mrf.mxu0 }
 0x68e   :  { %v7109_v15 = vsel %vm563_vm2, %v16739_v21, -inf  ;;  %v7112_v22 = vsel %vm563_vm2, %v16741_v16, -inf }
 0x68f   :  { %v6900_v20 = vpop.f32.mrf.mxu1  ;;  %7110 = vmax.xlane.f32.xlu0 %v7109_v15  ;;  %7113 = vmax.xlane.f32.xlu1 %v7112_v22  ;;  %v6978_v19 = vpop.f32.mrf.mxu0 }
 0x690   :  { %v16747_v30 = vmul.f32 0.35355338, %v6900_v20  ;;  %v16749_v35 = vmul.f32 0.35355338, %v6978_v19  ;;  %v16759_v19 = vpop.permute.xlu0 %7404  ;;  %v18502_v20 = vld [vmem:[#allocation16_spill] sm:$0xff] }
 0x691   :  { %v14432_v5 = vpop.f32.mrf.mxu1  ;;  %v14437_v6 = vpop.f32.mrf.mxu0 }
 0x692   :  { %v7115_v9 = vsel %vm563_vm2, %v16747_v30, -inf  ;;  %v7118_v39 = vsel %vm563_vm2, %v16749_v35, -inf  ;;  %v18503_v6 = vld [vmem:[#allocation13_spill] sm:$0xff] }
 0x693   :  { %v7056_v34 = vpop.f32.mrf.mxu1  ;;  %7116 = vmax.xlane.f32.xlu0 %v7115_v9  ;;  %7119 = vmax.xlane.f32.xlu1 %v7118_v39  ;;  %v18504_v39 = vld [vmem:[#allocation14_spill] sm:$0xff] }
 0x694   :  { %v16755_v18 = vmul.f32 0.35355338, %v7056_v34  ;;  %v16763_v5 = vpop.permute.xlu0 %7480 }
 0x695   :  { %v14442_v15 = vpop.f32.mrf.mxu1 }
 0x696   :  { %v7121_v22 = vsel %vm563_vm2, %v16755_v18, -inf }
 0x697   :  { %7122 = vmax.xlane.f32.xlu0 %v7121_v22 }
 0x698   :  { %v16771_v9 = vpop.permute.xlu0 %7556 }
 0x69c   :  { %v16775_v34 = vpop.permute.xlu0 %7632 }
 0x6a0   :  { %v16779_v15 = vpop.permute.xlu0 %7708 }
 0x6a4   :  { %8780 = vrot.lane.b32.xlu1 %v18502_v20, %s15202_s23  ;;  %v16781_v22 = vpop.permute.xlu0 %7784 }
 0x6a8   :  { %8938 = vrot.lane.b32.xlu1 %v15513_v43, %s15202_s23  ;;  %v16783_v43 = vpop.permute.xlu0 %7860 }
 0x6ac   :  { %8936 = vrot.lane.b32.xlu1 %v15515_v44, %s15202_s23  ;;  %v16785_v44 = vpop.permute.xlu0 %8012 }
 0x6ad   :  { %8860 = vrot.lane.b32.xlu0 %v18503_v6, %s15202_s23 }
 0x6b0   :  { %v16787_v20 = vpop.permute.xlu0 %8088 }
 0x6b1   :  { %8858 = vrot.lane.b32.xlu0 %v18504_v39, %s15202_s23 }
 0x6b4   :  { %v16789_v6 = vpop.permute.xlu0 %8164 }
 0x6b5   :  { %9016 = vrot.lane.b32.xlu0 %v15505_v41, %s15202_s23  ;;  %v16799_v41 = vpop.permute.xlu1 %8470 }
 0x6b8   :  { %v16793_v39 = vpop.permute.xlu0 %8240 }
 0x6b9   :  { %v16803_v7 = vpop.permute.xlu1 %8468 }
 0x6bc   :  { %v16797_v37 = vpop.permute.xlu0 %8392 }
 0x6bd   :  { %v16807_v27 = vpop.permute.xlu1 %8626 }
 0x6be   :  { %18507 = vst [vmem:[#allocation56_spill] sm:$0xff] %v16807_v27 }
 0x6c0   :  { %v16801_v17 = vpop.permute.xlu0 %8548 }
 0x6c1   :  { %18505 = vst [vmem:[#allocation55_spill] sm:$0xff] %v16801_v17  ;;  %v16811_v10 = vpop.permute.xlu1 %8624 }
 0x6c2   :  { %18509 = vst [vmem:[#allocation59_spill] sm:$0xff] %v16811_v10 }
 0x6c4   :  { %v16805_v31 = vpop.permute.xlu0 %8546 }
 0x6c5   :  { %18506 = vst [vmem:[#allocation57_spill] sm:$0xff] %v16805_v31  ;;  %v16815_v3 = vpop.permute.xlu1 %8782 }
 0x6c6   :  { %18511 = vst [vmem:[#allocation61_spill] sm:$0xff] %v16815_v3 }
 0x6c8   :  { %v16809_v12 = vpop.permute.xlu0 %8704 }
 0x6c9   :  { %18508 = vst [vmem:[#allocation58_spill] sm:$0xff] %v16809_v12 }
 0x6cc   :  { %v16813_v8 = vpop.permute.xlu0 %8702 }
 0x6cd   :  { %18510 = vst [vmem:[#allocation60_spill] sm:$0xff] %v16813_v8 }
 0x700   :  { %v7078_v4 = vpop.xlane.xlu0 %7077 }
 0x701   :  { %v7124_v1 = vsub.f32 %v16695_v26, %v7078_v4 }
 0x703   :  { %v7140_v2 = vmul.f32 1.442695, %v7124_v1 }
 0x704   :  { %v7081_v23 = vpop.xlane.xlu1 %7080  ;;  %v7084_v63 = vpop.xlane.xlu0 %7083 }
 0x705   :  { %14970 = vpow2.f32 %v7140_v2  ;;  %v7125_v0 = vsub.f32 %v16699_v28, %v7081_v23  ;;  %v7126_v61 = vsub.f32 %v16701_v32, %v7084_v63 }
 0x707   :  { %v7142_v31 = vmul.f32 1.442695, %v7125_v0  ;;  %v7144_v17 = vmul.f32 1.442695, %v7126_v61 }
 0x708   :  { %v7087_v12 = vpop.xlane.xlu0 %7086  ;;  %v7090_v27 = vpop.xlane.xlu1 %7089 }
 0x709   :  { %14972 = vpow2.f32 %v7142_v31  ;;  %v7127_v8 = vsub.f32 %v16707_v40, %v7087_v12  ;;  %v7128_v3 = vsub.f32 %v16709_v62, %v7090_v27 }
 0x70a   :  { %14974 = vpow2.f32 %v7144_v17 }
 0x70b   :  { %v7146_v10 = vmul.f32 1.442695, %v7127_v8  ;;  %v7148_v4 = vmul.f32 1.442695, %v7128_v3 }
 0x70c   :  { %v7093_v1 = vpop.xlane.xlu0 %7092  ;;  %v7096_v26 = vpop.xlane.xlu1 %7095 }
 0x70d   :  { %14976 = vpow2.f32 %v7146_v10  ;;  %v7129_v2 = vsub.f32 %v16715_v24, %v7093_v1  ;;  %v7130_v23 = vsub.f32 %v16717_v29, %v7096_v26 }
 0x70e   :  { %14978 = vpow2.f32 %v7148_v4 }
 0x70f   :  { %v7150_v63 = vmul.f32 1.442695, %v7129_v2  ;;  %v7152_v61 = vmul.f32 1.442695, %v7130_v23 }
 0x710   :  { %v7099_v0 = vpop.xlane.xlu0 %7098  ;;  %v7102_v28 = vpop.xlane.xlu1 %7101 }
 0x711   :  { %14980 = vpow2.f32 %v7150_v63  ;;  %v7131_v12 = vsub.f32 %v16723_v25, %v7099_v0  ;;  %v7132_v27 = vsub.f32 %v16725_v33, %v7102_v28 }
 0x712   :  { %v16826_v31 = vpop.eup %14970  ;;  %14982 = vpow2.f32 %v7152_v61 }
 0x713   :  { %v7154_v3 = vmul.f32 1.442695, %v7131_v12  ;;  %v7156_v8 = vmul.f32 1.442695, %v7132_v27  ;;  %v7172_v10 = vsel %vm563_vm2, %v16826_v31, 0.0 }
 0x714   :  { %v7105_v17 = vpop.xlane.xlu0 %7104  ;;  %v7108_v32 = vpop.xlane.xlu1 %7107  ;;  %7173 = vadd.xlane.f32.xlu1 %v7172_v10 }
 0x715   :  { %14984 = vpow2.f32 %v7154_v3  ;;  %v7133_v40 = vsub.f32 %v16731_v38, %v7105_v17  ;;  %v7134_v62 = vsub.f32 %v16733_v14, %v7108_v32 }
 0x716   :  { %v16832_v24 = vpop.eup %14972  ;;  %14986 = vpow2.f32 %v7156_v8 }
 0x717   :  { %v16834_v25 = vpop.eup %14974  ;;  %v7158_v29 = vmul.f32 1.442695, %v7133_v40  ;;  %v7160_v33 = vmul.f32 1.442695, %v7134_v62  ;;  %v7175_v4 = vsel %vm563_vm2, %v16832_v24, 0.0 }
 0x718   :  { %7176 = vadd.xlane.f32.xlu0 %v7175_v4  ;;  %v7111_v1 = vpop.xlane.xlu0 %7110  ;;  %v7114_v26 = vpop.xlane.xlu1 %7113  ;;  %v7178_v2 = vsel %vm563_vm2, %v16834_v25, 0.0 }
 0x719   :  { %14988 = vpow2.f32 %v7158_v29  ;;  %v7135_v38 = vsub.f32 %v16739_v21, %v7111_v1  ;;  %v7136_v14 = vsub.f32 %v16741_v16, %v7114_v26  ;;  %7179 = vadd.xlane.f32.xlu1 %v7178_v2 }
 0x71a   :  { %v16842_v23 = vpop.eup %14976  ;;  %14990 = vpow2.f32 %v7160_v33 }
 0x71b   :  { %v16844_v63 = vpop.eup %14978  ;;  %v7162_v61 = vmul.f32 1.442695, %v7135_v38  ;;  %v7164_v0 = vmul.f32 1.442695, %v7136_v14  ;;  %v7181_v28 = vsel %vm563_vm2, %v16842_v23, 0.0 }
 0x71c   :  { %7182 = vadd.xlane.f32.xlu0 %v7181_v28  ;;  %v7117_v12 = vpop.xlane.xlu0 %7116  ;;  %v7184_v27 = vsel %vm563_vm2, %v16844_v63, 0.0  ;;  %v7120_v3 = vpop.xlane.xlu1 %7119 }
 0x71d   :  { %14992 = vpow2.f32 %v7162_v61  ;;  %v7137_v21 = vsub.f32 %v16747_v30, %v7117_v12  ;;  %7185 = vadd.xlane.f32.xlu1 %v7184_v27  ;;  %v7138_v16 = vsub.f32 %v16749_v35, %v7120_v3 }
 0x71e   :  { %v16852_v8 = vpop.eup %14980  ;;  %14994 = vpow2.f32 %v7164_v0 }
 0x71f   :  { %v16854_v10 = vpop.eup %14982  ;;  %v7166_v17 = vmul.f32 1.442695, %v7137_v21  ;;  %v7168_v32 = vmul.f32 1.442695, %v7138_v16  ;;  %v7187_v40 = vsel %vm563_vm2, %v16852_v8, 0.0 }
 0x720   :  { %7188 = vadd.xlane.f32.xlu0 %v7187_v40  ;;  %v7190_v62 = vsel %vm563_vm2, %v16854_v10, 0.0  ;;  %v7123_v21 = vpop.xlane.xlu0 %7122 }
 0x721   :  { %14996 = vpow2.f32 %v7166_v17  ;;  %7191 = vadd.xlane.f32.xlu1 %v7190_v62  ;;  %v7139_v16 = vsub.f32 %v16755_v18, %v7123_v21 }
 0x722   :  { %v16860_v30 = vpop.eup %14984  ;;  %14998 = vpow2.f32 %v7168_v32 }
 0x723   :  { %v16862_v29 = vpop.eup %14986  ;;  %v7193_v35 = vsel %vm563_vm2, %v16860_v30, 0.0  ;;  %v7170_v17 = vmul.f32 1.442695, %v7139_v16 }
 0x724   :  { %7194 = vadd.xlane.f32.xlu0 %v7193_v35  ;;  %v7196_v33 = vsel %vm563_vm2, %v16862_v29, 0.0 }
 0x725   :  { %7197 = vadd.xlane.f32.xlu1 %v7196_v33  ;;  %15000 = vpow2.f32 %v7170_v17 }
 0x726   :  { %v16868_v4 = vpop.eup %14988 }
 0x727   :  { %v16870_v1 = vpop.eup %14990  ;;  %v7199_v26 = vsel %vm563_vm2, %v16868_v4, 0.0 }
 0x728   :  { %7200 = vadd.xlane.f32.xlu0 %v7199_v26  ;;  %v7202_v2 = vsel %vm563_vm2, %v16870_v1, 0.0 }
 0x729   :  { %7203 = vadd.xlane.f32.xlu1 %v7202_v2 }
 0x72a   :  { %v16876_v38 = vpop.eup %14992 }
 0x72b   :  { %v16878_v14 = vpop.eup %14994  ;;  %v7205_v61 = vsel %vm563_vm2, %v16876_v38, 0.0 }
 0x72c   :  { %7206 = vadd.xlane.f32.xlu0 %v7205_v61  ;;  %v7208_v0 = vsel %vm563_vm2, %v16878_v14, 0.0 }
 0x72d   :  { %7209 = vadd.xlane.f32.xlu1 %v7208_v0 }
 0x72e   :  { %v16884_v28 = vpop.eup %14996 }
 0x72f   :  { %v7211_v12 = vsel %vm563_vm2, %v16884_v28, 0.0  ;;  %v16888_v27 = vpop.eup %14998 }
 0x730   :  { %7212 = vadd.xlane.f32.xlu0 %v7211_v12  ;;  %v7214_v3 = vsel %vm563_vm2, %v16888_v27, 0.0 }
 0x734   :  { %7215 = vadd.xlane.f32.xlu0 %v7214_v3 }
 0x73e   :  { %9094 = vrot.lane.b32.xlu1 %v15532_v47, %s15202_s23  ;;  %v16905_v47 = vpop.eup %15000 }
 0x74a   :  { %9014 = vrot.lane.b32.xlu0 %v15507_v42, %s15202_s23  ;;  %v7217_v42 = vsel %vm563_vm2, %v16905_v47, 0.0 }
 0x74e   :  { %9172 = vrot.lane.b32.xlu0 %v15524_v45, %s15202_s23  ;;  %v16931_v45 = vpop.permute.xlu1 %8780 }
 0x752   :  { %9170 = vrot.lane.b32.xlu0 %v15526_v46, %s15202_s23  ;;  %v16933_v46 = vpop.permute.xlu0 %8860 }
 0x756   :  { %9328 = vrot.lane.b32.xlu0 %v15543_v49, %s15202_s23  ;;  %v16937_v49 = vpop.permute.xlu0 %8858 }
 0x75a   :  { %9326 = vrot.lane.b32.xlu0 %v15545_v50, %s15202_s23 }
 0x75e   :  { %9484 = vrot.lane.b32.xlu0 %v15563_v53, %s15202_s23 }
 0x762   :  { %7218 = vadd.xlane.f32.xlu1 %v7217_v42  ;;  %9482 = vrot.lane.b32.xlu0 %v15565_v54, %s15202_s23 }
 0x766   :  { %9640 = vrot.lane.b32.xlu0 %v15585_v57, %s15202_s23 }
 0x76a   :  { %9638 = vrot.lane.b32.xlu0 %v15587_v58, %s15202_s23 }
 0x773   :  { %9092 = vrot.lane.b32.xlu1 %v15534_v48, %s15202_s23  ;;  %v16935_v48 = vpop.permute.xlu1 %8938 }
 0x777   :  { %9250 = vrot.lane.b32.xlu1 %v15552_v51, %s15202_s23  ;;  %v16939_v50 = vpop.permute.xlu1 %8936  ;;  %v16941_v51 = vpop.permute.xlu0 %9016 }
 0x77b   :  { %9248 = vrot.lane.b32.xlu1 %v15554_v52, %s15202_s23 }
 0x77f   :  { %9406 = vrot.lane.b32.xlu1 %v15573_v55, %s15202_s23 }
 0x783   :  { %9404 = vrot.lane.b32.xlu1 %v15576_v56, %s15202_s23 }
 0x787   :  { %9562 = vrot.lane.b32.xlu1 %v15595_v59, %s15202_s23 }
 0x78b   :  { %9560 = vrot.lane.b32.xlu1 %v15598_v60, %s15202_s23 }
 0x79d   :  { %v7174_v52 = vpop.xlane.xlu1 %7173 }
 0x79e   :  { %15002 = vrcp.f32 %v7174_v52 }
 0x7a1   :  { %v7177_v53 = vpop.xlane.xlu0 %7176 }
 0x7a2   :  { %15004 = vrcp.f32 %v7177_v53  ;;  %v7180_v54 = vpop.xlane.xlu1 %7179  ;;  %v18515_v53 = vld [vmem:[#allocation55_spill] sm:$0xff] }
 0x7a3   :  { %15006 = vrcp.f32 %v7180_v54 }
 0x7a5   :  { %v7183_v55 = vpop.xlane.xlu0 %7182 }
 0x7a6   :  { %15008 = vrcp.f32 %v7183_v55  ;;  %v7186_v56 = vpop.xlane.xlu1 %7185  ;;  %v18516_v55 = vld [vmem:[#allocation57_spill] sm:$0xff] }
 0x7a7   :  { %15010 = vrcp.f32 %v7186_v56 }
 0x7a9   :  { %v7189_v57 = vpop.xlane.xlu0 %7188 }
 0x7aa   :  { %15012 = vrcp.f32 %v7189_v57  ;;  %v7192_v58 = vpop.xlane.xlu1 %7191 }
 0x7ab   :  { %v15003_v59 = vpop.eup %15002  ;;  %15014 = vrcp.f32 %v7192_v58  ;;  %v18518_v58 = vld [vmem:[#allocation60_spill] sm:$0xff] }
 0x7ac   :  { %v7236_v60 = vmul.f32 %v15003_v59, %v16826_v31 }
 0x7ad   :  { %v7195_v18 = vpop.xlane.xlu0 %7194 }
 0x7ae   :  { %15016 = vrcp.f32 %v7195_v18  ;;  %v7198_v32 = vpop.xlane.xlu1 %7197  ;;  %14446 = vmatmul.mubr.msk.f32.vlgmr.msra.gmra.mxu0 %vm563_vm2, %v7236_v60 }
 0x7af   :  { %v15005_v40 = vpop.eup %15004  ;;  %15018 = vrcp.f32 %v7198_v32  ;;  %14454 = vmatpush3.msra.mxu0 %v16759_v19  ;;  %14455 = vmatprep.mubr.msk.f32.mxu0 %vm15199_vm1, %v18396_v13 }
 0x7b0   :  { %v15007_v62 = vpop.eup %15006  ;;  %14463 = vmatprep.subr.mxu0 %v18396_v13  ;;  %v7237_v35 = vmul.f32 %v15005_v40, %v16832_v24 }
 0x7b1   :  { %v7201_v33 = vpop.xlane.xlu0 %7200  ;;  %v7238_v31 = vmul.f32 %v15007_v62, %v16834_v25 }
 0x7b2   :  { %15020 = vrcp.f32 %v7201_v33  ;;  %v7204_v26 = vpop.xlane.xlu1 %7203  ;;  %14451 = vmatmul.mubr.msk.f32.vlgmr.msra.gmra.mxu1 %vm563_vm2, %v7237_v35 }
 0x7b3   :  { %v15009_v2 = vpop.eup %15008  ;;  %15022 = vrcp.f32 %v7204_v26  ;;  %14456 = vmatmul.mubr.msk.f32.vlgmr.msra.gmra.mxu0 %vm563_vm2, %v7238_v31  ;;  %14459 = vmatpush3.msra.mxu1 %v16763_v5 }
 0x7b4   :  { %v15011_v19 = vpop.eup %15010  ;;  %14464 = vmatpush3.msra.mxu0 %v16771_v9  ;;  %14460 = vmatprep.mubr.msk.f32.mxu1 %vm15199_vm1, %v18396_v13  ;;  %v7239_v24 = vmul.f32 %v15009_v2, %v16842_v23 }
 0x7b5   :  { %14468 = vmatprep.subr.mxu1 %v18396_v13  ;;  %v7207_v25 = vpop.xlane.xlu0 %7206  ;;  %14465 = vmatprep.mubr.msk.f32.mxu0 %vm15199_vm1, %v18396_v13  ;;  %v7240_v61 = vmul.f32 %v15011_v19, %v16844_v63 }
 0x7b6   :  { %15024 = vrcp.f32 %v7207_v25  ;;  %14473 = vmatprep.subr.mxu0 %v18396_v13  ;;  %v7210_v5 = vpop.xlane.xlu1 %7209  ;;  %14461 = vmatmul.mubr.msk.f32.vlgmr.msra.gmra.mxu1 %vm563_vm2, %v7239_v24 }
 0x7b7   :  { %v15013_v9 = vpop.eup %15012  ;;  %15026 = vrcp.f32 %v7210_v5  ;;  %14466 = vmatmul.mubr.msk.f32.vlgmr.msra.gmra.mxu0 %vm563_vm2, %v7240_v61  ;;  %14469 = vmatpush3.msra.mxu1 %v16775_v34 }
 0x7b8   :  { %v15015_v23 = vpop.eup %15014  ;;  %14474 = vmatpush3.msra.mxu0 %v16779_v15  ;;  %14470 = vmatprep.mubr.msk.f32.mxu1 %vm15199_vm1, %v18396_v13  ;;  %v7241_v63 = vmul.f32 %v15013_v9, %v16852_v8 }
 0x7b9   :  { %14478 = vmatprep.subr.mxu1 %v18396_v13  ;;  %v7213_v0 = vpop.xlane.xlu0 %7212  ;;  %14475 = vmatprep.mubr.msk.f32.mxu0 %vm15199_vm1, %v18396_v13  ;;  %v7242_v12 = vmul.f32 %v15015_v23, %v16854_v10 }
 0x7ba   :  { %15028 = vrcp.f32 %v7213_v0  ;;  %14483 = vmatprep.subr.mxu0 %v18396_v13  ;;  %14471 = vmatmul.mubr.msk.f32.vlgmr.msra.gmra.mxu1 %vm563_vm2, %v7241_v63 }
 0x7bb   :  { %v15017_v34 = vpop.eup %15016  ;;  %14476 = vmatmul.mubr.msk.f32.vlgmr.msra.gmra.mxu0 %vm563_vm2, %v7242_v12  ;;  %14479 = vmatpush3.msra.mxu1 %v16781_v22 }
 0x7bc   :  { %v15019_v15 = vpop.eup %15018  ;;  %v7243_v8 = vmul.f32 %v15017_v34, %v16860_v30  ;;  %14484 = vmatpush3.msra.mxu0 %v16783_v43  ;;  %14480 = vmatprep.mubr.msk.f32.mxu1 %vm15199_vm1, %v18396_v13 }
 0x7bd   :  { %14488 = vmatprep.subr.mxu1 %v18396_v13  ;;  %v7216_v10 = vpop.xlane.xlu0 %7215  ;;  %14485 = vmatprep.mubr.msk.f32.mxu0 %vm15199_vm1, %v18396_v13  ;;  %v7244_v3 = vmul.f32 %v15019_v15, %v16862_v29 }
 0x7be   :  { %15030 = vrcp.f32 %v7216_v10  ;;  %14493 = vmatprep.subr.mxu0 %v18396_v13  ;;  %14481 = vmatmul.mubr.msk.f32.vlgmr.msra.gmra.mxu1 %vm563_vm2, %v7243_v8 }
 0x7bf   :  { %v15021_v22 = vpop.eup %15020  ;;  %14486 = vmatmul.mubr.msk.f32.vlgmr.msra.gmra.mxu0 %vm563_vm2, %v7244_v3  ;;  %14489 = vmatpush3.msra.mxu1 %v16791_v11 }
 0x7c0   :  { %v15023_v43 = vpop.eup %15022  ;;  %v7245_v30 = vmul.f32 %v15021_v22, %v16868_v4  ;;  %14494 = vmatpush3.msra.mxu0 %v16785_v44  ;;  %14490 = vmatprep.mubr.msk.f32.mxu1 %vm15199_vm1, %v18396_v13 }
 0x7c1   :  { %v7246_v29 = vmul.f32 %v15023_v43, %v16870_v1  ;;  %14498 = vmatprep.subr.mxu1 %v18396_v13  ;;  %14495 = vmatprep.mubr.msk.f32.mxu0 %vm15199_vm1, %v18396_v13 }
 0x7c2   :  { %14503 = vmatprep.subr.mxu0 %v18396_v13  ;;  %14491 = vmatmul.mubr.msk.f32.vlgmr.msra.gmra.mxu1 %vm563_vm2, %v7245_v30 }
 0x7c3   :  { %v15025_v11 = vpop.eup %15024  ;;  %14496 = vmatmul.mubr.msk.f32.vlgmr.msra.gmra.mxu0 %vm563_vm2, %v7246_v29  ;;  %14499 = vmatpush3.msra.mxu1 %v16787_v20 }
 0x7c4   :  { %v15027_v44 = vpop.eup %15026  ;;  %v7247_v4 = vmul.f32 %v15025_v11, %v16876_v38  ;;  %14504 = vmatpush3.msra.mxu0 %v16789_v6  ;;  %14500 = vmatprep.mubr.msk.f32.mxu1 %vm15199_vm1, %v18396_v13 }
 0x7c5   :  { %v7248_v1 = vmul.f32 %v15027_v44, %v16878_v14  ;;  %14508 = vmatprep.subr.mxu1 %v18396_v13  ;;  %14505 = vmatprep.mubr.msk.f32.mxu0 %vm15199_vm1, %v18396_v13  ;;  %v9015_v14 = vpop.permute.xlu0 %9014 }
 0x7c6   :  { %14513 = vmatprep.subr.mxu0 %v18396_v13  ;;  %14501 = vmatmul.mubr.msk.f32.vlgmr.msra.gmra.mxu1 %vm563_vm2, %v7247_v4 }
 0x7c7   :  { %v15029_v20 = vpop.eup %15028  ;;  %14506 = vmatmul.mubr.msk.f32.vlgmr.msra.gmra.mxu0 %vm563_vm2, %v7248_v1  ;;  %14509 = vmatpush3.msra.mxu1 %v16793_v39  ;;  %v18513_v39 = vld [vmem:[#allocation59_spill] sm:$0xff] }
 0x7c8   :  { %v7249_v6 = vmul.f32 %v15029_v20, %v16884_v28  ;;  %14514 = vmatpush3.msra.mxu0 %v16795_v36  ;;  %14510 = vmatprep.mubr.msk.f32.mxu1 %vm15199_vm1, %v18396_v13 }
 0x7c9   :  { %14518 = vmatprep.subr.mxu1 %v18396_v13  ;;  %14515 = vmatprep.mubr.msk.f32.mxu0 %vm15199_vm1, %v18396_v13  ;;  %v9173_v21 = vpop.permute.xlu0 %9172 }
 0x7ca   :  { %14511 = vmatmul.mubr.msk.f32.vlgmr.msra.gmra.mxu1 %vm563_vm2, %v7249_v6  ;;  %14523 = vmatprep.subr.mxu0 %v18396_v13 }
 0x7cb   :  { %v15031_v38 = vpop.eup %15030  ;;  %14519 = vmatpush3.msra.mxu1 %v16797_v37  ;;  %14520 = vmatprep.mubr.msk.f32.mxu1 %vm15199_vm1, %v18396_v13  ;;  %v18512_v37 = vld [vmem:[#allocation56_spill] sm:$0xff] }
 0x7cc   :  { %v7250_v36 = vmul.f32 %v15031_v38, %v16888_v27  ;;  %14528 = vmatprep.subr.mxu1 %v18396_v13 }
 0x7cd   :  { %v9171_v17 = vpop.permute.xlu0 %9170 }
 0x7ce   :  { %14516 = vmatmul.mubr.msk.f32.vlgmr.msra.gmra.mxu0 %vm563_vm2, %v7250_v36 }
 0x7cf   :  { %14524 = vmatpush3.xpose.msk.msra.mxu0 %vm563_vm2, %v16799_v41  ;;  %14525 = vmatprep.mubr.msk.f32.mxu0 %vm15199_vm1, %v18396_v13  ;;  %v18514_v41 = vld [vmem:[#allocation61_spill] sm:$0xff] }
 0x7d0   :  { %14533 = vmatprep.subr.mxu0 %v18396_v13 }
 0x7d1   :  { %v9329_v52 = vpop.permute.xlu0 %9328 }
 0x7d2   :  { %14526 = vmatmul.mubr.msk.f32.vlgmr.msra.gmra.mxu0 %vm563_vm2, %v16803_v7  ;;  %v9095_v7 = vpop.permute.xlu1 %9094 }
 0x7d3   :  { %14534 = vmatpush3.xpose.msk.msra.mxu0 %vm563_vm2, %v18512_v37  ;;  %14535 = vmatprep.mubr.msk.f32.mxu0 %vm15199_vm1, %v18396_v13 }
 0x7d4   :  { %14543 = vmatprep.subr.mxu0 %v18396_v13 }
 0x7d5   :  { %v9327_v56 = vpop.permute.xlu0 %9326 }
 0x7d6   :  { %14536 = vmatmul.mubr.msk.f32.vlgmr.msra.gmra.mxu0 %vm563_vm2, %v18513_v39 }
 0x7d7   :  { %14544 = vmatpush3.xpose.msk.msra.mxu0 %vm563_vm2, %v18514_v41  ;;  %14545 = vmatprep.mubr.msk.f32.mxu0 %vm15199_vm1, %v18396_v13 }
 0x7d8   :  { %14553 = vmatprep.subr.mxu0 %v18396_v13 }
 0x7d9   :  { %v9485_v60 = vpop.permute.xlu0 %9484 }
 0x7da   :  { %14546 = vmatmul.mubr.msk.f32.vlgmr.msra.gmra.mxu0 %vm563_vm2, %v16931_v45 }
 0x7db   :  { %14554 = vmatpush3.xpose.msk.msra.mxu0 %vm563_vm2, %v16935_v48  ;;  %14555 = vmatprep.mubr.msk.f32.mxu0 %vm15199_vm1, %v18396_v13 }
 0x7dc   :  { %14563 = vmatprep.subr.mxu0 %v18396_v13 }
 0x7de   :  { %14556 = vmatmul.mubr.msk.f32.vlgmr.msra.gmra.mxu0 %vm563_vm2, %v16939_v50 }
 0x7df   :  { %14564 = vmatpush3.xpose.msk.msra.mxu0 %vm563_vm2, %v9095_v7  ;;  %14565 = vmatprep.mubr.msk.f32.mxu0 %vm15199_vm1, %v18396_v13 }
 0x7e0   :  { %14573 = vmatprep.subr.mxu0 %v18396_v13 }
 0x7eb   :  { %v7219_v28 = vpop.xlane.xlu1 %7218 }
 0x7ec   :  { %15032 = vrcp.f32 %v7219_v28 }
 0x7ef   :  { %v9093_v27 = vpop.permute.xlu1 %9092 }
 0x7f0   :  { %14566 = vmatmul.mubr.msk.f32.vlgmr.msra.gmra.mxu0 %vm563_vm2, %v9093_v27 }
 0x7f1   :  { %14575 = vmatprep.mubr.msk.f32.mxu0 %vm15199_vm1, %v18396_v13 }
 0x7f3   :  { %v9251_v16 = vpop.permute.xlu1 %9250 }
 0x7f4   :  { %14574 = vmatpush3.xpose.msk.msra.mxu0 %vm563_vm2, %v9251_v16 }
 0x7f5   :  { %14583 = vmatprep.subr.mxu0 %v18396_v13 }
 0x7f7   :  { %v9249_v42 = vpop.permute.xlu1 %9248 }
 0x7f8   :  { %14576 = vmatmul.mubr.msk.f32.vlgmr.msra.gmra.mxu0 %vm563_vm2, %v9249_v42 }
 0x7f9   :  { %v15033_v45 = vpop.eup %15032  ;;  %14585 = vmatprep.mubr.msk.f32.mxu0 %vm15199_vm1, %v18396_v13 }
 0x7fa   :  { %v7251_v48 = vmul.f32 %v15033_v45, %v16905_v47  ;;  %v18517_v47 = vld [vmem:[#allocation58_spill] sm:$0xff] }
 0x7fb   :  { %v9407_v50 = vpop.permute.xlu1 %9406 }
 0x7fc   :  { %14521 = vmatmul.mubr.msk.f32.vlgmr.msra.gmra.mxu1 %vm563_vm2, %v7251_v48  ;;  %14584 = vmatpush3.xpose.msk.msra.mxu0 %vm563_vm2, %v9407_v50 }
 0x7fd   :  { %14529 = vmatpush3.xpose.msk.msra.mxu1 %vm563_vm2, %v18515_v53  ;;  %14530 = vmatprep.mubr.msk.f32.mxu1 %vm15199_vm1, %v18396_v13 }
 0x7fe   :  { %14538 = vmatprep.subr.mxu1 %v18396_v13  ;;  %14593 = vmatprep.subr.mxu0 %v18396_v13 }
 0x7ff   :  { %v9405_v54 = vpop.permute.xlu1 %9404 }
 0x800   :  { %14531 = vmatmul.mubr.msk.f32.vlgmr.msra.gmra.mxu1 %vm563_vm2, %v18516_v55  ;;  %14586 = vmatmul.mubr.msk.f32.vlgmr.msra.gmra.mxu0 %vm563_vm2, %v9405_v54 }
 0x801   :  { %14539 = vmatpush3.xpose.msk.msra.mxu1 %vm563_vm2, %v18517_v47  ;;  %14540 = vmatprep.mubr.msk.f32.mxu1 %vm15199_vm1, %v18396_v13 }
 0x802   :  { %14548 = vmatprep.subr.mxu1 %v18396_v13  ;;  %14595 = vmatprep.mubr.msk.f32.mxu0 %vm15199_vm1, %v18396_v13 }
 0x803   :  { %v9563_v57 = vpop.permute.xlu1 %9562 }
 0x804   :  { %14541 = vmatmul.mubr.msk.f32.vlgmr.msra.gmra.mxu1 %vm563_vm2, %v18518_v58  ;;  %14594 = vmatpush3.xpose.msk.msra.mxu0 %vm563_vm2, %v9563_v57 }
 0x805   :  { %14549 = vmatpush3.xpose.msk.msra.mxu1 %vm563_vm2, %v16933_v46  ;;  %14550 = vmatprep.mubr.msk.f32.mxu1 %vm15199_vm1, %v18396_v13  ;;  %v9483_v46 = vpop.permute.xlu0 %9482 }
 0x806   :  { %14558 = vmatprep.subr.mxu1 %v18396_v13  ;;  %14603 = vmatprep.subr.mxu0 %v18396_v13 }
 0x807   :  { %v9561_v59 = vpop.permute.xlu1 %9560 }
 0x808   :  { %14551 = vmatmul.mubr.msk.f32.vlgmr.msra.gmra.mxu1 %vm563_vm2, %v16937_v49  ;;  %14596 = vmatmul.mubr.msk.f32.vlgmr.msra.gmra.mxu0 %vm563_vm2, %v9561_v59 }
 0x809   :  { %14559 = vmatpush3.xpose.msk.msra.mxu1 %vm563_vm2, %v16941_v51  ;;  %14560 = vmatprep.mubr.msk.f32.mxu1 %vm15199_vm1, %v18396_v13  ;;  %v9641_v49 = vpop.permute.xlu0 %9640 }
 0x80a   :  { %14568 = vmatprep.subr.mxu1 %v18396_v13  ;;  %14605 = vmatprep.mubr.msk.f32.mxu0 %vm15199_vm1, %v18396_v13 }
 0x80c   :  { %14561 = vmatmul.mubr.msk.f32.vlgmr.msra.gmra.mxu1 %vm563_vm2, %v9015_v14 }
 0x80d   :  { %14569 = vmatpush3.xpose.msk.msra.mxu1 %vm563_vm2, %v9173_v21  ;;  %14570 = vmatprep.mubr.msk.f32.mxu1 %vm15199_vm1, %v18396_v13  ;;  %v9639_v51 = vpop.permute.xlu0 %9638 }
 0x80e   :  { %14578 = vmatprep.subr.mxu1 %v18396_v13 }
 0x810   :  { %14571 = vmatmul.mubr.msk.f32.vlgmr.msra.gmra.mxu1 %vm563_vm2, %v9171_v17 }
 0x811   :  { %14579 = vmatpush3.xpose.msk.msra.mxu1 %vm563_vm2, %v9329_v52  ;;  %14580 = vmatprep.mubr.msk.f32.mxu1 %vm15199_vm1, %v18396_v13 }
 0x812   :  { %14588 = vmatprep.subr.mxu1 %v18396_v13 }
 0x814   :  { %14581 = vmatmul.mubr.msk.f32.vlgmr.msra.gmra.mxu1 %vm563_vm2, %v9327_v56 }
 0x815   :  { %14589 = vmatpush3.xpose.msk.msra.mxu1 %vm563_vm2, %v9485_v60  ;;  %14590 = vmatprep.mubr.msk.f32.mxu1 %vm15199_vm1, %v18396_v13 }
 0x816   :  { %14598 = vmatprep.subr.mxu1 %v18396_v13 }
 0x818   :  { %14591 = vmatmul.mubr.msk.f32.vlgmr.msra.gmra.mxu1 %vm563_vm2, %v9483_v46 }
 0x819   :  { %14599 = vmatpush3.xpose.msk.msra.mxu1 %vm563_vm2, %v9641_v49  ;;  %14600 = vmatprep.mubr.msk.f32.mxu1 %vm15199_vm1, %v18396_v13 }
 0x81a   :  { %14608 = vmatprep.subr.mxu1 %v18396_v13 }
 0x81c   :  { %14601 = vmatmul.mubr.msk.f32.vlgmr.msra.gmra.mxu1 %vm563_vm2, %v9639_v51 }
 0x81d   :  { %14610 = vmatprep.mubr.msk.f32.mxu1 %vm15199_vm1, %v18396_v13 }
 0x86e   :  { %v17130_v18 = vpop.f32.mrf.mxu0 }
 0x870   :  { %v14447_v32 = vpop.f32.mrf.mxu0 }
 0x872   :  { %v17132_v40 = vpop.f32.mrf.mxu1 }
 0x873   :  { %v17134_v62 = vpop.f32.mrf.mxu0 }
 0x874   :  { %v14452_v35 = vpop.f32.mrf.mxu1 }
 0x875   :  { %v14457_v33 = vpop.f32.mrf.mxu0 }
 0x876   :  { %v17136_v31 = vpop.f32.mrf.mxu1 }
 0x877   :  { %v17138_v26 = vpop.f32.mrf.mxu0 }
 0x878   :  { %v14462_v2 = vpop.f32.mrf.mxu1 }
 0x879   :  { %v14467_v19 = vpop.f32.mrf.mxu0 }
 0x87a   :  { %v17140_v24 = vpop.f32.mrf.mxu1 }
 0x87b   :  { %v17142_v25 = vpop.f32.mrf.mxu0 }
 0x87c   :  { %v14472_v61 = vpop.f32.mrf.mxu1 }
 0x87d   :  { %v14477_v5 = vpop.f32.mrf.mxu0 }
 0x87e   :  { %v17144_v9 = vpop.f32.mrf.mxu1 }
 0x87f   :  { %v17146_v23 = vpop.f32.mrf.mxu0 }
 0x880   :  { %v14482_v63 = vpop.f32.mrf.mxu1 }
 0x881   :  { %v14487_v0 = vpop.f32.mrf.mxu0 }
 0x882   :  { %v17148_v12 = vpop.f32.mrf.mxu1 }
 0x883   :  { %v17150_v34 = vpop.f32.mrf.mxu0 }
 0x884   :  { %v14492_v15 = vpop.f32.mrf.mxu1 }
 0x885   :  { %v14497_v8 = vpop.f32.mrf.mxu0 }
 0x886   :  { %v17152_v10 = vpop.f32.mrf.mxu1 }
 0x887   :  { %v17154_v3 = vpop.f32.mrf.mxu0 }
 0x888   :  { %v14502_v22 = vpop.f32.mrf.mxu1 }
 0x889   :  { %v14507_v43 = vpop.f32.mrf.mxu0 }
 0x88a   :  { %v17156_v30 = vpop.f32.mrf.mxu1 }
 0x88c   :  { %v14512_v29 = vpop.f32.mrf.mxu1 }
 0x88e   :  { %v17158_v11 = vpop.f32.mrf.mxu0 }
 0x890   :  { %v14517_v44 = vpop.f32.mrf.mxu0 }
 0x892   :  { %v8542_v4 = vpop.f32.mrf.mxu0 }
 0x893   :  { %v17160_v1 = vmul.f32 0.35355338, %v8542_v4 }
 0x894   :  { %v14527_v20 = vpop.f32.mrf.mxu0 }
 0x895   :  { %v9732_v6 = vsel %vm563_vm2, %v17160_v1, -inf }
 0x896   :  { %9733 = vmax.xlane.f32.xlu1 %v9732_v6  ;;  %v8698_v38 = vpop.f32.mrf.mxu0 }
 0x897   :  { %v17168_v53 = vmul.f32 0.35355338, %v8698_v38 }
 0x898   :  { %v14537_v36 = vpop.f32.mrf.mxu0 }
 0x899   :  { %v9738_v59 = vsel %vm563_vm2, %v17168_v53, -inf }
 0x89a   :  { %v8854_v37 = vpop.f32.mrf.mxu0 }
 0x89b   :  { %v17174_v57 = vmul.f32 0.35355338, %v8854_v37 }
 0x89c   :  { %v14547_v39 = vpop.f32.mrf.mxu0 }
 0x89d   :  { %v9744_v2 = vsel %vm563_vm2, %v17174_v57, -inf }
 0x89e   :  { %v9010_v41 = vpop.f32.mrf.mxu0 }
 0x89f   :  { %v17182_v35 = vmul.f32 0.35355338, %v9010_v41 }
 0x8a0   :  { %v14557_v7 = vpop.f32.mrf.mxu0 }
 0x8a1   :  { %v9750_v15 = vsel %vm563_vm2, %v17182_v35, -inf }
 0x8b0   :  { %v9166_v14 = vpop.f32.mrf.mxu0 }
 0x8b1   :  { %v17190_v63 = vmul.f32 0.35355338, %v9166_v14 }
 0x8b2   :  { %v14567_v28 = vpop.f32.mrf.mxu0 }
 0x8b3   :  { %v9756_v4 = vsel %vm563_vm2, %v17190_v63, -inf }
 0x8b8   :  { %v9322_v27 = vpop.f32.mrf.mxu0 }
 0x8b9   :  { %v17198_v29 = vmul.f32 0.35355338, %v9322_v27 }
 0x8ba   :  { %v14577_v21 = vpop.f32.mrf.mxu0 }
 0x8bb   :  { %v9762_v39 = vsel %vm563_vm2, %v17198_v29, -inf }
 0x8bc   :  { %v17164_v16 = vpop.f32.mrf.mxu1 }
 0x8be   :  { %v14522_v17 = vpop.f32.mrf.mxu1 }
 0x8c0   :  { %v8620_v42 = vpop.f32.mrf.mxu1  ;;  %v9478_v45 = vpop.f32.mrf.mxu0 }
 0x8c1   :  { %v17166_v48 = vmul.f32 0.35355338, %v8620_v42  ;;  %v17206_v36 = vmul.f32 0.35355338, %v9478_v45 }
 0x8c2   :  { %v14532_v50 = vpop.f32.mrf.mxu1  ;;  %v14587_v52 = vpop.f32.mrf.mxu0 }
 0x8c3   :  { %v9735_v54 = vsel %vm563_vm2, %v17166_v48, -inf  ;;  %v9768_v21 = vsel %vm563_vm2, %v17206_v36, -inf  ;;  %v18519_v50 = vld [vmem:[#allocation17_spill] sm:$0xff]  ;;  %v18520_v52 = vld [vmem:[#allocation20_spill] sm:$0xff] }
 0x8c4   :  { %9736 = vmax.xlane.f32.xlu0 %v9735_v54  ;;  %v8776_v55 = vpop.f32.mrf.mxu1  ;;  %v18521_v54 = vld [vmem:[#allocation19_spill] sm:$0xff] }
 0x8c5   :  { %v17172_v47 = vmul.f32 0.35355338, %v8776_v55  ;;  %v18522_v55 = vld [vmem:[#allocation18_spill] sm:$0xff] }
 0x8c6   :  { %v14542_v56 = vpop.f32.mrf.mxu1 }
 0x8c7   :  { %v9741_v58 = vsel %vm563_vm2, %v17172_v47, -inf  ;;  %v18523_v56 = vld [vmem:[#allocation22_spill] sm:$0xff] }
 0x8c8   :  { %v8932_v60 = vpop.f32.mrf.mxu1  ;;  %9742 = vmax.xlane.f32.xlu1 %v9741_v58  ;;  %9739 = vmax.xlane.f32.xlu0 %v9738_v59  ;;  %v9634_v46 = vpop.f32.mrf.mxu0  ;;  %v18524_v58 = vld [vmem:[#allocation21_spill] sm:$0xff]  ;;  %v18525_v59 = vld [vmem:[#allocation24_spill] sm:$0xff] }
 0x8c9   :  { %v17180_v49 = vmul.f32 0.35355338, %v8932_v60  ;;  %v17214_v28 = vmul.f32 0.35355338, %v9634_v46  ;;  %v18526_v60 = vld [vmem:[#allocation23_spill] sm:$0xff]  ;;  %v18527_v46 = vld [vmem:[#allocation28_spill] sm:$0xff] }
 0x8ca   :  { %v14552_v51 = vpop.f32.mrf.mxu1  ;;  %v14597_v32 = vpop.f32.mrf.mxu0 }
 0x8cb   :  { %v9747_v33 = vsel %vm563_vm2, %v17180_v49, -inf  ;;  %v9774_v45 = vsel %vm563_vm2, %v17214_v28, -inf }
 0x8cc   :  { %v9088_v19 = vpop.f32.mrf.mxu1  ;;  %9748 = vmax.xlane.f32.xlu1 %v9747_v33  ;;  %9745 = vmax.xlane.f32.xlu0 %v9744_v2 }
 0x8cd   :  { %v17188_v61 = vmul.f32 0.35355338, %v9088_v19 }
 0x8ce   :  { %v14562_v5 = vpop.f32.mrf.mxu1 }
 0x8cf   :  { %v9753_v0 = vsel %vm563_vm2, %v17188_v61, -inf }
 0x8d0   :  { %v9244_v8 = vpop.f32.mrf.mxu1  ;;  %9754 = vmax.xlane.f32.xlu1 %v9753_v0  ;;  %9751 = vmax.xlane.f32.xlu0 %v9750_v15  ;;  %v18528_v15 = vld [vmem:[#allocation26_spill] sm:$0xff] }
 0x8d1   :  { %v17196_v22 = vmul.f32 0.35355338, %v9244_v8 }
 0x8d2   :  { %v14572_v43 = vpop.f32.mrf.mxu1 }
 0x8d3   :  { %v9759_v44 = vsel %vm563_vm2, %v17196_v22, -inf }
 0x8d4   :  { %v9400_v20 = vpop.f32.mrf.mxu1  ;;  %9760 = vmax.xlane.f32.xlu1 %v9759_v44  ;;  %9757 = vmax.xlane.f32.xlu0 %v9756_v4 }
 0x8d5   :  { %v17204_v6 = vmul.f32 0.35355338, %v9400_v20 }
 0x8d6   :  { %v14582_v38 = vpop.f32.mrf.mxu1 }
 0x8d7   :  { %v9765_v37 = vsel %vm563_vm2, %v17204_v6, -inf }
 0x8d8   :  { %v9556_v41 = vpop.f32.mrf.mxu1  ;;  %9766 = vmax.xlane.f32.xlu1 %v9765_v37  ;;  %9763 = vmax.xlane.f32.xlu0 %v9762_v39 }
 0x8d9   :  { %v17212_v7 = vmul.f32 0.35355338, %v9556_v41 }
 0x8da   :  { %v14592_v14 = vpop.f32.mrf.mxu1 }
 0x8db   :  { %v9771_v27 = vsel %vm563_vm2, %v17212_v7, -inf }
 0x8dc   :  { %v9712_v17 = vpop.f32.mrf.mxu1  ;;  %9772 = vmax.xlane.f32.xlu1 %v9771_v27  ;;  %9769 = vmax.xlane.f32.xlu0 %v9768_v21 }
 0x8dd   :  { %v17241_v2 = vmul.f32 0.35355338, %v9712_v17 }
 0x8de   :  { %v14602_v42 = vpop.f32.mrf.mxu1 }
 0x8df   :  { %v9777_v19 = vsel %vm563_vm2, %v17241_v2, -inf }
 0x8e0   :  { %9775 = vmax.xlane.f32.xlu0 %v9774_v45 }
 0x8ed   :  { %9984 = vrot.lane.b32.xlu1 %v18519_v50, %s15202_s23 }
 0x8f1   :  { %10060 = vrot.lane.b32.xlu1 %v18520_v52, %s15202_s23 }
 0x8f5   :  { %10136 = vrot.lane.b32.xlu1 %v18521_v54, %s15202_s23 }
 0x8f6   :  { %9908 = vrot.lane.b32.xlu0 %v18522_v55, %s15202_s23 }
 0x8f9   :  { %10212 = vrot.lane.b32.xlu1 %v18523_v56, %s15202_s23 }
 0x8fd   :  { %10288 = vrot.lane.b32.xlu1 %v18524_v58, %s15202_s23 }
 0x901   :  { %10364 = vrot.lane.b32.xlu1 %v18525_v59, %s15202_s23 }
 0x905   :  { %10440 = vrot.lane.b32.xlu1 %v18526_v60, %s15202_s23 }
 0x909   :  { %10516 = vrot.lane.b32.xlu1 %v18527_v46, %s15202_s23 }
 0x91f   :  { %v9734_v51 = vpop.xlane.xlu1 %9733 }
 0x920   :  { %v9780_v32 = vsub.f32 %v17160_v1, %v9734_v51 }
 0x922   :  { %v9796_v33 = vmul.f32 1.442695, %v9780_v32 }
 0x924   :  { %15034 = vpow2.f32 %v9796_v33 }
 0x92d   :  { %9778 = vmax.xlane.f32.xlu1 %v9777_v19 }
 0x931   :  { %v17245_v5 = vpop.eup %15034 }
 0x932   :  { %v9828_v0 = vsel %vm563_vm2, %v17245_v5, 0.0 }
 0x933   :  { %9829 = vadd.xlane.f32.xlu0 %v9828_v0 }
 0x93e   :  { %10592 = vrot.lane.b32.xlu1 %v18528_v15, %s15202_s23 }
 0x94d   :  { %v9737_v8 = vpop.xlane.xlu0 %9736 }
 0x94e   :  { %v9781_v1 = vsub.f32 %v17166_v48, %v9737_v8 }
 0x950   :  { %v9798_v43 = vmul.f32 1.442695, %v9781_v1 }
 0x951   :  { %v9743_v44 = vpop.xlane.xlu1 %9742  ;;  %v9740_v4 = vpop.xlane.xlu0 %9739 }
 0x952   :  { %15036 = vpow2.f32 %v9798_v43  ;;  %v9783_v20 = vsub.f32 %v17172_v47, %v9743_v44  ;;  %v9782_v38 = vsub.f32 %v17168_v53, %v9740_v4 }
 0x954   :  { %v9802_v37 = vmul.f32 1.442695, %v9783_v20  ;;  %v9800_v39 = vmul.f32 1.442695, %v9782_v38 }
 0x955   :  { %v9749_v41 = vpop.xlane.xlu1 %9748  ;;  %v9746_v14 = vpop.xlane.xlu0 %9745 }
 0x956   :  { %15038 = vpow2.f32 %v9802_v37  ;;  %v9785_v27 = vsub.f32 %v17180_v49, %v9749_v41  ;;  %v9784_v21 = vsub.f32 %v17174_v57, %v9746_v14 }
 0x957   :  { %15040 = vpow2.f32 %v9800_v39 }
 0x958   :  { %v9806_v17 = vmul.f32 1.442695, %v9785_v27  ;;  %v9804_v48 = vmul.f32 1.442695, %v9784_v21 }
 0x959   :  { %v9755_v42 = vpop.xlane.xlu1 %9754  ;;  %v9752_v45 = vpop.xlane.xlu0 %9751 }
 0x95a   :  { %15042 = vpow2.f32 %v9806_v17  ;;  %v9787_v50 = vsub.f32 %v17188_v61, %v9755_v42  ;;  %v9786_v47 = vsub.f32 %v17182_v35, %v9752_v45 }
 0x95b   :  { %15044 = vpow2.f32 %v9804_v48 }
 0x95c   :  { %v9810_v53 = vmul.f32 1.442695, %v9787_v50  ;;  %v9808_v52 = vmul.f32 1.442695, %v9786_v47 }
 0x95d   :  { %v9761_v54 = vpop.xlane.xlu1 %9760  ;;  %v9758_v55 = vpop.xlane.xlu0 %9757 }
 0x95e   :  { %15046 = vpow2.f32 %v9810_v53  ;;  %v9789_v49 = vsub.f32 %v17196_v22, %v9761_v54  ;;  %v9788_v57 = vsub.f32 %v17190_v63, %v9758_v55 }
 0x95f   :  { %v17260_v56 = vpop.eup %15036  ;;  %15048 = vpow2.f32 %v9808_v52 }
 0x960   :  { %v9814_v58 = vmul.f32 1.442695, %v9789_v49  ;;  %v9812_v59 = vmul.f32 1.442695, %v9788_v57  ;;  %v9831_v61 = vsel %vm563_vm2, %v17260_v56, 0.0 }
 0x961   :  { %v9767_v60 = vpop.xlane.xlu1 %9766  ;;  %v9764_v35 = vpop.xlane.xlu0 %9763 }
 0x962   :  { %15050 = vpow2.f32 %v9814_v58  ;;  %v9791_v46 = vsub.f32 %v17204_v6, %v9767_v60  ;;  %v9790_v51 = vsub.f32 %v17198_v29, %v9764_v35  ;;  %9832 = vadd.xlane.f32.xlu1 %v9831_v61  ;;  %v18529_v60 = vld [vmem:[#allocation29_spill] sm:$0xff]  ;;  %v18530_v35 = vld [vmem:[#allocation32_spill] sm:$0xff] }
 0x963   :  { %v17266_v32 = vpop.eup %15038  ;;  %15052 = vpow2.f32 %v9812_v59 }
 0x964   :  { %v17268_v63 = vpop.eup %15040  ;;  %v9818_v22 = vmul.f32 1.442695, %v9791_v46  ;;  %v9816_v33 = vmul.f32 1.442695, %v9790_v51  ;;  %v9837_v19 = vsel %vm563_vm2, %v17266_v32, 0.0  ;;  %v18531_v51 = vld [vmem:[#allocation31_spill] sm:$0xff] }
 0x965   :  { %v9773_v0 = vpop.xlane.xlu1 %9772  ;;  %v9770_v15 = vpop.xlane.xlu0 %9769  ;;  %v9834_v8 = vsel %vm563_vm2, %v17268_v63, 0.0 }
 0x966   :  { %15054 = vpow2.f32 %v9818_v22  ;;  %v9793_v6 = vsub.f32 %v17212_v7, %v9773_v0  ;;  %v9792_v29 = vsub.f32 %v17206_v36, %v9770_v15  ;;  %9835 = vadd.xlane.f32.xlu0 %v9834_v8  ;;  %9838 = vadd.xlane.f32.xlu1 %v9837_v19  ;;  %v18533_v19 = vld [vmem:[#allocation25_spill] sm:$0xff]  ;;  %v18534_v15 = vld [vmem:[#allocation7_spill] sm:$0xff] }
 0x967   :  { %v17276_v1 = vpop.eup %15042  ;;  %15056 = vpow2.f32 %v9816_v33  ;;  %v18532_v33 = vld [vmem:[#allocation27_spill] sm:$0xff] }
 0x968   :  { %v17278_v43 = vpop.eup %15044  ;;  %v9822_v44 = vmul.f32 1.442695, %v9793_v6  ;;  %v9820_v4 = vmul.f32 1.442695, %v9792_v29  ;;  %v9843_v20 = vsel %vm563_vm2, %v17276_v1, 0.0  ;;  %v18535_v6 = vld [vmem:[#allocation9_spill] sm:$0xff] }
 0x969   :  { %v9985_v38 = vpop.permute.xlu1 %9984  ;;  %v9840_v37 = vsel %vm563_vm2, %v17278_v43, 0.0  ;;  %v9776_v39 = vpop.xlane.xlu0 %9775 }
 0x96a   :  { %15058 = vpow2.f32 %v9822_v44  ;;  %9841 = vadd.xlane.f32.xlu0 %v9840_v37  ;;  %v9794_v36 = vsub.f32 %v17214_v28, %v9776_v39  ;;  %9844 = vadd.xlane.f32.xlu1 %v9843_v20  ;;  %v18537_v37 = vld [vmem:[#allocation11_spill] sm:$0xff] }
 0x96b   :  { %v17285_v7 = vpop.eup %15046  ;;  %15060 = vpow2.f32 %v9820_v4  ;;  %14609 = vmatpush3.msra.mxu1 %v9985_v38  ;;  %v18536_v4 = vld [vmem:[#allocation8_spill] sm:$0xff] }
 0x96c   :  { %v17287_v41 = vpop.eup %15048  ;;  %v9824_v14 = vmul.f32 1.442695, %v9794_v36  ;;  %v9849_v27 = vsel %vm563_vm2, %v17285_v7, 0.0  ;;  %14618 = vmatprep.subr.mxu1 %v18396_v13 }
 0x96d   :  { %v9846_v21 = vsel %vm563_vm2, %v17287_v41, 0.0  ;;  %v9909_v17 = vpop.permute.xlu0 %9908  ;;  %v10061_v61 = vpop.permute.xlu1 %10060 }
 0x96e   :  { %15062 = vpow2.f32 %v9824_v14  ;;  %9847 = vadd.xlane.f32.xlu0 %v9846_v21  ;;  %9850 = vadd.xlane.f32.xlu1 %v9849_v27  ;;  %v18539_v27 = vld [vmem:[#allocation15_spill] sm:$0xff]  ;;  %v18543_v21 = vld [vmem:[#allocation5_spill] sm:$0xff] }
 0x96f   :  { %v17294_v28 = vpop.eup %15050  ;;  %14604 = vmatpush3.msra.mxu0 %v9909_v17 }
 0x970   :  { %v17296_v48 = vpop.eup %15052  ;;  %v9855_v42 = vsel %vm563_vm2, %v17294_v28, 0.0  ;;  %14613 = vmatprep.subr.mxu0 %v18396_v13 }
 0x971   :  { %v9852_v45 = vsel %vm563_vm2, %v17296_v48, 0.0  ;;  %v17327_v46 = vpop.permute.xlu1 %10136 }
 0x972   :  { %9853 = vadd.xlane.f32.xlu0 %v9852_v45  ;;  %9856 = vadd.xlane.f32.xlu1 %v9855_v42 }
 0x973   :  { %v17303_v50 = vpop.eup %15054 }
 0x974   :  { %v17305_v47 = vpop.eup %15056  ;;  %v9861_v53 = vsel %vm563_vm2, %v17303_v50, 0.0 }
 0x975   :  { %v9858_v52 = vsel %vm563_vm2, %v17305_v47, 0.0  ;;  %v17331_v22 = vpop.permute.xlu1 %10212 }
 0x976   :  { %9859 = vadd.xlane.f32.xlu0 %v9858_v52  ;;  %9862 = vadd.xlane.f32.xlu1 %v9861_v53  ;;  %v18545_v52 = vld [vmem:[#allocation10_spill] sm:$0xff] }
 0x977   :  { %v17311_v54 = vpop.eup %15058 }
 0x978   :  { %v17313_v55 = vpop.eup %15060  ;;  %v9867_v49 = vsel %vm563_vm2, %v17311_v54, 0.0 }
 0x979   :  { %v9864_v57 = vsel %vm563_vm2, %v17313_v55, 0.0  ;;  %v17337_v0 = vpop.permute.xlu1 %10288 }
 0x97a   :  { %9865 = vadd.xlane.f32.xlu0 %v9864_v57  ;;  %9868 = vadd.xlane.f32.xlu1 %v9867_v49 }
 0x97b   :  { %v17319_v58 = vpop.eup %15062 }
 0x97c   :  { %v9870_v59 = vsel %vm563_vm2, %v17319_v58, 0.0 }
 0x97d   :  { %v17341_v8 = vpop.permute.xlu1 %10364 }
 0x97e   :  { %9871 = vadd.xlane.f32.xlu1 %v9870_v59 }
 0x981   :  { %v17347_v29 = vpop.permute.xlu1 %10440 }
 0x985   :  { %v17351_v44 = vpop.permute.xlu1 %10516 }
 0x98f   :  { %10744 = vrot.lane.b32.xlu1 %v18529_v60, %s15202_s23  ;;  %v18546_v60 = vld [vmem:[#allocation49_spill] sm:$0xff] }
 0x993   :  { %10820 = vrot.lane.b32.xlu1 %v18530_v35, %s15202_s23 }
 0x997   :  { %10896 = vrot.lane.b32.xlu1 %v18531_v51, %s15202_s23 }
 0x99b   :  { %10972 = vrot.lane.b32.xlu1 %v18532_v33, %s15202_s23 }
 0x99f   :  { %11048 = vrot.lane.b32.xlu1 %v18533_v19, %s15202_s23 }
 0x9a3   :  { %11142 = vrot.lane.b32.xlu1 %v18534_v15, %s15203_s24 }
 0x9a7   :  { %11206 = vrot.lane.b32.xlu1 %v17132_v40, %s15204_s25 }
 0x9ab   :  { %11146 = vrot.lane.b32.xlu1 %v18535_v6, %s15203_s24 }
 0x9af   :  { %11210 = vrot.lane.b32.xlu1 %v17136_v31, %s15204_s25  ;;  %v18538_v31 = vld [vmem:[#allocation12_spill] sm:$0xff] }
 0x9b3   :  { %11150 = vrot.lane.b32.xlu1 %v18536_v4, %s15203_s24 }
 0x9b6   :  { %v9779_v20 = vpop.xlane.xlu1 %9778 }
 0x9b7   :  { %v9795_v38 = vsub.f32 %v17241_v2, %v9779_v20  ;;  %11214 = vrot.lane.b32.xlu1 %v17140_v24, %s15204_s25 }
 0x9b9   :  { %v9826_v40 = vmul.f32 1.442695, %v9795_v38 }
 0x9bb   :  { %15064 = vpow2.f32 %v9826_v40  ;;  %11154 = vrot.lane.b32.xlu1 %v18537_v37, %s15203_s24  ;;  %v18549_v40 = vld [vmem:[#allocation51_spill] sm:$0xff] }
 0x9bc   :  { %v9830_v39 = vpop.xlane.xlu0 %9829 }
 0x9bd   :  { %15066 = vrcp.f32 %v9830_v39 }
 0x9bf   :  { %11218 = vrot.lane.b32.xlu1 %v17144_v9, %s15204_s25  ;;  %v18540_v9 = vld [vmem:[#allocation54_spill] sm:$0xff] }
 0x9c3   :  { %11158 = vrot.lane.b32.xlu1 %v18538_v31, %s15203_s24 }
 0x9c7   :  { %11222 = vrot.lane.b32.xlu1 %v17148_v12, %s15204_s25  ;;  %v18541_v12 = vld [vmem:[#allocation63_spill] sm:$0xff] }
 0x9c8   :  { %v17366_v2 = vpop.eup %15064 }
 0x9c9   :  { %v9873_v24 = vsel %vm563_vm2, %v17366_v2, 0.0 }
 0x9ca   :  { %v15067_v36 = vpop.eup %15066  ;;  %9874 = vadd.xlane.f32.xlu0 %v9873_v24 }
 0x9cb   :  { %v9892_v14 = vmul.f32 %v15067_v36, %v17245_v5  ;;  %11162 = vrot.lane.b32.xlu1 %v18539_v27, %s15203_s24  ;;  %v18542_v5 = vld [vmem:[#allocation30_spill] sm:$0xff] }
 0x9cd   :  { %14606 = vmatmul.mubr.msk.f32.vlgmr.msra.gmra.mxu0 %vm563_vm2, %v9892_v14 }
 0x9ce   :  { %14614 = vmatpush3.msra.mxu0 %v10061_v61  ;;  %14615 = vmatprep.mubr.msk.f32.mxu0 %vm15199_vm1, %v18396_v13 }
 0x9cf   :  { %11226 = vrot.lane.b32.xlu1 %v17152_v10, %s15204_s25  ;;  %14623 = vmatprep.subr.mxu0 %v18396_v13  ;;  %v17391_v10 = vpop.permute.xlu1 %10592 }
 0x9d3   :  { %11166 = vrot.lane.b32.xlu1 %v18540_v9, %s15203_s24 }
 0x9d7   :  { %11230 = vrot.lane.b32.xlu1 %v17156_v30, %s15204_s25  ;;  %v18544_v30 = vld [vmem:[#allocation6_spill] sm:$0xff] }
 0x9db   :  { %11170 = vrot.lane.b32.xlu1 %v18541_v12, %s15203_s24 }
 0x9df   :  { %11234 = vrot.lane.b32.xlu1 %v17164_v16, %s15204_s25 }
 0x9e0   :  { %10668 = vrot.lane.b32.xlu0 %v18542_v5, %s15202_s23 }
 0x9e4   :  { %11140 = vrot.lane.b32.xlu0 %v18543_v21, %s15203_s24 }
 0x9e8   :  { %11204 = vrot.lane.b32.xlu0 %v17130_v18, %s15204_s25 }
 0x9eb   :  { %v9833_v17 = vpop.xlane.xlu1 %9832 }
 0x9ec   :  { %15068 = vrcp.f32 %v9833_v17  ;;  %11144 = vrot.lane.b32.xlu0 %v18544_v30, %s15203_s24  ;;  %v18551_v17 = vld [vmem:[#allocation46_spill] sm:$0xff] }
 0x9ef   :  { %v9836_v42 = vpop.xlane.xlu0 %9835  ;;  %v9839_v45 = vpop.xlane.xlu1 %9838 }
 0x9f0   :  { %15070 = vrcp.f32 %v9836_v42  ;;  %11208 = vrot.lane.b32.xlu0 %v17134_v62, %s15204_s25 }
 0x9f1   :  { %15072 = vrcp.f32 %v9839_v45 }
 0x9f3   :  { %v9842_v16 = vpop.xlane.xlu0 %9841  ;;  %v9845_v53 = vpop.xlane.xlu1 %9844 }
 0x9f4   :  { %15074 = vrcp.f32 %v9842_v16  ;;  %11148 = vrot.lane.b32.xlu0 %v18545_v52, %s15203_s24 }
 0x9f5   :  { %15076 = vrcp.f32 %v9845_v53  ;;  %v18552_v53 = vld [vmem:[#allocation47_spill] sm:$0xff] }
 0x9f7   :  { %v9848_v18 = vpop.xlane.xlu0 %9847  ;;  %v9851_v49 = vpop.xlane.xlu1 %9850 }
 0x9f8   :  { %15078 = vrcp.f32 %v9848_v18  ;;  %11212 = vrot.lane.b32.xlu0 %v17138_v26, %s15204_s25 }
 0x9f9   :  { %v15069_v57 = vpop.eup %15068  ;;  %15080 = vrcp.f32 %v9851_v49 }
 0x9fa   :  { %v9893_v59 = vmul.f32 %v15069_v57, %v17260_v56 }
 0x9fb   :  { %v9854_v61 = vpop.xlane.xlu0 %9853  ;;  %v9857_v62 = vpop.xlane.xlu1 %9856 }
 0x9fc   :  { %15082 = vrcp.f32 %v9854_v61  ;;  %14611 = vmatmul.mubr.msk.f32.vlgmr.msra.gmra.mxu1 %vm563_vm2, %v9893_v59  ;;  %11152 = vrot.lane.b32.xlu0 %v18546_v60, %s15203_s24 }
 0x9fd   :  { %v15071_v35 = vpop.eup %15070  ;;  %15084 = vrcp.f32 %v9857_v62  ;;  %14619 = vmatpush3.msra.mxu1 %v17327_v46  ;;  %14620 = vmatprep.mubr.msk.f32.mxu1 %vm15199_vm1, %v18396_v13 }
 0x9fe   :  { %v15073_v26 = vpop.eup %15072  ;;  %v9894_v51 = vmul.f32 %v15071_v35, %v17268_v63  ;;  %14628 = vmatprep.subr.mxu1 %v18396_v13 }
 0x9ff   :  { %v9895_v56 = vmul.f32 %v15073_v26, %v17266_v32  ;;  %v9863_v33 = vpop.xlane.xlu1 %9862  ;;  %v9860_v5 = vpop.xlane.xlu0 %9859 }
 0xa00   :  { %14616 = vmatmul.mubr.msk.f32.vlgmr.msra.gmra.mxu0 %vm563_vm2, %v9894_v51  ;;  %11216 = vrot.lane.b32.xlu0 %v17142_v25, %s15204_s25  ;;  %15086 = vrcp.f32 %v9863_v33 }
 0xa01   :  { %v15075_v19 = vpop.eup %15074  ;;  %14624 = vmatpush3.msra.mxu0 %v17331_v22  ;;  %14621 = vmatmul.mubr.msk.f32.vlgmr.msra.gmra.mxu1 %vm563_vm2, %v9895_v56 }
 0xa02   :  { %v15077_v46 = vpop.eup %15076  ;;  %v9896_v15 = vmul.f32 %v15075_v19, %v17278_v43  ;;  %14629 = vmatpush3.msra.mxu1 %v17337_v0  ;;  %14625 = vmatprep.mubr.msk.f32.mxu0 %vm15199_vm1, %v18396_v13 }
 0xa03   :  { %v9897_v32 = vmul.f32 %v15077_v46, %v17276_v1  ;;  %14633 = vmatprep.subr.mxu0 %v18396_v13  ;;  %14630 = vmatprep.mubr.msk.f32.mxu1 %vm15199_vm1, %v18396_v13  ;;  %v9869_v25 = vpop.xlane.xlu1 %9868  ;;  %v18547_v1 = vld [vmem:[#allocation50_spill] sm:$0xff] }
 0xa04   :  { %14638 = vmatprep.subr.mxu1 %v18396_v13  ;;  %14626 = vmatmul.mubr.msk.f32.vlgmr.msra.gmra.mxu0 %vm563_vm2, %v9896_v15  ;;  %15088 = vrcp.f32 %v9869_v25 }
 0xa05   :  { %v15079_v63 = vpop.eup %15078  ;;  %14634 = vmatpush3.msra.mxu0 %v17341_v8  ;;  %14631 = vmatmul.mubr.msk.f32.vlgmr.msra.gmra.mxu1 %vm563_vm2, %v9897_v32  ;;  %15090 = vrcp.f32 %v9860_v5 }
 0xa06   :  { %v15081_v43 = vpop.eup %15080  ;;  %v9898_v22 = vmul.f32 %v15079_v63, %v17287_v41  ;;  %14639 = vmatpush3.msra.mxu1 %v17347_v29  ;;  %11156 = vrot.lane.b32.xlu0 %v18547_v1, %s15203_s24 }
 0xa07   :  { %v9899_v0 = vmul.f32 %v15081_v43, %v17285_v7  ;;  %14635 = vmatprep.mubr.msk.f32.mxu0 %vm15199_vm1, %v18396_v13  ;;  %14643 = vmatprep.subr.mxu0 %v18396_v13  ;;  %v17438_v6 = vpop.xlane.xlu1 %9871  ;;  %v18553_v43 = vld [vmem:[#allocation39_spill] sm:$0xff] }
 0xa08   :  { %14640 = vmatprep.mubr.msk.f32.mxu1 %vm15199_vm1, %v18396_v13  ;;  %14648 = vmatprep.subr.mxu1 %v18396_v13 }
 0xa09   :  { %v15083_v41 = vpop.eup %15082  ;;  %14636 = vmatmul.mubr.msk.f32.vlgmr.msra.gmra.mxu0 %vm563_vm2, %v9898_v22  ;;  %14641 = vmatmul.mubr.msk.f32.vlgmr.msra.gmra.mxu1 %vm563_vm2, %v9899_v0 }
 0xa0a   :  { %v15085_v8 = vpop.eup %15084  ;;  %v9900_v7 = vmul.f32 %v15083_v41, %v17296_v48  ;;  %14644 = vmatpush3.msra.mxu0 %v17351_v44  ;;  %14649 = vmatpush3.msra.mxu1 %v17391_v10  ;;  %v9866_v10 = vpop.xlane.xlu0 %9865 }
 0xa0b   :  { %v9901_v29 = vmul.f32 %v15085_v8, %v17294_v28  ;;  %11220 = vrot.lane.b32.xlu0 %v17146_v23, %s15204_s25  ;;  %14645 = vmatprep.mubr.msk.f32.mxu0 %vm15199_vm1, %v18396_v13  ;;  %v10745_v4 = vpop.permute.xlu1 %10744  ;;  %v18548_v28 = vld [vmem:[#allocation52_spill] sm:$0xff]  ;;  %15092 = vrcp.f32 %v9866_v10 }
 0xa0c   :  { %14650 = vmatprep.mubr.msk.f32.mxu1 %vm15199_vm1, %v18396_v13  ;;  %14658 = vmatprep.subr.mxu1 %v18396_v13  ;;  %15094 = vrcp.f32 %v17438_v6  ;;  %v18554_v6 = vld [vmem:[#allocation41_spill] sm:$0xff] }
 0xa0d   :  { %14646 = vmatmul.mubr.msk.f32.vlgmr.msra.gmra.mxu0 %vm563_vm2, %v9900_v7  ;;  %14651 = vmatmul.mubr.msk.f32.vlgmr.msra.gmra.mxu1 %vm563_vm2, %v9901_v29  ;;  %v15087_v48 = vpop.eup %15086 }
 0xa0e   :  { %14659 = vmatpush3.msra.mxu1 %v10745_v4  ;;  %14660 = vmatprep.mubr.msk.f32.mxu1 %vm15199_vm1, %v18396_v13  ;;  %v9903_v23 = vmul.f32 %v15087_v48, %v17303_v50  ;;  %v18555_v48 = vld [vmem:[#allocation43_spill] sm:$0xff] }
 0xa0f   :  { %11160 = vrot.lane.b32.xlu0 %v18548_v28, %s15203_s24  ;;  %v10821_v44 = vpop.permute.xlu1 %10820  ;;  %14668 = vmatprep.subr.mxu1 %v18396_v13 }
 0xa10   :  { %14653 = vmatprep.subr.mxu0 %v18396_v13  ;;  %14655 = vmatprep.mubr.msk.f32.mxu0 %vm15199_vm1, %v18396_v13 }
 0xa11   :  { %14661 = vmatmul.mubr.msk.f32.vlgmr.msra.gmra.mxu1 %vm563_vm2, %v9903_v23  ;;  %v15089_v20 = vpop.eup %15088 }
 0xa12   :  { %14670 = vmatprep.mubr.msk.f32.mxu1 %vm15199_vm1, %v18396_v13  ;;  %v9905_v38 = vmul.f32 %v15089_v20, %v17311_v54  ;;  %v15091_v57 = vpop.eup %15090 }
 0xa13   :  { %11224 = vrot.lane.b32.xlu0 %v17150_v34, %s15204_s25  ;;  %v10897_v50 = vpop.permute.xlu1 %10896  ;;  %v18550_v34 = vld [vmem:[#allocation53_spill] sm:$0xff]  ;;  %v9902_v61 = vmul.f32 %v15091_v57, %v17305_v47 }
 0xa14   :  { %14669 = vmatpush3.msra.mxu1 %v10897_v50  ;;  %v11368_v50 = vld [vmem:[%s18301_s5 + $0x10] sm:$0xff] }
 0xa15   :  { %14671 = vmatmul.mubr.msk.f32.vlgmr.msra.gmra.mxu1 %vm563_vm2, %v9905_v38  ;;  %14678 = vmatprep.subr.mxu1 %v18396_v13  ;;  %v11369_v38 = vld [vmem:[%s18301_s5 + $0x18] sm:$0xff] }
 0xa16   :  { %14680 = vmatprep.mubr.msk.f32.mxu1 %vm15199_vm1, %v18396_v13 }
 0xa17   :  { %11164 = vrot.lane.b32.xlu0 %v18549_v40, %s15203_s24  ;;  %v10973_v37 = vpop.permute.xlu1 %10972  ;;  %v11367_v40 = vld [vmem:[%s18301_s5 + $0x8] sm:$0xff] }
 0xa18   :  { %v15093_v60 = vpop.eup %15092 }
 0xa19   :  { %v9904_v35 = vmul.f32 %v15093_v60, %v17313_v55  ;;  %v15095_v51 = vpop.eup %15094 }
 0xa1a   :  { %v9906_v47 = vmul.f32 %v15095_v51, %v17319_v58 }
 0xa1b   :  { %11228 = vrot.lane.b32.xlu0 %v17154_v3, %s15204_s25  ;;  %v11049_v54 = vpop.permute.xlu1 %11048 }
 0xa1c   :  { %14679 = vmatpush3.msra.mxu1 %v11049_v54 }
 0xa1f   :  { %11168 = vrot.lane.b32.xlu0 %v18550_v34, %s15203_s24  ;;  %v17483_v39 = vpop.permute.xlu1 %11142 }
 0xa23   :  { %11232 = vrot.lane.b32.xlu0 %v17158_v11, %s15204_s25  ;;  %v17487_v31 = vpop.permute.xlu1 %11206 }
 0xa27   :  { %v17489_v24 = vpop.permute.xlu1 %11146 }
 0xa2b   :  { %v17491_v36 = vpop.permute.xlu1 %11210 }
 0xa2f   :  { %v17493_v14 = vpop.permute.xlu1 %11150 }
 0xa33   :  { %v17495_v27 = vpop.permute.xlu1 %11214 }
 0xa37   :  { %v17497_v3 = vpop.permute.xlu1 %11154 }
 0xa3b   :  { %v17499_v9 = vpop.permute.xlu1 %11218 }
 0xa3f   :  { %v17501_v12 = vpop.permute.xlu1 %11158 }
 0xa43   :  { %v17503_v21 = vpop.permute.xlu1 %11222 }
 0xa47   :  { %v11163_v11 = vpop.permute.xlu1 %11162 }
 0xa48   :  { %v11327_v30 = vsel %vm563_vm2, %v18551_v17, %v11163_v11 }
 0xa4b   :  { %v11227_v42 = vpop.permute.xlu1 %11226 }
 0xa4c   :  { %v17508_v45 = vsel %vm11332_vm3, %v11327_v30, %v11227_v42 }
 0xa4f   :  { %v11167_v16 = vpop.permute.xlu1 %11166 }
 0xa50   :  { %v11329_v52 = vsel %vm563_vm2, %v18552_v53, %v11167_v16 }
 0xa53   :  { %v11231_v18 = vpop.permute.xlu1 %11230  ;;  %v9875_v49 = vpop.xlane.xlu0 %9874 }
 0xa54   :  { %v17514_v59 = vsel %vm11332_vm3, %v11329_v52, %v11231_v18  ;;  %15096 = vrcp.f32 %v9875_v49 }
 0xa57   :  { %v10669_v62 = vpop.permute.xlu0 %10668 }
 0xa58   :  { %14654 = vmatpush3.msra.mxu0 %v10669_v62 }
 0xa59   :  { %14656 = vmatmul.mubr.msk.f32.vlgmr.msra.gmra.mxu0 %vm563_vm2, %v9902_v61  ;;  %14663 = vmatprep.subr.mxu0 %v18396_v13 }
 0xa5a   :  { %14664 = vmatpush3.msra.mxu0 %v10821_v44  ;;  %14665 = vmatprep.mubr.msk.f32.mxu0 %vm15199_vm1, %v18396_v13 }
 0xa5b   :  { %v17522_v26 = vpop.permute.xlu0 %11140  ;;  %14673 = vmatprep.subr.mxu0 %v18396_v13 }
 0xa5d   :  { %14666 = vmatmul.mubr.msk.f32.vlgmr.msra.gmra.mxu0 %vm563_vm2, %v9904_v35 }
 0xa5e   :  { %14674 = vmatpush3.msra.mxu0 %v10973_v37  ;;  %14675 = vmatprep.mubr.msk.f32.mxu0 %vm15199_vm1, %v18396_v13  ;;  %v11366_v37 = vld [vmem:[%s18301_s5] sm:$0xff] }
 0xa5f   :  { %v17529_v56 = vpop.permute.xlu0 %11204  ;;  %14683 = vmatprep.subr.mxu0 %v11369_v38 }
 0xa61   :  { %v15097_v33 = vpop.eup %15096  ;;  %14676 = vmatmul.mubr.msk.f32.vlgmr.msra.gmra.mxu0 %vm563_vm2, %v9906_v47 }
 0xa62   :  { %v9907_v55 = vmul.f32 %v15097_v33, %v17366_v2  ;;  %14684 = vmatpush3.msra.mxu0 %v11369_v38  ;;  %v17606_v38 = vpop.permute.xlu1 %11170 }
 0xa63   :  { %v17533_v19 = vpop.permute.xlu0 %11144  ;;  %14685 = vmatprep.subr.mxu0 %v11368_v50 }
 0xa64   :  { %14681 = vmatmul.mubr.msk.f32.vlgmr.msra.gmra.mxu1 %vm563_vm2, %v9907_v55  ;;  %14686 = vmatpush3.msra.mxu0 %v11368_v50 }
 0xa65   :  { %14687 = vmatprep.subr.mxu0 %v11367_v40 }
 0xa66   :  { %14688 = vmatpush3.msra.mxu0 %v11367_v40  ;;  %v17609_v40 = vpop.permute.xlu1 %11234 }
 0xa67   :  { %v17536_v46 = vpop.permute.xlu0 %11208  ;;  %14689 = vmatprep.subr.mxu0 %v11366_v37 }
 0xa68   :  { %14690 = vmatpush3.msra.mxu0 %v11366_v37  ;;  %v18557_v37 = vld [vmem:[#allocation37_spill] sm:$0xff] }
 0xa69   :  { %14747 = vmatprep.subr.mxu0 %v18396_v13 }
 0xa6b   :  { %v17538_v15 = vpop.permute.xlu0 %11148 }
 0xa6f   :  { %v17540_v32 = vpop.permute.xlu0 %11212 }
 0xa73   :  { %v17542_v25 = vpop.permute.xlu0 %11152 }
 0xa77   :  { %v17544_v58 = vpop.permute.xlu0 %11216 }
 0xa7b   :  { %v11157_v63 = vpop.permute.xlu0 %11156 }
 0xa7c   :  { %v11324_v22 = vsel %vm563_vm2, %v18553_v43, %v11157_v63 }
 0xa7f   :  { %v11221_v1 = vpop.permute.xlu0 %11220 }
 0xa80   :  { %v17549_v2 = vsel %vm11332_vm3, %v11324_v22, %v11221_v1  ;;  %v18556_v22 = vld [vmem:[#allocation34_spill] sm:$0xff] }
 0xa81   :  { %v11316_v1 = vsel %vm563_vm2, %v18556_v22, %v17522_v26 }
 0xa83   :  { %v11161_v0 = vpop.permute.xlu0 %11160 }
 0xa84   :  { %v11326_v41 = vsel %vm563_vm2, %v18554_v6, %v11161_v0  ;;  %v11333_v0 = vsel %vm11332_vm3, %v11316_v1, %v17529_v56 }
 0xa87   :  { %v11225_v8 = vpop.permute.xlu0 %11224 }
 0xa88   :  { %v17554_v7 = vsel %vm11332_vm3, %v11326_v41, %v11225_v8 }
 0xa8b   :  { %v11165_v29 = vpop.permute.xlu0 %11164 }
 0xa8c   :  { %v11328_v23 = vsel %vm563_vm2, %v18555_v48, %v11165_v29  ;;  %v11566_v29 = vld [vmem:[%s18302_s6 + $0x18] sm:$0xff] }
 0xa8d   :  { %v9980_v4 = vpop.f32.mrf.mxu0  ;;  %14715 = vmatprep.subr.mxu1 %v11566_v29 }
 0xa8e   :  { %11268 = vrot.lane.b32.xlu0 %v9980_v4, %s15205_s26  ;;  %v11565_v4 = vld [vmem:[%s18302_s6 + $0x10] sm:$0xff]  ;;  %14716 = vmatpush3.msra.mxu1 %v11566_v29 }
 0xa8f   :  { %v11229_v28 = vpop.permute.xlu0 %11228  ;;  %v14607_v44 = vpop.f32.mrf.mxu0  ;;  %14717 = vmatprep.subr.mxu1 %v11565_v4 }
 0xa90   :  { %v17560_v20 = vsel %vm11332_vm3, %v11328_v23, %v11229_v28  ;;  %14718 = vmatpush3.msra.mxu1 %v11565_v4 }
 0xa93   :  { %v17586_v63 = vpop.permute.xlu0 %11168 }
 0xa97   :  { %v17588_v43 = vpop.permute.xlu0 %11232 }
 0xabc   :  { %v10056_v54 = vpop.f32.mrf.mxu1 }
 0xabd   :  { %11270 = vrot.lane.b32.xlu1 %v10056_v54, %s15205_s26  ;;  %v11317_v54 = vsel %vm563_vm2, %v18557_v37, %v17483_v39  ;;  %v18566_v37 = vld [vmem:[#allocation48_spill] sm:$0xff] }
 0xabe   :  { %v14612_v34 = vpop.f32.mrf.mxu1 }
 0xabf   :  { %v11334_v34 = vsel %vm11332_vm3, %v11317_v54, %v17487_v31 }
 0xac0   :  { %v10132_v5 = vpop.f32.mrf.mxu0 }
 0xac1   :  { %v10208_v11 = vpop.f32.mrf.mxu1  ;;  %11272 = vrot.lane.b32.xlu0 %v10132_v5, %s15205_s26 }
 0xac2   :  { %11274 = vrot.lane.b32.xlu1 %v10208_v11, %s15205_s26  ;;  %v14617_v10 = vpop.f32.mrf.mxu0 }
 0xac3   :  { %v14622_v17 = vpop.f32.mrf.mxu1  ;;  %v18558_v10 = vld [vmem:[#allocation36_spill] sm:$0xff] }
 0xac4   :  { %v10284_v30 = vpop.f32.mrf.mxu0  ;;  %v11318_v17 = vsel %vm563_vm2, %v18558_v10, %v17533_v19  ;;  %v18560_v19 = vld [vmem:[#allocation40_spill] sm:$0xff] }
 0xac5   :  { %v10360_v42 = vpop.f32.mrf.mxu1  ;;  %11276 = vrot.lane.b32.xlu0 %v10284_v30, %s15205_s26  ;;  %v18559_v30 = vld [vmem:[#allocation38_spill] sm:$0xff] }
 0xac6   :  { %11278 = vrot.lane.b32.xlu1 %v10360_v42, %s15205_s26  ;;  %v14627_v16 = vpop.f32.mrf.mxu0  ;;  %v11319_v42 = vsel %vm563_vm2, %v18559_v30, %v17489_v24  ;;  %v18561_v24 = vld [vmem:[#allocation33_spill] sm:$0xff] }
 0xac7   :  { %v14632_v53 = vpop.f32.mrf.mxu1  ;;  %v11335_v16 = vsel %vm11332_vm3, %v11318_v17, %v17536_v46  ;;  %v11336_v31 = vsel %vm11332_vm3, %v11319_v42, %v17491_v36  ;;  %v11321_v46 = vsel %vm563_vm2, %v18561_v24, %v17493_v14 }
 0xac9   :  { %v10436_v52 = vpop.f32.mrf.mxu0  ;;  %v10512_v18 = vpop.f32.mrf.mxu1 }
 0xaca   :  { %11280 = vrot.lane.b32.xlu0 %v10436_v52, %s15205_s26  ;;  %11282 = vrot.lane.b32.xlu1 %v10512_v18, %s15205_s26 }
 0xacb   :  { %v14637_v49 = vpop.f32.mrf.mxu0  ;;  %v14642_v57 = vpop.f32.mrf.mxu1 }
 0xacc   :  { %v11320_v49 = vsel %vm563_vm2, %v18560_v19, %v17538_v15  ;;  %v18562_v15 = vld [vmem:[#allocation42_spill] sm:$0xff] }
 0xacd   :  { %v10588_v61 = vpop.f32.mrf.mxu0  ;;  %v10664_v62 = vpop.f32.mrf.mxu1  ;;  %v11337_v36 = vsel %vm11332_vm3, %v11320_v49, %v17540_v32  ;;  %v11323_v14 = vsel %vm563_vm2, %v18562_v15, %v17497_v3  ;;  %v18564_v3 = vld [vmem:[#allocation45_spill] sm:$0xff] }
 0xace   :  { %11284 = vrot.lane.b32.xlu0 %v10588_v61, %s15205_s26  ;;  %11286 = vrot.lane.b32.xlu1 %v10664_v62, %s15205_s26  ;;  %v11338_v61 = vsel %vm11332_vm3, %v11321_v46, %v17495_v27  ;;  %v11340_v27 = vsel %vm11332_vm3, %v11323_v14, %v17499_v9 }
 0xacf   :  { %v14647_v60 = vpop.f32.mrf.mxu0  ;;  %v14652_v35 = vpop.f32.mrf.mxu1 }
 0xad1   :  { %v10816_v51 = vpop.f32.mrf.mxu1 }
 0xad2   :  { %11290 = vrot.lane.b32.xlu1 %v10816_v51, %s15205_s26  ;;  %v18563_v51 = vld [vmem:[#allocation35_spill] sm:$0xff] }
 0xad3   :  { %v14662_v47 = vpop.f32.mrf.mxu1  ;;  %v11322_v32 = vsel %vm563_vm2, %v18563_v51, %v17542_v25 }
 0xad4   :  { %v11339_v47 = vsel %vm11332_vm3, %v11322_v32, %v17544_v58 }
 0xad5   :  { %v10968_v33 = vpop.f32.mrf.mxu1 }
 0xad6   :  { %11294 = vrot.lane.b32.xlu1 %v10968_v33, %s15205_s26 }
 0xad7   :  { %v14672_v55 = vpop.f32.mrf.mxu1 }
 0xb00   :  { %v11269_v6 = vpop.permute.xlu0 %11268 }
 0xb01   :  { %v11350_v41 = vsel %vm11349_vm4, %v11333_v0, %v11269_v6  ;;  %v11325_v0 = vsel %vm563_vm2, %v18564_v3, %v17501_v12  ;;  %v11564_v12 = vld [vmem:[%s18302_s6 + $0x8] sm:$0xff] }
 0xb02   :  { %14691 = vmatprep.mubr.msk.f32.mxu0 %vm71_vm0, %v11350_v41  ;;  %v11342_v9 = vsel %vm11332_vm3, %v11325_v0, %v17503_v21  ;;  %14719 = vmatprep.subr.mxu1 %v11564_v12  ;;  %v11563_v21 = vld [vmem:[%s18302_s6] sm:$0xff] }
 0xb03   :  { %14720 = vmatpush3.msra.mxu1 %v11564_v12 }
 0xb04   :  { %14721 = vmatprep.subr.mxu1 %v11563_v21 }
 0xb05   :  { %14722 = vmatpush3.msra.mxu1 %v11563_v21 }
 0xb06   :  { %14758 = vmatprep.subr.mxu1 %v18396_v13 }
 0xb19   :  { %v10740_v8 = vpop.f32.mrf.mxu0 }
 0xb1a   :  { %11288 = vrot.lane.b32.xlu0 %v10740_v8, %s15205_s26 }
 0xb1b   :  { %v14657_v26 = vpop.f32.mrf.mxu0 }
 0xb1d   :  { %v10892_v56 = vpop.f32.mrf.mxu0 }
 0xb1e   :  { %11292 = vrot.lane.b32.xlu0 %v10892_v56, %s15205_s26 }
 0xb1f   :  { %v14667_v48 = vpop.f32.mrf.mxu0 }
 0xb21   :  { %v11044_v23 = vpop.f32.mrf.mxu0 }
 0xb22   :  { %11296 = vrot.lane.b32.xlu0 %v11044_v23, %s15205_s26 }
 0xb23   :  { %v14677_v28 = vpop.f32.mrf.mxu0 }
 0xb24   :  { %v11120_v44 = vpop.f32.mrf.mxu1  ;;  %v18565_v28 = vld [vmem:[#allocation44_spill] sm:$0xff] }
 0xb25   :  { %11298 = vrot.lane.b32.xlu1 %v11120_v44, %s15205_s26 }
 0xb26   :  { %v14682_v50 = vpop.f32.mrf.mxu1 }
 0xb2f   :  { %v11271_v5 = vpop.permute.xlu1 %11270 }
 0xb30   :  { %v11351_v11 = vsel %vm11349_vm4, %v11334_v34, %v11271_v5 }
 0xb31   :  { %14692 = vmatmul.mubr.msk.f32.vlgmr.msra.gmra.mxu0 %vm71_vm0, %v11351_v11 }
 0xb33   :  { %v11273_v39 = vpop.permute.xlu0 %11272 }
 0xb34   :  { %v11352_v53 = vsel %vm11349_vm4, %v11335_v16, %v11273_v39  ;;  %v11275_v52 = vpop.permute.xlu1 %11274 }
 0xb35   :  { %v11353_v18 = vsel %vm11349_vm4, %v11336_v31, %v11275_v52  ;;  %14694 = vmatprep.mubr.msk.f32.mxu0 %vm71_vm0, %v11352_v53 }
 0xb36   :  { %14695 = vmatmul.mubr.msk.f32.gmra.mxu0 %vm71_vm0, %v11353_v18 }
 0xb37   :  { %v11277_v57 = vpop.permute.xlu0 %11276 }
 0xb38   :  { %v11354_v62 = vsel %vm11349_vm4, %v11337_v36, %v11277_v57  ;;  %v11279_v60 = vpop.permute.xlu1 %11278 }
 0xb39   :  { %v11355_v35 = vsel %vm11349_vm4, %v11338_v61, %v11279_v60  ;;  %14697 = vmatprep.mubr.msk.f32.mxu0 %vm71_vm0, %v11354_v62  ;;  %v17774_v61 = vld [vmem:[%s18303_s7] ss:$0 sm:$0xff] }
 0xb3a   :  { %14698 = vmatmul.mubr.msk.f32.gmra.mxu0 %vm71_vm0, %v11355_v35 }
 0xb3c   :  { %v11281_v33 = vpop.permute.xlu0 %11280  ;;  %v11283_v55 = vpop.permute.xlu1 %11282 }
 0xb3d   :  { %v11356_v22 = vsel %vm11349_vm4, %v11339_v47, %v11281_v33  ;;  %v11357_v1 = vsel %vm11349_vm4, %v11340_v27, %v11283_v55 }
 0xb3e   :  { %14700 = vmatprep.mubr.msk.f32.mxu0 %vm71_vm0, %v11356_v22 }
 0xb3f   :  { %14701 = vmatmul.mubr.msk.f32.gmra.mxu0 %vm71_vm0, %v11357_v1 }
 0xb40   :  { %v11285_v25 = vpop.permute.xlu0 %11284  ;;  %v11287_v6 = vpop.permute.xlu1 %11286 }
 0xb41   :  { %v11358_v58 = vsel %vm11349_vm4, %v17549_v2, %v11285_v25  ;;  %v11359_v41 = vsel %vm11349_vm4, %v11342_v9, %v11287_v6 }
 0xb42   :  { %14703 = vmatprep.mubr.msk.f32.mxu0 %vm71_vm0, %v11358_v58 }
 0xb43   :  { %14704 = vmatmul.mubr.msk.f32.gmra.mxu0 %vm71_vm0, %v11359_v41 }
 0xb44   :  { %v11291_v2 = vpop.permute.xlu1 %11290 }
 0xb45   :  { %v11361_v4 = vsel %vm11349_vm4, %v17508_v45, %v11291_v2 }
 0xb48   :  { %v11295_v26 = vpop.permute.xlu1 %11294 }
 0xb49   :  { %v11363_v23 = vsel %vm11349_vm4, %v17514_v59, %v11295_v26 }
 0xb8c   :  { %v11289_v8 = vpop.permute.xlu0 %11288 }
 0xb8d   :  { %v11360_v29 = vsel %vm11349_vm4, %v17554_v7, %v11289_v8  ;;  %v11330_v7 = vsel %vm563_vm2, %v18565_v28, %v17586_v63 }
 0xb8e   :  { %14706 = vmatprep.mubr.msk.f32.mxu0 %vm71_vm0, %v11360_v29  ;;  %v11347_v45 = vsel %vm11332_vm3, %v11330_v7, %v17588_v43 }
 0xb8f   :  { %14707 = vmatmul.mubr.msk.f32.gmra.mxu0 %vm71_vm0, %v11361_v4 }
 0xb90   :  { %v11293_v56 = vpop.permute.xlu0 %11292 }
 0xb91   :  { %v11362_v48 = vsel %vm11349_vm4, %v17560_v20, %v11293_v56  ;;  %v11331_v20 = vsel %vm563_vm2, %v18566_v37, %v17606_v38 }
 0xb92   :  { %14709 = vmatprep.mubr.msk.f32.mxu0 %vm71_vm0, %v11362_v48  ;;  %v11348_v59 = vsel %vm11332_vm3, %v11331_v20, %v17609_v40 }
 0xb93   :  { %14710 = vmatmul.mubr.msk.f32.gmra.mxu0 %vm71_vm0, %v11363_v23 }
 0xb94   :  { %v11297_v44 = vpop.permute.xlu0 %11296 }
 0xb95   :  { %v11364_v50 = vsel %vm11349_vm4, %v11347_v45, %v11297_v44 }
 0xb96   :  { %14712 = vmatprep.mubr.msk.f32.mxu0 %vm71_vm0, %v11364_v50 }
 0xb97   :  { %v11299_v54 = vpop.permute.xlu1 %11298 }
 0xb98   :  { %v11365_v63 = vsel %vm11349_vm4, %v11348_v59, %v11299_v54 }
 0xb99   :  { %14713 = vmatmul.mubr.msk.f32.gmra.mxu0 %vm71_vm0, %v11365_v63 }
 0xb9a   :  { %14755 = vmatprep.mubr.msk.f32.mxu0 %vm15199_vm1, %v18396_v13 }
 0xbf1   :  { %v17705_v43 = vpop.f32.mrf.mxu0 }
 0xbf3   :  { %v17707_v34 = vpop.f32.mrf.mxu0 }
 0xbf4   :  { %14723 = vmatprep.mubr.msk.f32.mxu1 %vm71_vm0, %v17707_v34 }
 0xbf5   :  { %14724 = vmatmul.mubr.msk.f32.vlgmr.msra.gmra.mxu1 %vm71_vm0, %v17705_v43 }
 0xbf6   :  { %v17713_v38 = vpop.f32.mrf.mxu0 }
 0xbf8   :  { %v17715_v40 = vpop.f32.mrf.mxu0 }
 0xbf9   :  { %14726 = vmatprep.mubr.msk.f32.mxu1 %vm71_vm0, %v17715_v40 }
 0xbfa   :  { %v17719_v5 = vpop.f32.mrf.mxu0  ;;  %14727 = vmatmul.mubr.msk.f32.gmra.mxu1 %vm71_vm0, %v17713_v38 }
 0xbfc   :  { %v17723_v11 = vpop.f32.mrf.mxu0 }
 0xbfd   :  { %14729 = vmatprep.mubr.msk.f32.mxu1 %vm71_vm0, %v17723_v11 }
 0xbfe   :  { %14730 = vmatmul.mubr.msk.f32.gmra.mxu1 %vm71_vm0, %v17719_v5 }
 0xbff   :  { %v17729_v10 = vpop.f32.mrf.mxu0 }
 0xc01   :  { %v17731_v17 = vpop.f32.mrf.mxu0 }
 0xc02   :  { %14732 = vmatprep.mubr.msk.f32.mxu1 %vm71_vm0, %v17731_v17 }
 0xc03   :  { %v17735_v30 = vpop.f32.mrf.mxu0  ;;  %14733 = vmatmul.mubr.msk.f32.gmra.mxu1 %vm71_vm0, %v17729_v10 }
 0xc05   :  { %v17739_v42 = vpop.f32.mrf.mxu0 }
 0xc06   :  { %14735 = vmatprep.mubr.msk.f32.mxu1 %vm71_vm0, %v17739_v42 }
 0xc07   :  { %14736 = vmatmul.mubr.msk.f32.gmra.mxu1 %vm71_vm0, %v17735_v30 }
 0xc4f   :  { %v17745_v16 = vpop.f32.mrf.mxu0 }
 0xc51   :  { %v17747_v39 = vpop.f32.mrf.mxu0 }
 0xc52   :  { %14738 = vmatprep.mubr.msk.f32.mxu1 %vm71_vm0, %v17747_v39 }
 0xc53   :  { %v17751_v31 = vpop.f32.mrf.mxu0  ;;  %14739 = vmatmul.mubr.msk.f32.gmra.mxu1 %vm71_vm0, %v17745_v16 }
 0xc55   :  { %v17755_v53 = vpop.f32.mrf.mxu0 }
 0xc56   :  { %14741 = vmatprep.mubr.msk.f32.mxu1 %vm71_vm0, %v17755_v53 }
 0xc57   :  { %14742 = vmatmul.mubr.msk.f32.gmra.mxu1 %vm71_vm0, %v17751_v31 }
 0xc59   :  { %v17761_v52 = vpop.f32.mrf.mxu0 }
 0xc5b   :  { %v17763_v18 = vpop.f32.mrf.mxu0 }
 0xc5c   :  { %14744 = vmatprep.mubr.msk.f32.mxu1 %vm71_vm0, %v17763_v18 }
 0xc5d   :  { %14745 = vmatmul.mubr.msk.f32.gmra.mxu1 %vm71_vm0, %v17761_v52 }
 0xc5e   :  { %14766 = vmatprep.mubr.msk.f32.mxu1 %vm15199_vm1, %v18396_v13 }
 0xcb5   :  { %v14725_v19 = vpop.f32.mrf.mxu1 }
 0xcb6   :  { %15098 = vtanh.f32 %v14725_v19 }
 0xcb7   :  { %v11681_v49 = vpop.f32.mrf.mxu1 }
 0xcb8   :  { %15100 = vtanh.f32 %v11681_v49 }
 0xcba   :  { %v14728_v24 = vpop.f32.mrf.mxu1 }
 0xcbb   :  { %15102 = vtanh.f32 %v14728_v24 }
 0xcbc   :  { %v11691_v46 = vpop.f32.mrf.mxu1 }
 0xcbd   :  { %15104 = vtanh.f32 %v11691_v46 }
 0xcbe   :  { %v14731_v36 = vpop.f32.mrf.mxu1 }
 0xcbf   :  { %15106 = vtanh.f32 %v14731_v36 }
 0xcc0   :  { %v11701_v57 = vpop.f32.mrf.mxu1 }
 0xcc1   :  { %15108 = vtanh.f32 %v11701_v57 }
 0xcc3   :  { %v15099_v62 = vpop.eup %15098  ;;  %v14734_v60 = vpop.f32.mrf.mxu1 }
 0xcc4   :  { %15110 = vtanh.f32 %v14734_v60  ;;  %v11784_v35 = vmul.f32 %v15099_v62, %v17774_v61 }
 0xcc5   :  { %v15101_v15 = vpop.eup %15100  ;;  %v11711_v14 = vpop.f32.mrf.mxu1 }
 0xcc6   :  { %15112 = vtanh.f32 %v11711_v14  ;;  %v11802_v51 = vsel %vm11332_vm3, %v11784_v35, 0.0  ;;  %v11783_v32 = vmul.f32 %v15101_v15, %v17774_v61 }
 0xcc7   :  { %v14737_v27 = vpop.f32.mrf.mxu1  ;;  %11803 = vadd.xlane.f32.xlu1 %v11802_v51 }
 0xcc8   :  { %v15103_v47 = vpop.eup %15102  ;;  %15114 = vtanh.f32 %v14737_v27  ;;  %v11799_v33 = vsel %vm11332_vm3, %v11783_v32, 0.0 }
 0xcc9   :  { %v11721_v55 = vpop.f32.mrf.mxu1  ;;  %11800 = vadd.xlane.f32.xlu0 %v11799_v33  ;;  %v11786_v22 = vmul.f32 %v15103_v47, %v17774_v61 }
 0xcca   :  { %v15105_v1 = vpop.eup %15104  ;;  %15116 = vtanh.f32 %v11721_v55 }
 0xccb   :  { %v11808_v3 = vsel %vm11332_vm3, %v11786_v22, 0.0  ;;  %v11785_v0 = vmul.f32 %v15105_v1, %v17774_v61  ;;  %v11863_v1 = vlaneseq }
 0xccc   :  { %v15107_v9 = vpop.eup %15106 }
 0xccd   :  { %11809 = vadd.xlane.f32.xlu0 %v11808_v3  ;;  %v11805_v58 = vsel %vm11332_vm3, %v11785_v0, 0.0  ;;  %v11788_v41 = vmul.f32 %v15107_v9, %v17774_v61  ;;  %v11864_v3 = vand.u32 127, %v11863_v1  ;;  %v17808_v0 = vshrl.u32 %v11863_v1, 7 }
 0xcce   :  { %v15109_v25 = vpop.eup %15108 }
 0xccf   :  { %v11787_v6 = vmul.f32 %v15109_v25, %v17774_v61  ;;  %v11814_v8 = vsel %vm11332_vm3, %v11788_v41, 0.0  ;;  %v17813_v25 = vsub.s32 %v11864_v3, %v17808_v0 }
 0xcd1   :  { %v15111_v12 = vpop.eup %15110  ;;  %11806 = vadd.xlane.f32.xlu0 %v11805_v58  ;;  %v11811_v21 = vsel %vm11332_vm3, %v11787_v6, 0.0 }
 0xcd2   :  { %11812 = vadd.xlane.f32.xlu1 %v11811_v21  ;;  %v11790_v4 = vmul.f32 %v15111_v12, %v17774_v61 }
 0xcd3   :  { %v15113_v2 = vpop.eup %15112 }
 0xcd4   :  { %v11789_v29 = vmul.f32 %v15113_v2, %v17774_v61  ;;  %v11820_v28 = vsel %vm11332_vm3, %v11790_v4, 0.0 }
 0xcd5   :  { %v15115_v26 = vpop.eup %15114  ;;  %11815 = vadd.xlane.f32.xlu0 %v11814_v8 }
 0xcd6   :  { %v11817_v56 = vsel %vm11332_vm3, %v11789_v29, 0.0  ;;  %v11792_v48 = vmul.f32 %v15115_v26, %v17774_v61 }
 0xcd7   :  { %v15117_v23 = vpop.eup %15116  ;;  %11818 = vadd.xlane.f32.xlu1 %v11817_v56 }
 0xcd8   :  { %v11791_v7 = vmul.f32 %v15117_v23, %v17774_v61  ;;  %v11826_v45 = vsel %vm11332_vm3, %v11792_v48, 0.0 }
 0xcd9   :  { %11821 = vadd.xlane.f32.xlu0 %v11820_v28 }
 0xcda   :  { %v11823_v44 = vsel %vm11332_vm3, %v11791_v7, 0.0 }
 0xcdb   :  { %11827 = vadd.xlane.f32.xlu1 %v11826_v45 }
 0xcdd   :  { %11824 = vadd.xlane.f32.xlu0 %v11823_v44 }
 0xd13   :  { %v14740_v50 = vpop.f32.mrf.mxu1 }
 0xd14   :  { %15118 = vtanh.f32 %v14740_v50 }
 0xd15   :  { %v11731_v37 = vpop.f32.mrf.mxu1 }
 0xd16   :  { %15120 = vtanh.f32 %v11731_v37 }
 0xd17   :  { %v14743_v20 = vpop.f32.mrf.mxu1 }
 0xd18   :  { %15122 = vtanh.f32 %v14743_v20 }
 0xd19   :  { %v11741_v59 = vpop.f32.mrf.mxu1 }
 0xd1a   :  { %15124 = vtanh.f32 %v11741_v59 }
 0xd1d   :  { %v14746_v54 = vpop.f32.mrf.mxu1 }
 0xd1e   :  { %15126 = vtanh.f32 %v14746_v54 }
 0xd1f   :  { %v11751_v63 = vpop.f32.mrf.mxu1 }
 0xd20   :  { %15128 = vtanh.f32 %v11751_v63  ;;  %v15206_v63 = vmov 0  }
 0xd21   :  { %v15119_v19 = vpop.eup %15118  ;;  %14841 = vset.pattern.permute.xlu0 %v15206_v63  ;;  %14840 = vset.pattern.permute.xlu1 %v15206_v63 }
 0xd22   :  { %v11794_v49 = vmul.f32 %v15119_v19, %v17774_v61 }
 0xd23   :  { %v15121_v24 = vpop.eup %15120 }
 0xd24   :  { %v11832_v46 = vsel %vm11332_vm3, %v11794_v49, 0.0  ;;  %v11793_v36 = vmul.f32 %v15121_v24, %v17774_v61 }
 0xd25   :  { %v15123_v57 = vpop.eup %15122  ;;  %11833 = vadd.xlane.f32.xlu0 %v11832_v46 }
 0xd26   :  { %v11829_v62 = vsel %vm11332_vm3, %v11793_v36, 0.0  ;;  %v11796_v60 = vmul.f32 %v15123_v57, %v17774_v61 }
 0xd27   :  { %v15125_v35 = vpop.eup %15124  ;;  %11830 = vadd.xlane.f32.xlu1 %v11829_v62 }
 0xd28   :  { %v11838_v15 = vsel %vm11332_vm3, %v11796_v60, 0.0  ;;  %v11795_v14 = vmul.f32 %v15125_v35, %v17774_v61 }
 0xd29   :  { %11839 = vadd.xlane.f32.xlu0 %v11838_v15 }
 0xd2a   :  { %v11835_v51 = vsel %vm11332_vm3, %v11795_v14, 0.0 }
 0xd2b   :  { %v15127_v32 = vpop.eup %15126  ;;  %11836 = vadd.xlane.f32.xlu1 %v11835_v51 }
 0xd2c   :  { %v11798_v27 = vmul.f32 %v15127_v32, %v17774_v61 }
 0xd2d   :  { %v15129_v47 = vpop.eup %15128 }
 0xd2e   :  { %v11844_v33 = vsel %vm11332_vm3, %v11798_v27, 0.0  ;;  %v11797_v55 = vmul.f32 %v15129_v47, %v17774_v61 }
 0xd2f   :  { %11845 = vadd.xlane.f32.xlu0 %v11844_v33 }
 0xd30   :  { %v11841_v22 = vsel %vm11332_vm3, %v11797_v55, 0.0 }
 0xd31   :  { %11842 = vadd.xlane.f32.xlu1 %v11841_v22 }
 0xd50   :  { %v17817_v58 = vpop.xlane.xlu1 %11803 }
 0xd51   :  { %v11872_v41 = vrot.slane %v17817_v58, %v17813_v25 }
 0xd52   :  { %v17810_v9 = vpop.xlane.xlu0 %11800 }
 0xd53   :  { %v11868_v61 = vrot.slane %v17810_v9, %v17813_v25 }
 0xd55   :  { %v11930_v8 = vsel %vm11929_vm5, %v11872_v41, %v11868_v61 }
 0xd56   :  { %v17815_v6 = vpop.xlane.xlu0 %11809 }
 0xd57   :  { %v11880_v29 = vrot.slane %v17815_v6, %v17813_v25 }
 0xd5a   :  { %v17823_v12 = vpop.xlane.xlu0 %11806 }
 0xd5b   :  { %v11876_v21 = vrot.slane %v17823_v12, %v17813_v25  ;;  %v17827_v2 = vpop.xlane.xlu1 %11812 }
 0xd5c   :  { %v11884_v26 = vrot.slane %v17827_v2, %v17813_v25 }
 0xd5d   :  { %v11932_v4 = vsel %vm11931_vm6, %v11876_v21, %v11930_v8 }
 0xd5e   :  { %v11934_v56 = vsel %vm11933_vm7, %v11880_v29, %v11932_v4  ;;  %v17836_v48 = vpop.xlane.xlu0 %11815  ;;  %v17894_v29 = vsub.s32 0, %v17808_v0  ;;  %v17897_v4 = vsub.s32 1, %v17808_v0 }
 0xd5f   :  { %v11936_v23 = vsel %vm11935_vm8, %v11884_v26, %v11934_v56  ;;  %v11888_v28 = vrot.slane %v17836_v48, %v17813_v25  ;;  %v17900_v26 = vsub.s32 2, %v17808_v0  ;;  %v17903_v56 = vsub.s32 3, %v17808_v0 }
 0xd60   :  { %v17841_v7 = vpop.xlane.xlu1 %11818 }
 0xd61   :  { %v11938_v45 = vsel %vm11937_vm9, %v11888_v28, %v11936_v23  ;;  %v11892_v44 = vrot.slane %v17841_v7, %v17813_v25 }
 0xd62   :  { %v17846_v50 = vpop.xlane.xlu0 %11821 }
 0xd63   :  { %v11896_v37 = vrot.slane %v17846_v50, %v17813_v25  ;;  %v11940_v20 = vsel %vm11939_vm10, %v11892_v44, %v11938_v45 }
 0xd64   :  { %v17855_v49 = vpop.xlane.xlu1 %11827 }
 0xd65   :  { %v11942_v59 = vsel %vm11941_vm11, %v11896_v37, %v11940_v20  ;;  %v11904_v62 = vrot.slane %v17855_v49, %v17813_v25  ;;  %v17909_v37 = vsub.s32 4, %v17808_v0 }
 0xd66   :  { %v11952_v54 = vsel %vm563_vm2, %v11942_v59, -inf  ;;  %v17853_v19 = vpop.xlane.xlu0 %11824 }
 0xd67   :  { %11953 = vmax.xlane.f32.xlu1 %v11952_v54  ;;  %v11900_v46 = vrot.slane %v17853_v19, %v17813_v25 }
 0xd69   :  { %v11943_v60 = vsel %vm11929_vm5, %v11904_v62, %v11900_v46  ;;  %v17916_v62 = vsub.s32 5, %v17808_v0 }
 0xdae   :  { %v17857_v24 = vpop.xlane.xlu0 %11833 }
 0xdaf   :  { %v11912_v32 = vrot.slane %v17857_v24, %v17813_v25 }
 0xdb0   :  { %v17861_v36 = vpop.xlane.xlu1 %11830 }
 0xdb1   :  { %v11908_v57 = vrot.slane %v17861_v36, %v17813_v25 }
 0xdb2   :  { %v17871_v14 = vpop.xlane.xlu0 %11839 }
 0xdb3   :  { %v11944_v15 = vsel %vm11931_vm6, %v11908_v57, %v11943_v60  ;;  %v11920_v55 = vrot.slane %v17871_v14, %v17813_v25 }
 0xdb4   :  { %v17868_v35 = vpop.xlane.xlu1 %11836  ;;  %v11945_v27 = vsel %vm11933_vm7, %v11912_v32, %v11944_v15  ;;  %v17921_v32 = vsub.s32 6, %v17808_v0 }
 0xdb5   :  { %v11916_v51 = vrot.slane %v17868_v35, %v17813_v25 }
 0xdb7   :  { %v11946_v47 = vsel %vm11935_vm8, %v11916_v51, %v11945_v27  ;;  %v17926_v27 = vsub.s32 7, %v17808_v0 }
 0xdb8   :  { %v17879_v33 = vpop.xlane.xlu0 %11845  ;;  %v11947_v61 = vsel %vm11937_vm9, %v11920_v55, %v11946_v47 }
 0xdb9   :  { %v11928_v3 = vrot.slane %v17879_v33, %v17813_v25 }
 0xdba   :  { %v17883_v22 = vpop.xlane.xlu1 %11842 }
 0xdbb   :  { %v11924_v1 = vrot.slane %v17883_v22, %v17813_v25 }
 0xdbd   :  { %v11948_v41 = vsel %vm11939_vm10, %v11924_v1, %v11947_v61 }
 0xdbe   :  { %v11949_v21 = vsel %vm11941_vm11, %v11928_v3, %v11948_v41 }
 0xdbf   :  { %v11955_v8 = vsel %vm563_vm2, %v11949_v21, -inf }
 0xdc0   :  { %11956 = vmax.xlane.f32.xlu0 %v11955_v8 }
 0xdf0   :  { %v11954_v23 = vpop.xlane.xlu1 %11953 }
 0xdf1   :  { %v11963_v28 = vrot.slane %v11954_v23, %v17894_v29  ;;  %v11967_v45 = vrot.slane %v11954_v23, %v17897_v4  ;;  %v11971_v44 = vrot.slane %v11954_v23, %v17900_v26  ;;  %v11975_v20 = vrot.slane %v11954_v23, %v17903_v56 }
 0xdf2   :  { %v11979_v60 = vrot.slane %v11954_v23, %v17909_v37  ;;  %v11987_v47 = vrot.slane %v11954_v23, %v17921_v32  ;;  %v11991_v1 = vrot.slane %v11954_v23, %v17926_v27 }
 0xdf3   :  { %v12040_v59 = vsub.f32 %v17810_v9, %v11963_v28  ;;  %v12041_v54 = vsub.f32 %v17817_v58, %v11967_v45  ;;  %v12042_v63 = vsub.f32 %v17823_v12, %v11971_v44  ;;  %v12043_v15 = vsub.f32 %v17815_v6, %v11975_v20 }
 0xdf4   :  { %v11983_v9 = vrot.slane %v11954_v23, %v17916_v62  ;;  %v12044_v58 = vsub.f32 %v17827_v2, %v11979_v60  ;;  %v12046_v3 = vsub.f32 %v17841_v7, %v11987_v47  ;;  %v12047_v21 = vsub.f32 %v17846_v50, %v11991_v1 }
 0xdf5   :  { %v12056_v46 = vmul.f32 1.442695, %v12040_v59  ;;  %v12058_v57 = vmul.f32 1.442695, %v12041_v54  ;;  %v12060_v51 = vmul.f32 1.442695, %v12042_v63 }
 0xdf6   :  { %v12062_v12 = vmul.f32 1.442695, %v12043_v15  ;;  %v12045_v55 = vsub.f32 %v17836_v48, %v11983_v9  ;;  %v12064_v6 = vmul.f32 1.442695, %v12044_v58  ;;  %v12068_v48 = vmul.f32 1.442695, %v12046_v3 }
 0xdf7   :  { %15130 = vpow2.f32 %v12056_v46  ;;  %v12070_v7 = vmul.f32 1.442695, %v12047_v21 }
 0xdf8   :  { %15132 = vpow2.f32 %v12058_v57  ;;  %v12066_v61 = vmul.f32 1.442695, %v12045_v55 }
 0xdf9   :  { %15134 = vpow2.f32 %v12060_v51 }
 0xdfa   :  { %15136 = vpow2.f32 %v12062_v12 }
 0xdfb   :  { %15138 = vpow2.f32 %v12064_v6 }
 0xdfc   :  { %15140 = vpow2.f32 %v12066_v61 }
 0xdfd   :  { %15142 = vpow2.f32 %v12068_v48 }
 0xdfe   :  { %15144 = vpow2.f32 %v12070_v7 }
 0xe04   :  { %v17932_v41 = vpop.eup %15130 }
 0xe05   :  { %v17934_v2 = vpop.eup %15132  ;;  %12105 = vperm.xlu1 %14840, %v17932_v41  }
 0xe06   :  { %12108 = vperm.xlu0 %14841, %v17934_v2   ;;  %v17939_v8 = vpop.eup %15134 }
 0xe07   :  { %v17942_v23 = vpop.eup %15136 }
 0xe08   :  { %v17945_v28 = vpop.eup %15138 }
 0xe09   :  { %12111 = vperm.xlu1 %14840, %v17939_v8   ;;  %v17948_v45 = vpop.eup %15140 }
 0xe0a   :  { %v17951_v50 = vpop.eup %15142 }
 0xe0b   :  { %v17954_v44 = vpop.eup %15144 }
 0xe0d   :  { %12114 = vperm.xlu1 %14840, %v17942_v23  }
 0xe11   :  { %12117 = vperm.xlu1 %14840, %v17945_v28  }
 0xe15   :  { %12120 = vperm.xlu1 %14840, %v17948_v45  }
 0xe19   :  { %12123 = vperm.xlu1 %14840, %v17951_v50  }
 0xe1d   :  { %12126 = vperm.xlu1 %14840, %v17954_v44  }
 0xe49   :  { %v11957_v20 = vpop.xlane.xlu0 %11956 }
 0xe4a   :  { %v11995_v59 = vrot.slane %v11957_v20, %v17894_v29  ;;  %v11999_v54 = vrot.slane %v11957_v20, %v17897_v4  ;;  %v12003_v63 = vrot.slane %v11957_v20, %v17900_v26  ;;  %v12011_v46 = vrot.slane %v11957_v20, %v17909_v37 }
 0xe4b   :  { %v12007_v57 = vrot.slane %v11957_v20, %v17903_v56  ;;  %v12019_v9 = vrot.slane %v11957_v20, %v17921_v32  ;;  %v12015_v55 = vrot.slane %v11957_v20, %v17916_v62 }
 0xe4c   :  { %v12048_v60 = vsub.f32 %v17853_v19, %v11995_v59  ;;  %v12049_v15 = vsub.f32 %v17855_v49, %v11999_v54  ;;  %v12050_v51 = vsub.f32 %v17861_v36, %v12003_v63  ;;  %v12052_v58 = vsub.f32 %v17868_v35, %v12011_v46 }
 0xe4d   :  { %v12051_v6 = vsub.f32 %v17857_v24, %v12007_v57  ;;  %v12054_v3 = vsub.f32 %v17883_v22, %v12019_v9  ;;  %v12023_v49 = vrot.slane %v11957_v20, %v17926_v27  ;;  %v12053_v36 = vsub.f32 %v17871_v14, %v12015_v55 }
 0xe4e   :  { %v12072_v12 = vmul.f32 1.442695, %v12048_v60  ;;  %v12076_v47 = vmul.f32 1.442695, %v12050_v51  ;;  %v12074_v1 = vmul.f32 1.442695, %v12049_v15 }
 0xe4f   :  { %v12080_v19 = vmul.f32 1.442695, %v12052_v58  ;;  %v12078_v61 = vmul.f32 1.442695, %v12051_v6  ;;  %v12084_v35 = vmul.f32 1.442695, %v12054_v3  ;;  %v12055_v21 = vsub.f32 %v17879_v33, %v12023_v49 }
 0xe50   :  { %15146 = vpow2.f32 %v12072_v12  ;;  %v12082_v48 = vmul.f32 1.442695, %v12053_v36 }
 0xe51   :  { %15148 = vpow2.f32 %v12076_v47  ;;  %v12086_v24 = vmul.f32 1.442695, %v12055_v21 }
 0xe52   :  { %15150 = vpow2.f32 %v12074_v1 }
 0xe53   :  { %15152 = vpow2.f32 %v12080_v19 }
 0xe54   :  { %15154 = vpow2.f32 %v12078_v61 }
 0xe55   :  { %15156 = vpow2.f32 %v12084_v35 }
 0xe56   :  { %15158 = vpow2.f32 %v12082_v48 }
 0xe57   :  { %15160 = vpow2.f32 %v12086_v24 }
 0xe5d   :  { %v17973_v7 = vpop.eup %15146 }
 0xe5e   :  { %12129 = vperm.xlu1 %14840, %v17973_v7   ;;  %v17976_v22 = vpop.eup %15148 }
 0xe5f   :  { %12135 = vperm.xlu0 %14841, %v17976_v22   ;;  %v17979_v14 = vpop.eup %15150 }
 0xe60   :  { %v17982_v20 = vpop.eup %15152 }
 0xe61   :  { %v17985_v33 = vpop.eup %15154 }
 0xe62   :  { %12132 = vperm.xlu1 %14840, %v17979_v14   ;;  %v17988_v59 = vpop.eup %15156 }
 0xe63   :  { %12141 = vperm.xlu0 %14841, %v17982_v20   ;;  %v17991_v54 = vpop.eup %15158 }
 0xe64   :  { %v17994_v63 = vpop.eup %15160 }
 0xe66   :  { %12138 = vperm.xlu1 %14840, %v17985_v33  }
 0xe67   :  { %12147 = vperm.xlu0 %14841, %v17988_v59  }
 0xe6a   :  { %12144 = vperm.xlu1 %14840, %v17991_v54  }
 0xe6e   :  { %12150 = vperm.xlu1 %14840, %v17994_v63  }
 0xe80   :  { %v12106_v46 = vpop.permute.xlu1 %12105 }
 0xe81   :  { %v12109_v51 = vpop.permute.xlu0 %12108  ;;  %v12155_v12 = vrot.slane %v12106_v46, %v17813_v25 }
 0xe82   :  { %v12159_v58 = vrot.slane %v12109_v51, %v17813_v25 }
 0xe84   :  { %v12112_v57 = vpop.permute.xlu1 %12111  ;;  %v12216_v3 = vsel %vm11929_vm5, %v12159_v58, %v12155_v12 }
 0xe85   :  { %v12163_v47 = vrot.slane %v12112_v57, %v17813_v25 }
 0xe87   :  { %v12217_v49 = vsel %vm11931_vm6, %v12163_v47, %v12216_v3 }
 0xe88   :  { %v12115_v60 = vpop.permute.xlu1 %12114 }
 0xe89   :  { %v12167_v55 = vrot.slane %v12115_v60, %v17813_v25 }
 0xe8b   :  { %v12218_v61 = vsel %vm11933_vm7, %v12167_v55, %v12217_v49 }
 0xe8c   :  { %v12118_v15 = vpop.permute.xlu1 %12117 }
 0xe8d   :  { %v12171_v6 = vrot.slane %v12118_v15, %v17813_v25 }
 0xe8f   :  { %v12219_v35 = vsel %vm11935_vm8, %v12171_v6, %v12218_v61 }
 0xe90   :  { %v12121_v9 = vpop.permute.xlu1 %12120 }
 0xe91   :  { %v12175_v19 = vrot.slane %v12121_v9, %v17813_v25 }
 0xe93   :  { %v12220_v48 = vsel %vm11937_vm9, %v12175_v19, %v12219_v35 }
 0xe94   :  { %v12124_v1 = vpop.permute.xlu1 %12123 }
 0xe95   :  { %v12179_v36 = vrot.slane %v12124_v1, %v17813_v25 }
 0xe97   :  { %v12221_v46 = vsel %vm11939_vm10, %v12179_v36, %v12220_v48 }
 0xe98   :  { %v12127_v21 = vpop.permute.xlu1 %12126 }
 0xe99   :  { %v12183_v24 = vrot.slane %v12127_v21, %v17813_v25 }
 0xe9b   :  { %v12222_v57 = vsel %vm11941_vm11, %v12183_v24, %v12221_v46 }
 0xe9c   :  { %v12232_v60 = vsel %vm563_vm2, %v12222_v57, 0.0 }
 0xe9d   :  { %12233 = vadd.xlane.f32.xlu0 %v12232_v60 }
 0xed9   :  { %v12130_v15 = vpop.permute.xlu1 %12129 }
 0xeda   :  { %v12136_v51 = vpop.permute.xlu0 %12135  ;;  %v12187_v58 = vrot.slane %v12130_v15, %v17813_v25 }
 0xedb   :  { %v12195_v6 = vrot.slane %v12136_v51, %v17813_v25 }
 0xedd   :  { %v12133_v9 = vpop.permute.xlu1 %12132 }
 0xede   :  { %v12191_v12 = vrot.slane %v12133_v9, %v17813_v25  ;;  %v12142_v47 = vpop.permute.xlu0 %12141 }
 0xedf   :  { %v12203_v36 = vrot.slane %v12142_v47, %v17813_v25 }
 0xee0   :  { %v12223_v55 = vsel %vm11929_vm5, %v12191_v12, %v12187_v58 }
 0xee1   :  { %v12139_v1 = vpop.permute.xlu1 %12138  ;;  %v12224_v19 = vsel %vm11931_vm6, %v12195_v6, %v12223_v55 }
 0xee2   :  { %v12199_v3 = vrot.slane %v12139_v1, %v17813_v25  ;;  %v12148_v35 = vpop.permute.xlu0 %12147 }
 0xee3   :  { %v12211_v46 = vrot.slane %v12148_v35, %v17813_v25 }
 0xee4   :  { %v12225_v49 = vsel %vm11933_vm7, %v12199_v3, %v12224_v19 }
 0xee5   :  { %v12145_v61 = vpop.permute.xlu1 %12144  ;;  %v12226_v48 = vsel %vm11935_vm8, %v12203_v36, %v12225_v49 }
 0xee6   :  { %v12207_v21 = vrot.slane %v12145_v61, %v17813_v25 }
 0xee8   :  { %v12227_v24 = vsel %vm11937_vm9, %v12207_v21, %v12226_v48  ;;  %v12645_v21 = vld [vmem:[%s18305_s9 + $0x18] sm:$0xff] }
 0xee9   :  { %v12151_v57 = vpop.permute.xlu1 %12150  ;;  %v12228_v15 = vsel %vm11939_vm10, %v12211_v46, %v12227_v24  ;;  %14759 = vmatpush3.msra.mxu1 %v12645_v21 }
 0xeea   :  { %v12215_v60 = vrot.slane %v12151_v57, %v17813_v25  ;;  %14760 = vmatprep.subr.mxu1 %v18396_v13 }
 0xeec   :  { %v12229_v51 = vsel %vm11941_vm11, %v12215_v60, %v12228_v15  ;;  %v12548_v60 = vld [vmem:[%s18304_s8 + $0x8] sm:$0xff]  ;;  %v12644_v15 = vld [vmem:[%s18305_s9 + $0x10] sm:$0xff] }
 0xeed   :  { %v12235_v9 = vsel %vm563_vm2, %v12229_v51, 0.0  ;;  %v12547_v51 = vld [vmem:[%s18304_s8] sm:$0xff]  ;;  %14761 = vmatpush3.msra.mxu1 %v12644_v15 }
 0xeee   :  { %12236 = vadd.xlane.f32.xlu1 %v12235_v9  ;;  %14762 = vmatprep.subr.mxu1 %v18396_v13  ;;  %v12546_v9 = vld [vmem:[%s18297_s1] sm:$0x3] }
 0xf26   :  { %v12234_v58 = vpop.xlane.xlu0 %12233 }
 0xf27   :  { %15162 = vrcp.f32 %v12234_v58 }
 0xf34   :  { %v18029_v12 = vpop.eup %15162 }
 0xf35   :  { %v12253_v47 = vrot.slane %v18029_v12, %v17900_v26  ;;  %v12257_v55 = vrot.slane %v18029_v12, %v17903_v56  ;;  %v12261_v3 = vrot.slane %v18029_v12, %v17909_v37  ;;  %v12265_v19 = vrot.slane %v18029_v12, %v17916_v62 }
 0xf36   :  { %v12269_v61 = vrot.slane %v18029_v12, %v17921_v32 }
 0xf37   :  { %v12324_v6 = vmul.f32 %v17939_v8, %v12253_v47  ;;  %v12325_v1 = vmul.f32 %v17942_v23, %v12257_v55  ;;  %v12326_v49 = vmul.f32 %v17945_v28, %v12261_v3  ;;  %v12327_v36 = vmul.f32 %v17948_v45, %v12265_v19  ;;  %v12550_v28 = vld [vmem:[%s18304_s8 + $0x18] sm:$0xff]  ;;  %v12549_v45 = vld [vmem:[%s18304_s8 + $0x10] sm:$0xff] }
 0xf38   :  { %v12273_v8 = vrot.slane %v18029_v12, %v17926_v27  ;;  %v12328_v23 = vmul.f32 %v17951_v50, %v12269_v61  ;;  %14748 = vmatpush3.msra.mxu0 %v12550_v28 }
 0xf39   :  { %12350 = vperm.xlu0 %14841, %v12324_v6   ;;  %12355 = vperm.xlu1 %14840, %v12325_v1  }
 0xf3a   :  { %v12329_v35 = vmul.f32 %v17954_v44, %v12273_v8  ;;  %14749 = vmatprep.subr.mxu0 %v18396_v13 }
 0xf3b   :  { %14750 = vmatpush3.msra.mxu0 %v12549_v45 }
 0xf3c   :  { %14751 = vmatprep.subr.mxu0 %v18396_v13 }
 0xf3d   :  { %12360 = vperm.xlu0 %14841, %v12326_v49   ;;  %12365 = vperm.xlu1 %14840, %v12327_v36  }
 0xf3e   :  { %14752 = vmatpush3.msra.mxu0 %v12548_v60 }
 0xf3f   :  { %14753 = vmatprep.subr.mxu0 %v18396_v13 }
 0xf40   :  { %14754 = vmatpush3.msra.mxu0 %v12547_v51 }
 0xf41   :  { %12370 = vperm.xlu0 %14841, %v12328_v23   ;;  %12375 = vperm.xlu1 %14840, %v12329_v35  }
 0xf42   :  { %14769 = vmatprep.subr.mxu0 %v18396_v13 }
 0xf77   :  { %v12237_v50 = vpop.xlane.xlu1 %12236 }
 0xf78   :  { %15164 = vrcp.f32 %v12237_v50 }
 0xf85   :  { %v18061_v44 = vpop.eup %15164 }
 0xf86   :  { %v12281_v48 = vrot.slane %v18061_v44, %v17897_v4  ;;  %v12277_v24 = vrot.slane %v18061_v44, %v17894_v29 }
 0xf88   :  { %v12331_v46 = vmul.f32 %v17979_v14, %v12281_v48  ;;  %v12330_v57 = vmul.f32 %v17973_v7, %v12277_v24  ;;  %v12643_v7 = vld [vmem:[%s18305_s9 + $0x8] sm:$0xff]  ;;  %v12642_v14 = vld [vmem:[%s18305_s9] sm:$0xff] }
 0xf89   :  { %14763 = vmatpush3.msra.mxu1 %v12643_v7 }
 0xf8a   :  { %12385 = vperm.xlu1 %14840, %v12331_v46   ;;  %12380 = vperm.xlu0 %14841, %v12330_v57  }
 0xf8b   :  { %14764 = vmatprep.subr.mxu1 %v18396_v13 }
 0xf8c   :  { %14765 = vmatpush3.msra.mxu1 %v12642_v14 }
 0xf8d   :  { %14767 = vmatmul.mubr.msk.f32.vlgmr.msra.gmra.mxu1 %vm71_vm0, %v12546_v9  ;;  %14780 = vmatprep.subr.mxu1 %v18396_v13 }
 0xf8e   :  { %14796 = vmatprep.mubr.msk.f32.mxu1 %vm15199_vm1, %v18396_v13 }
 0xfb4   :  { %v12351_v58 = vpop.permute.xlu0 %12350  ;;  %v12356_v47 = vpop.permute.xlu1 %12355 }
 0xfb5   :  { %v12421_v15 = vmul.f32 %v17713_v38, %v12356_v47 }
 0xfb7   :  { %v12455_v14 = vsel %vm71_vm0, %v12421_v15, 0.0 }
 0xfb8   :  { %v12361_v55 = vpop.permute.xlu0 %12360  ;;  %v12366_v6 = vpop.permute.xlu1 %12365 }
 0xfb9   :  { %v12422_v51 = vmul.f32 %v12361_v55, %v17723_v11  ;;  %v12423_v9 = vmul.f32 %v17719_v5, %v12366_v6 }
 0xfbc   :  { %v12371_v1 = vpop.permute.xlu0 %12370  ;;  %v12376_v3 = vpop.permute.xlu1 %12375 }
 0xfbd   :  { %v12424_v19 = vmul.f32 %v12371_v1, %v17731_v17  ;;  %v12425_v49 = vmul.f32 %v17729_v10, %v12376_v3  ;;  %v12420_v10 = vmul.f32 %v12351_v58, %v17715_v40  ;;  %v12462_v1 = vsel %vm71_vm0, %v12422_v51, 0.0 }
 0xfbf   :  { %v12476_v36 = vsel %vm71_vm0, %v12424_v19, 0.0  ;;  %v12483_v61 = vsel %vm71_vm0, %v12425_v49, 0.0  ;;  %v12448_v7 = vsel %vm71_vm0, %v12420_v10, 0.0  ;;  %v12456_v19 = vrot.slane %v12455_v14, 4 }
 0xfc0   :  { %v12477_v8 = vrot.slane %v12476_v36, 4  ;;  %v12484_v23 = vrot.slane %v12483_v61, 4  ;;  %v12449_v3 = vrot.slane %v12448_v7, 4  ;;  %v12463_v49 = vrot.slane %v12462_v1, 4 }
 0xfc2   :  { %v12478_v35 = vadd.f32 %v12477_v8, %v12476_v36  ;;  %v12485_v28 = vadd.f32 %v12484_v23, %v12483_v61  ;;  %v12469_v36 = vsel %vm71_vm0, %v12423_v9, 0.0  ;;  %v12450_v61 = vadd.f32 %v12449_v3, %v12448_v7 }
 0xfc3   :  { %v12457_v8 = vadd.f32 %v12456_v19, %v12455_v14  ;;  %v12470_v40 = vrot.slane %v12469_v36, 4  ;;  %v12464_v58 = vadd.f32 %v12463_v49, %v12462_v1 }
 0xfc4   :  { %v12479_v45 = vrot.slane %v12478_v35, 2  ;;  %v12486_v21 = vrot.slane %v12485_v28, 2  ;;  %v12451_v38 = vrot.slane %v12450_v61, 2 }
 0xfc5   :  { %v12458_v47 = vrot.slane %v12457_v8, 2  ;;  %v12471_v11 = vadd.f32 %v12470_v40, %v12469_v36  ;;  %v12465_v55 = vrot.slane %v12464_v58, 2 }
 0xfc6   :  { %v12480_v50 = vadd.f32 %v12479_v45, %v12478_v35  ;;  %v12487_v48 = vadd.f32 %v12486_v21, %v12485_v28  ;;  %v12452_v23 = vadd.f32 %v12451_v38, %v12450_v61 }
 0xfc7   :  { %v12459_v35 = vadd.f32 %v12458_v47, %v12457_v8  ;;  %v12472_v28 = vrot.slane %v12471_v11, 2  ;;  %v12466_v45 = vadd.f32 %v12465_v55, %v12464_v58 }
 0xfc8   :  { %v12481_v24 = vrot.slane %v12480_v50, 1  ;;  %v12488_v46 = vrot.slane %v12487_v48, 1  ;;  %v12453_v5 = vrot.slane %v12452_v23, 1 }
 0xfc9   :  { %v12460_v6 = vrot.slane %v12459_v35, 1  ;;  %v12473_v21 = vadd.f32 %v12472_v28, %v12471_v11 }
 0xfca   :  { %v12482_v57 = vadd.f32 %v12481_v24, %v12480_v50  ;;  %v12489_v60 = vadd.f32 %v12488_v46, %v12487_v48  ;;  %v12467_v50 = vrot.slane %v12466_v45, 1  ;;  %v12454_v15 = vadd.f32 %v12453_v5, %v12452_v23 }
 0xfcb   :  { %v12461_v51 = vadd.f32 %v12460_v6, %v12459_v35  ;;  %v12474_v7 = vrot.slane %v12473_v21, 1 }
 0xfcc   :  { %v12839_v17 = vsel %vm11929_vm5, %v12489_v60, %v12482_v57  ;;  %v12468_v1 = vadd.f32 %v12467_v50, %v12466_v45 }
 0xfcd   :  { %v12559_v61 = vsel %vm11929_vm5, %v12461_v51, %v12454_v15  ;;  %v12475_v8 = vadd.f32 %v12474_v7, %v12473_v21 }
 0xfce   :  { %v12560_v40 = vsel %vm11931_vm6, %v12468_v1, %v12559_v61 }
 0xfcf   :  { %v18115_v47 = vsel %vm11933_vm7, %v12475_v8, %v12560_v40 }
 0xfd0   :  { %v12562_v11 = vsel %vm11935_vm8, %v12482_v57, %v18115_v47 }
 0xfd1   :  { %v12563_v45 = vsel %vm11937_vm9, %v12489_v60, %v12562_v11 }
0x1005   :  { %v12381_v48 = vpop.permute.xlu0 %12380  ;;  %v12386_v24 = vpop.permute.xlu1 %12385 }
0x1006   :  { %v12426_v46 = vmul.f32 %v12381_v48, %v17739_v42  ;;  %v12427_v10 = vmul.f32 %v17735_v30, %v12386_v24  ;;  %v15207_v24 = vmov 1966171168  }
0x1008   :  { %v12490_v14 = vsel %vm71_vm0, %v12426_v46, 0.0  ;;  %v12497_v9 = vsel %vm71_vm0, %v12427_v10, 0.0  ;;  %v12721_v46 = vunpack.c.l.s4 %v15207_v24 }
0x1009   :  { %v12491_v3 = vrot.slane %v12490_v14, 4  ;;  %v12498_v19 = vrot.slane %v12497_v9, 4 }
0x100a   :  { %v12722_v10 = vunpack.c.0.s8 %v12721_v46 }
0x100b   :  { %v12492_v49 = vadd.f32 %v12491_v3, %v12490_v14  ;;  %v12499_v36 = vadd.f32 %v12498_v19, %v12497_v9 }
0x100c   :  { %v18130_v60 = vsub.s32 %v12722_v10, %v17808_v0 }
0x100d   :  { %v12493_v42 = vrot.slane %v12492_v49, 2  ;;  %v12500_v58 = vrot.slane %v12499_v36, 2 }
0x100f   :  { %v12494_v30 = vadd.f32 %v12493_v42, %v12492_v49  ;;  %v12501_v38 = vadd.f32 %v12500_v58, %v12499_v36 }
0x1011   :  { %v12495_v55 = vrot.slane %v12494_v30, 1  ;;  %v12502_v23 = vrot.slane %v12501_v38, 1 }
0x1013   :  { %v12496_v35 = vadd.f32 %v12495_v55, %v12494_v30  ;;  %v12503_v28 = vadd.f32 %v12502_v23, %v12501_v38 }
0x1015   :  { %v12564_v5 = vsel %vm11939_vm10, %v12496_v35, %v12563_v45  ;;  %v12840_v6 = vsel %vm11931_vm6, %v12496_v35, %v12839_v17 }
0x1016   :  { %v12565_v21 = vsel %vm11941_vm11, %v12503_v28, %v12564_v5  ;;  %v18124_v50 = vsel %vm11933_vm7, %v12503_v28, %v12840_v6 }
0x1017   :  { %14756 = vmatmul.mubr.msk.f32.vlgmr.msra.gmra.mxu0 %vm71_vm0, %v12565_v21 }
0x1018   :  { %14777 = vmatprep.mubr.msk.f32.mxu0 %vm15199_vm1, %v18396_v13 }
0x104d   :  { %v12715_v57 = vpop.f32.mrf.mxu1 }
0x104e   :  { %v12726_v17 = vrot.slane %v12715_v57, %v18130_v60 }
0x104f   :  { %v14768_v48 = vpop.f32.mrf.mxu1 }
0x1050   :  { %v12727_v7 = vcombine.high %v12726_v17, %v12726_v17  ;;  %v12734_v14 = vrot.slane %v12726_v17, %v18130_v60 }
0x1052   :  { %v12741_v9 = vrot.slane %v12727_v7, %v18130_v60  ;;  %v12745_v1 = vrot.slane %v12734_v14, %v17894_v29 }
0x1054   :  { %v12749_v3 = vrot.slane %v12741_v9, %v17894_v29 }
0x10d7   :  { %v12634_v15 = vpop.f32.mrf.mxu0 }
0x10d8   :  { %15166 = vtanh.f32 %v12634_v15 }
0x10d9   :  { %v14757_v51 = vpop.f32.mrf.mxu0 }
0x10da   :  { %v12297_v51 = vrot.slane %v18061_v44, %v17916_v62  ;;  %v12249_v62 = vrot.slane %v18029_v12, %v17897_v4 }
0x10dc   :  { %v12335_v7 = vmul.f32 %v17991_v54, %v12297_v51  ;;  %v12323_v54 = vmul.f32 %v17934_v2, %v12249_v62  ;;  %v12861_v2 = vld [vmem:[%s18306_s10] sm:$0xff] }
0x10dd   :  { %v13027_v62 = vld [vmem:[%s18309_s13] sm:$0xff] }
0x10e5   :  { %v15167_v19 = vpop.eup %15166 }
0x10e6   :  { %v12752_v49 = vmul.f32 %v15167_v19, %v12745_v1  ;;  %v12640_v36 = vcombine.high %v15167_v19, %v15167_v19 }
0x10e8   :  { %v12755_v0 = vsel %vm12754_vm12, %v12752_v49, 0.0  ;;  %v12753_v61 = vmul.f32 %v12749_v3, %v12640_v36  ;;  %v12245_v36 = vrot.slane %v18029_v12, %v17894_v29  ;;  %v12285_v12 = vrot.slane %v18061_v44, %v17900_v26 }
0x10e9   :  { %12756 = vadd.xlane.f32.xlu0 %v12755_v0 }
0x10ea   :  { %v12758_v8 = vsel %vm12754_vm12, %v12753_v61, 0.0  ;;  %v12322_v0 = vmul.f32 %v17932_v41, %v12245_v36  ;;  %v12289_v61 = vrot.slane %v18061_v44, %v17903_v56  ;;  %v12293_v41 = vrot.slane %v18061_v44, %v17909_v37  ;;  %v13028_v36 = vld [vmem:[%s18309_s13 + $0x8] sm:$0xff] }
0x10eb   :  { %12759 = vadd.xlane.f32.xlu1 %v12758_v8  ;;  %v12305_v37 = vrot.slane %v18061_v44, %v17926_v27 }
0x10ec   :  { %v12333_v8 = vmul.f32 %v17985_v33, %v12289_v61  ;;  %v12334_v33 = vmul.f32 %v17982_v20, %v12293_v41  ;;  %v12944_v41 = vld [vmem:[%s18307_s11 + $0x18] sm:$0xff] }
0x1172   :  { %v12757_v40 = vpop.xlane.xlu0 %12756 }
0x1173   :  { %v12766_v58 = vrot.slane %v12757_v40, %v17813_v25 }
0x1174   :  { %v12760_v42 = vpop.xlane.xlu1 %12759 }
0x1175   :  { %v12770_v30 = vrot.slane %v12760_v42, %v17813_v25 }
0x1177   :  { %v12771_v38 = vsel %vm11929_vm5, %v12770_v30, %v12766_v58  ;;  %v12332_v58 = vmul.f32 %v17976_v22, %v12285_v12  ;;  %v13024_v12 = vld [vmem:[%s18308_s12 + $0x8] sm:$0xff] }
0x1178   :  { %v12774_v11 = vsel %vm12773_vm13, %v12771_v38, -inf }
0x1179   :  { %12775 = vmax.xlane.f32.xlu0 %v12774_v11 }
0x1202   :  { %v12776_v55 = vpop.xlane.xlu0 %12775 }
0x1203   :  { %v12781_v23 = vrot.slane %v12776_v55, %v17894_v29  ;;  %v12785_v35 = vrot.slane %v12776_v55, %v17897_v4 }
0x1205   :  { %v12788_v28 = vsub.f32 %v12757_v40, %v12781_v23  ;;  %v12789_v45 = vsub.f32 %v12760_v42, %v12785_v35  ;;  %v12301_v40 = vrot.slane %v18061_v44, %v17921_v32  ;;  %v12864_v42 = vld [vmem:[%s18306_s10 + $0x18] sm:$0xff]  ;;  %v12862_v32 = vld [vmem:[%s18306_s10 + $0x8] sm:$0xff] }
0x1206   :  { %14770 = vmatpush3.msra.mxu0 %v12864_v42  ;;  %v12947_v42 = vld [vmem:[%s18307_s11 + $0x30] sm:$0xff] }
0x1207   :  { %v12790_v5 = vmul.f32 1.442695, %v12788_v28  ;;  %v12792_v6 = vmul.f32 1.442695, %v12789_v45  ;;  %14771 = vmatprep.subr.mxu0 %v18396_v13  ;;  %v12336_v56 = vmul.f32 %v17988_v59, %v12301_v40  ;;  %v12337_v59 = vmul.f32 %v17994_v63, %v12305_v37  ;;  %v12948_v40 = vld [vmem:[%s18307_s11 + $0x38] sm:$0xff] }
0x1208   :  { %14781 = vmatpush3.msra.mxu1 %v12948_v40  ;;  %v13026_v37 = vld [vmem:[%s18308_s12 + $0x18] sm:$0xff] }
0x1209   :  { %15168 = vpow2.f32 %v12790_v5  ;;  %14782 = vmatprep.subr.mxu1 %v18396_v13 }
0x120a   :  { %15170 = vpow2.f32 %v12792_v6  ;;  %14783 = vmatpush3.msra.mxu1 %v12947_v42 }
0x120b   :  { %14784 = vmatprep.subr.mxu1 %v18396_v13 }
0x1216   :  { %v15169_v21 = vpop.eup %15168 }
0x1217   :  { %v15171_v57 = vpop.eup %15170  ;;  %12797 = vperm.xlu0 %14841, %v15169_v21  }
0x1218   :  { %12800 = vperm.xlu1 %14840, %v15171_v57  }
0x1292   :  { %v12798_v48 = vpop.permute.xlu0 %12797 }
0x1293   :  { %v12801_v24 = vpop.permute.xlu1 %12800  ;;  %v12805_v46 = vrot.slane %v12798_v48, %v17813_v25 }
0x1294   :  { %v12809_v10 = vrot.slane %v12801_v24, %v17813_v25 }
0x1296   :  { %v12810_v15 = vsel %vm11929_vm5, %v12809_v10, %v12805_v46 }
0x1297   :  { %v12812_v17 = vsel %vm12773_vm13, %v12810_v15, 0.0 }
0x1298   :  { %12813 = vadd.xlane.f32.xlu1 %v12812_v17 }
0x12a9   :  { %12405 = vperm.xlu1 %14840, %v12335_v7  }
0x1321   :  { %v12814_v14 = vpop.xlane.xlu1 %12813 }
0x1322   :  { %15172 = vrcp.f32 %v12814_v14 }
0x132f   :  { %v15173_v9 = vpop.eup %15172 }
0x1330   :  { %v12820_v1 = vrot.slane %v15173_v9, %v17894_v29  ;;  %v12824_v19 = vrot.slane %v15173_v9, %v17897_v4  ;;  %v12863_v4 = vld [vmem:[%s18306_s10 + $0x10] sm:$0xff]  ;;  %v13030_v9 = vld [vmem:[%s18309_s13 + $0x18] sm:$0xff] }
0x1331   :  { %14772 = vmatpush3.msra.mxu0 %v12863_v4  ;;  %v12946_v4 = vld [vmem:[%s18307_s11 + $0x28] sm:$0xff] }
0x1332   :  { %v12827_v3 = vmul.f32 %v15169_v21, %v12820_v1  ;;  %v12828_v49 = vmul.f32 %v15171_v57, %v12824_v19  ;;  %14773 = vmatprep.subr.mxu0 %v18396_v13  ;;  %14785 = vmatpush3.msra.mxu1 %v12946_v4 }
0x1333   :  { %14774 = vmatpush3.msra.mxu0 %v12862_v32  ;;  %14786 = vmatprep.subr.mxu1 %v18396_v13  ;;  %v12943_v32 = vld [vmem:[%s18307_s11 + $0x10] sm:$0xff] }
0x1334   :  { %12831 = vperm.xlu0 %14841, %v12827_v3   ;;  %14775 = vmatprep.subr.mxu0 %v18396_v13 }
0x1335   :  { %14776 = vmatpush3.msra.mxu0 %v12861_v2  ;;  %v12942_v2 = vld [vmem:[%s18307_s11 + $0x8] sm:$0xff] }
0x1336   :  { %14799 = vmatprep.subr.mxu0 %v18396_v13 }
0x1338   :  { %12836 = vperm.xlu0 %14841, %v12828_v49  }
0x133c   :  { %12340 = vperm.xlu0 %14841, %v12322_v0  }
0x1340   :  { %12345 = vperm.xlu0 %14841, %v12323_v54  }
0x1344   :  { %12395 = vperm.xlu0 %14841, %v12333_v8  }
0x1348   :  { %12410 = vperm.xlu0 %14841, %v12336_v56   ;;  %v12945_v56 = vld [vmem:[%s18307_s11 + $0x20] sm:$0xff] }
0x1349   :  { %14787 = vmatpush3.msra.mxu1 %v12945_v56 }
0x134a   :  { %14788 = vmatprep.subr.mxu1 %v18396_v13 }
0x134b   :  { %14789 = vmatpush3.msra.mxu1 %v12944_v41 }
0x134c   :  { %12400 = vperm.xlu0 %14841, %v12334_v33   ;;  %14790 = vmatprep.subr.mxu1 %v18396_v13  ;;  %v12941_v33 = vld [vmem:[%s18307_s11] sm:$0xff] }
0x134d   :  { %14791 = vmatpush3.msra.mxu1 %v12943_v32 }
0x134e   :  { %14792 = vmatprep.subr.mxu1 %v18396_v13 }
0x134f   :  { %14793 = vmatpush3.msra.mxu1 %v12942_v2 }
0x1350   :  { %12415 = vperm.xlu0 %14841, %v12337_v59   ;;  %14794 = vmatprep.subr.mxu1 %v18396_v13  ;;  %v13025_v59 = vld [vmem:[%s18308_s12 + $0x10] sm:$0xff] }
0x1351   :  { %14795 = vmatpush3.msra.mxu1 %v12941_v33 }
0x1354   :  { %12390 = vperm.xlu0 %14841, %v12332_v58  }
0x13af   :  { %v12832_v30 = vpop.permute.xlu0 %12831 }
0x13b0   :  { %v12844_v38 = vmul.f32 %v12832_v30, %v18115_v47 }
0x13b2   :  { %v12847_v20 = vsel %vm12846_vm14, %v12844_v38, 0.0 }
0x13b3   :  { %v12848_v11 = vrot.slane %v12847_v20, 4  ;;  %v12837_v55 = vpop.permute.xlu0 %12836 }
0x13b4   :  { %v12845_v27 = vmul.f32 %v18124_v50, %v12837_v55  ;;  %v13023_v55 = vld [vmem:[%s18308_s12] sm:$0xff] }
0x13b5   :  { %v12849_v23 = vadd.f32 %v12848_v11, %v12847_v20 }
0x13b6   :  { %v12854_v35 = vsel %vm12846_vm14, %v12845_v27, 0.0 }
0x13b7   :  { %v12850_v28 = vrot.slane %v12849_v23, 2  ;;  %v12855_v63 = vrot.slane %v12854_v35, 4  ;;  %v12341_v45 = vpop.permute.xlu0 %12340 }
0x13b8   :  { %v12418_v26 = vmul.f32 %v12341_v45, %v17707_v34 }
0x13b9   :  { %v12851_v44 = vadd.f32 %v12850_v28, %v12849_v23  ;;  %v12856_v5 = vadd.f32 %v12855_v63, %v12854_v35 }
0x13ba   :  { %v12434_v22 = vsel %vm71_vm0, %v12418_v26, 0.0  ;;  %v12406_v26 = vpop.permute.xlu1 %12405 }
0x13bb   :  { %v12857_v6 = vrot.slane %v12856_v5, 2  ;;  %v12435_v21 = vrot.slane %v12434_v22, 4  ;;  %v12346_v57 = vpop.permute.xlu0 %12345  ;;  %v12852_v48 = vrot.slane %v12851_v44, 1 }
0x13bc   :  { %v12419_v47 = vmul.f32 %v17705_v43, %v12346_v57  ;;  %v13029_v43 = vld [vmem:[%s18309_s13 + $0x10] sm:$0xff] }
0x13bd   :  { %v12858_v24 = vadd.f32 %v12857_v6, %v12856_v5  ;;  %v12436_v46 = vadd.f32 %v12435_v21, %v12434_v22  ;;  %v12853_v51 = vadd.f32 %v12852_v48, %v12851_v44  ;;  %v12431_v21 = vmul.f32 %v17751_v31, %v12406_v26 }
0x13be   :  { %v12441_v50 = vsel %vm71_vm0, %v12419_v47, 0.0 }
0x13bf   :  { %v12859_v10 = vrot.slane %v12858_v24, 1  ;;  %v12437_v15 = vrot.slane %v12436_v46, 2  ;;  %v12442_v17 = vrot.slane %v12441_v50, 4  ;;  %v12396_v35 = vpop.permute.xlu0 %12395 }
0x13c0   :  { %v12429_v44 = vmul.f32 %v17745_v16, %v12396_v35  ;;  %v12525_v16 = vsel %vm71_vm0, %v12431_v21, 0.0 }
0x13c1   :  { %v12860_v7 = vadd.f32 %v12859_v10, %v12858_v24  ;;  %v12438_v34 = vadd.f32 %v12437_v15, %v12436_v46  ;;  %v12443_v14 = vadd.f32 %v12442_v17, %v12441_v50  ;;  %v12526_v15 = vrot.slane %v12525_v16, 4 }
0x13c2   :  { %v12511_v47 = vsel %vm71_vm0, %v12429_v44, 0.0 }
0x13c3   :  { %v12444_v1 = vrot.slane %v12443_v14, 2  ;;  %v12867_v3 = vsel %vm11929_vm5, %v12860_v7, %v12853_v51  ;;  %v12439_v19 = vrot.slane %v12438_v34, 1  ;;  %v12411_v28 = vpop.permute.xlu0 %12410  ;;  %v12512_v50 = vrot.slane %v12511_v47, 4 }
0x13c4   :  { %14778 = vmatmul.mubr.msk.f32.vlgmr.msra.gmra.mxu0 %vm71_vm0, %v12867_v3  ;;  %v12432_v22 = vmul.f32 %v12411_v28, %v17763_v18 }
0x13c5   :  { %v12445_v49 = vadd.f32 %v12444_v1, %v12443_v14  ;;  %14800 = vmatpush3.msra.mxu0 %v13030_v9  ;;  %14807 = vmatprep.mubr.msk.f32.mxu0 %vm15199_vm1, %v18396_v13  ;;  %v12440_v54 = vadd.f32 %v12439_v19, %v12438_v34  ;;  %v12513_v17 = vadd.f32 %v12512_v50, %v12511_v47 }
0x13c6   :  { %14801 = vmatprep.subr.mxu0 %v18396_v13  ;;  %v12532_v24 = vsel %vm71_vm0, %v12432_v22, 0.0  ;;  %v12527_v34 = vadd.f32 %v12526_v15, %v12525_v16 }
0x13c7   :  { %v12446_v0 = vrot.slane %v12445_v49, 1  ;;  %14802 = vmatpush3.msra.mxu0 %v13029_v43  ;;  %v12533_v10 = vrot.slane %v12532_v24, 4  ;;  %v12514_v9 = vrot.slane %v12513_v17, 2 }
0x13c8   :  { %14803 = vmatprep.subr.mxu0 %v18396_v13  ;;  %v12528_v19 = vrot.slane %v12527_v34, 2 }
0x13c9   :  { %v12447_v61 = vadd.f32 %v12446_v0, %v12445_v49  ;;  %14804 = vmatpush3.msra.mxu0 %v13028_v36  ;;  %v12534_v51 = vadd.f32 %v12533_v10, %v12532_v24  ;;  %v13556_v0 = vld [vmem:[%s18310_s14] ss:$0 sm:$0xff]  ;;  %s15208_s14 = smov [#allocation2]  }
0x13ca   :  { %14805 = vmatprep.subr.mxu0 %v18396_v13  ;;  %v12529_v56 = vadd.f32 %v12528_v19, %v12527_v34  ;;  %s13269_s28 = sshll.u32 %s15208_s14, 4  ;;  %s13270_s28 = int_to_ptr.vmem [resolvable:$true] %s13269_s28 }
0x13cb   :  { %14806 = vmatpush3.msra.mxu0 %v13027_v62  ;;  %v13033_v8 = vsel %vm11929_vm5, %v12447_v61, %v12440_v54  ;;  %v12535_v3 = vrot.slane %v12534_v51, 2  ;;  %v12515_v62 = vadd.f32 %v12514_v9, %v12513_v17  ;;  %s15176_s29 = scalar_lea.vmem %s13270_s28, 32  ;;  %p15181_p1 = scmp.lt.s32.totalorder %s13270_s28, %s13270_s28 }
0x13cc   :  { %14808 = vmatmul.mubr.msk.f32.vlgmr.msra.gmra.mxu0 %vm71_vm0, %v13033_v8  ;;  %14810 = vmatprep.subr.mxu0 %v18396_v13  ;;  %p15177_p0 = scmp.ne.s32.totalorder %s13270_s28, %s15176_s29  ;;  %p15182_p2 = scmp.lt.s32.totalorder %s15176_s29, %s15176_s29 }
0x13cd   :  { %14818 = vmatprep.mubr.msk.f32.mxu0 %vm15199_vm1, %v18396_v13  ;;  %14811 = vmatpush3.msra.mxu0 %v13026_v37  ;;  %v12536_v8 = vadd.f32 %v12535_v3, %v12534_v51  ;;  %v12516_v32 = vrot.slane %v12515_v62, 1  ;;  %vm13261_vm1 = vcmask 17408  }
0x13ce   :  { %14812 = vmatprep.subr.mxu0 %v18396_v13  ;;  %p15183_p3 = por %p15182_p2, %p15181_p1 }
0x13cf   :  { %14813 = vmatpush3.msra.mxu0 %v13025_v59  ;;  %v12537_v37 = vrot.slane %v12536_v8, 1 }
0x13d0   :  { %14814 = vmatprep.subr.mxu0 %v18396_v13  ;;  %p15184_p4 = pnand %p15183_p3, %p15177_p0 }
0x13d1   :  { %14815 = vmatpush3.msra.mxu0 %v13024_v12 }
0x13d2   :  { %14816 = vmatprep.subr.mxu0 %v18396_v13  ;;  %v12401_v13 = vpop.permute.xlu0 %12400 }
0x13d3   :  { %14817 = vmatpush3.msra.mxu0 %v13023_v55  ;;  %v12430_v5 = vmul.f32 %v12401_v13, %v17755_v53 }
0x13d5   :  { %v12518_v48 = vsel %vm71_vm0, %v12430_v5, 0.0 }
0x13d6   :  { %v12416_v63 = vpop.permute.xlu0 %12415  ;;  %v12519_v53 = vrot.slane %v12518_v48, 4 }
0x13d7   :  { %v12433_v57 = vmul.f32 %v17761_v52, %v12416_v63 }
0x13d8   :  { %v12520_v52 = vadd.f32 %v12519_v53, %v12518_v48 }
0x13d9   :  { %v12539_v18 = vsel %vm71_vm0, %v12433_v57, 0.0 }
0x13da   :  { %v12391_v45 = vpop.permute.xlu0 %12390  ;;  %v12540_v31 = vrot.slane %v12539_v18, 4  ;;  %v12521_v1 = vrot.slane %v12520_v52, 2 }
0x13db   :  { %v12428_v6 = vmul.f32 %v12391_v45, %v17747_v39 }
0x13dc   :  { %v12541_v14 = vadd.f32 %v12540_v31, %v12539_v18  ;;  %v12522_v54 = vadd.f32 %v12521_v1, %v12520_v52 }
0x13dd   :  { %v12504_v46 = vsel %vm71_vm0, %v12428_v6, 0.0 }
0x13de   :  { %v12505_v39 = vrot.slane %v12504_v46, 4  ;;  %v12542_v49 = vrot.slane %v12541_v14, 2  ;;  %v12523_v2 = vrot.slane %v12522_v54, 1 }
0x13e0   :  { %v12506_v7 = vadd.f32 %v12505_v39, %v12504_v46  ;;  %v12543_v41 = vadd.f32 %v12542_v49, %v12541_v14  ;;  %v12524_v55 = vadd.f32 %v12523_v2, %v12522_v54 }
0x13e2   :  { %v12507_v43 = vrot.slane %v12506_v7, 2 }
0x13e4   :  { %v12508_v42 = vadd.f32 %v12507_v43, %v12506_v7 }
0x13e6   :  { %v12509_v59 = vrot.slane %v12508_v42, 1 }
0x13e8   :  { %v12510_v35 = vadd.f32 %v12509_v59, %v12508_v42 }
0x1484   :  { %v12936_v58 = vpop.f32.mrf.mxu0 }
0x1485   :  { %15174 = vtanh.f32 %v12936_v58 }
0x1486   :  { %v14779_v30 = vpop.f32.mrf.mxu0 }
0x1487   :  { %v12530_v30 = vrot.slane %v12529_v56, 1 }
0x1489   :  { %v12531_v45 = vadd.f32 %v12530_v30, %v12529_v56 }
0x148c   :  { %v13102_v38 = vpop.f32.mrf.mxu0 }
0x148e   :  { %v14809_v20 = vpop.f32.mrf.mxu0 }
0x148f   :  { %v12544_v20 = vrot.slane %v12543_v41, 1 }
0x1491   :  { %v12545_v26 = vadd.f32 %v12544_v20, %v12543_v41 }
0x1492   :  { %v15175_v11 = vpop.eup %15174 }
0x1493   :  { %14797 = vmatmul.mubr.msk.f32.vlgmr.msra.gmra.mxu1 %vm12949_vm15, %v15175_v11  ;;  %v12517_v11 = vadd.f32 %v12516_v32, %v12515_v62 }
0x1553   :  { %v13019_v27 = vpop.f32.mrf.mxu1 }
0x1554   :  { %14819 = vmatmul.mubr.msk.f32.vlgmr.msra.gmra.mxu0 %vm71_vm0, %v13019_v27  ;;  %vm13242_vm0 = vcmask 256000  }
0x1555   :  { %v14798_v23 = vpop.f32.mrf.mxu1 }
0x1556   :  { %v12538_v23 = vadd.f32 %v12537_v37, %v12536_v8 }
0x1614   :  { %v13175_v36 = vpop.f32.mrf.mxu0 }
0x1615   :  { %v13176_v61 = vadd.f32 %v13175_v36, %v13102_v38 }
0x1616   :  { %v14820_v40 = vpop.f32.mrf.mxu0 }
0x1617   :  { %v13186_v4 = vadd.f32 %v13556_v0, %v13176_v61 }
0x1619   :  { %v13194_v33 = vrot.slane %v13186_v4, %v18130_v60 }
0x161b   :  { %v13195_v12 = vcombine.high %v13194_v33, %v13194_v33  ;;  %v13202_v58 = vrot.slane %v13194_v33, %v18130_v60 }
0x161d   :  { %v13209_v38 = vrot.slane %v13195_v12, %v18130_v60  ;;  %v13213_v27 = vrot.slane %v13202_v58, %v17894_v29 }
0x161f   :  { %v13217_v28 = vrot.slane %v13209_v38, %v17894_v29  ;;  %v13221_v13 = vmul.f32 %v13213_v27, %v12517_v11  ;;  %v13222_v63 = vmul.f32 %v13213_v27, %v12524_v55  ;;  %v13220_v44 = vmul.f32 %v13213_v27, %v12510_v35 }
0x1621   :  { %v13232_v5 = vrot.slane %v13221_v13, 7  ;;  %v13234_v22 = vrot.slane %v13222_v63, 6  ;;  %v13224_v6 = vmul.f32 %v13217_v28, %v12538_v23  ;;  %v13225_v21 = vmul.f32 %v13217_v28, %v12545_v26 }
0x1622   :  { %v13223_v47 = vmul.f32 %v13217_v28, %v12531_v45 }
0x1623   :  { %v13233_v57 = vsel %vm11929_vm5, %v13232_v5, %v13220_v44  ;;  %v13236_v60 = vrot.slane %v13224_v6, 7  ;;  %v13238_v24 = vrot.slane %v13225_v21, 6 }
0x1624   :  { %v13235_v48 = vsel %vm11931_vm6, %v13234_v22, %v13233_v57 }
0x1625   :  { %v13243_v46 = vsel %vm13242_vm0, %v13235_v48, 0.0  ;;  %v13237_v29 = vsel %vm11929_vm5, %v13236_v60, %v13223_v47 }
0x1626   :  { %13244 = vadd.xlane.f32.xlu0 %v13243_v46  ;;  %v13239_v16 = vsel %vm11931_vm6, %v13238_v24, %v13237_v29 }
0x1627   :  { %v13246_v50 = vsel %vm13242_vm0, %v13239_v16, 0.0 }
0x1628   :  { %13247 = vadd.xlane.f32.xlu1 %v13246_v50 }
0x16af   :  { %v13245_v53 = vpop.xlane.xlu0 %13244 }
0x16b0   :  { %v13254_v10 = vrot.slane %v13245_v53, %v17813_v25 }
0x16b1   :  { %v13248_v18 = vpop.xlane.xlu1 %13247 }
0x16b2   :  { %v13258_v39 = vrot.slane %v13248_v18, %v17813_v25 }
0x16b4   :  { %v13259_v15 = vsel %vm11929_vm5, %v13258_v39, %v13254_v10 }
0x16b5   :  { %13262 = vst.msk [vmem:[#allocation2] sm:$0x3] %vm13261_vm1, %v13259_v15 }
0x16b6   :  { %15187 = shalt.err (!%p15184_p4)
}
0x16b7   :  { %13272 = dma.vmem_to_hbm [thread:$0]  %s13270_s28, 32, %s18311_s15, [#allocation3]  }
0x16b8   :  { %15196 = dma.done.wait [#allocation3], 32  }
0x16b9   :  { %15197 = vsyncadd [#allocation3], 4294967264 }
0x16ba   :  { %13276 = vsyncpa [#allocation3], 1 }

</bundles_post_ra>
